<compile_context>
chip_gen: v7x
topology: tpu7x:2x2x1
jax: 0.10.0
libtpu: 0.0.40
codegen_flags: <defaults>
</compile_context>

<pallas_src>
import math

import jax
import jax.numpy as jnp
from jax.experimental import pallas as pl
from jax.experimental.pallas import tpu as pltpu  # noqa: F401  (TPU backend)

# ----------------------------- configuration --------------------------------
IMG = 16          # img_size
PATCH = 8         # patch_size
IN_CHANS = 3
EMBED_DIM = 32
DEPTH = 3
NUM_HEADS = 4
MLP_RATIO = 4.0
BATCH = 2

NUM_PATCHES = (IMG // PATCH) * (IMG // PATCH)   # 4
N_TOK = NUM_PATCHES + 1                         # 5 (cls token + patches)
HEAD_DIM = EMBED_DIM // NUM_HEADS               # 8
MLP_HIDDEN = int(EMBED_DIM * MLP_RATIO)         # 128
PATCH_K = IN_CHANS * PATCH * PATCH              # 192
LN_EPS = 1e-5
ATTN_SCALE = HEAD_DIM ** (-0.5)
N_BLOCK_PARAMS = 11

_INV_SQRT2 = 1.0 / math.sqrt(2.0)
# Abramowitz & Stegun 7.1.26 erf coefficients.
_ERF_P = 0.3275911
_ERF_A1 = 0.254829592
_ERF_A2 = -0.284496736
_ERF_A3 = 1.421413741
_ERF_A4 = -1.453152027
_ERF_A5 = 1.061405429


# ----------------------------- kernel helpers --------------------------------
def _erf(z):
    # f32-exact erf (max abs err 1.5e-7) from exp/mul/add/where only — avoids
    # relying on a lax.erf lowering rule in Mosaic.
    sgn = jnp.where(z >= 0.0, 1.0, -1.0)
    a = jnp.abs(z)
    t = 1.0 / (1.0 + _ERF_P * a)
    poly = t * (_ERF_A1 + t * (_ERF_A2 + t * (_ERF_A3 + t * (_ERF_A4 + t * _ERF_A5))))
    return sgn * (1.0 - poly * jnp.exp(-(a * a)))


def _gelu_exact(x):
    # torch.nn.GELU default (exact, erf-based).
    return 0.5 * x * (1.0 + _erf(x * _INV_SQRT2))


def _layer_norm(x, w, b):
    # PyTorch LayerNorm: biased variance, eps=1e-5.  x: (..., C), w/b: (1, C).
    mu = jnp.mean(x, axis=-1, keepdims=True)
    var = jnp.mean((x - mu) ** 2, axis=-1, keepdims=True)
    return (x - mu) * jax.lax.rsqrt(var + LN_EPS) * w + b


def _block(x, bmm, ln1w, ln1b, qkvw, projw, projb, ln2w, ln2b,
           fc1w, fc1b, fc2w, fc2b):
    # x: (B, N, C) f32, resident in VMEM/vregs for the whole fused forward.
    C = EMBED_DIM

    # ---- attention branch (pre-norm) ----------------------------------------
    y = _layer_norm(x, ln1w, ln1b)
    qkv = bmm(y, qkvw)                                   # (B, N, 3C); qkv_bias=False
    head_ctx = []
    for h in range(NUM_HEADS):                           # static unroll (4 heads)
        lo = h * HEAD_DIM
        q = qkv[:, :, lo:lo + HEAD_DIM]                  # scale folded into W_q
        k = qkv[:, :, C + lo:C + lo + HEAD_DIM]
        v = qkv[:, :, 2 * C + lo:2 * C + lo + HEAD_DIM]
        s = jnp.einsum('bnd,bmd->bnm', q, k, preferred_element_type=jnp.float32)
        s = s - jnp.max(s, axis=-1, keepdims=True)
        p = jnp.exp(s)
        # softmax denominator on the EUP slot (free relative to VALU divide)
        p = p * pl.reciprocal(jnp.sum(p, axis=-1, keepdims=True), approx=True)
        head_ctx.append(
            jnp.einsum('bnm,bmd->bnd', p, v, preferred_element_type=jnp.float32))
    ctx = jnp.concatenate(head_ctx, axis=-1)             # (B, N, C)
    x = x + bmm(ctx, projw) + projb                      # residual

    # ---- MLP branch (pre-norm) -----------------------------------------------
    y2 = _layer_norm(x, ln2w, ln2b)
    h1 = _gelu_exact(bmm(y2, fc1w) + fc1b)
    return x + bmm(h1, fc2w) + fc2b                      # residual


def vit_kernel(*refs):
    # refs = (patches, patch_w, token_add,
    #         DEPTH * 11 block params..., norm_w, norm_b, out)
    patches_ref, pw_ref, add_ref = refs[0], refs[1], refs[2]
    rest = refs[3:]
    blk_refs = rest[:DEPTH * N_BLOCK_PARAMS]
    normw_ref, normb_ref, out_ref = rest[DEPTH * N_BLOCK_PARAMS:]

    B = patches_ref.shape[0]

    def bmm(lhs, w):
        # (B, N, Cin) @ (Cin, Cout) as a single batched MXU contraction.
        wb = jnp.broadcast_to(w, (B,) + w.shape)
        return jnp.einsum('bnc,bcf->bnf', lhs, wb,
                          preferred_element_type=jnp.float32)

    # Patch embedding fused with cls-token concat + pos-embed add: row 0 of
    # each image's patch slab is all-zero, and add_ref carries
    # (cls_token + pos[0]) for row 0 and (conv_bias + pos[i]) for patch rows.
    x = bmm(patches_ref[...], pw_ref[...]) + add_ref[...]            # (B, N, C)

    for i in range(DEPTH):                                           # static unroll
        p = [blk_refs[i * N_BLOCK_PARAMS + j][...] for j in range(N_BLOCK_PARAMS)]
        x = _block(x, bmm, *p)

    # Final LayerNorm only needs to be applied to the returned cls rows.
    cls = x[:, 0, :]                                                 # (B, C)
    out_ref[...] = _layer_norm(
        cls, normw_ref[...], normb_ref[...]).astype(out_ref.dtype)


# ------------------------------ wrapper ---------------------------------------
@jax.jit
def vit_forward(x, params):
    """x: (B, C, H, W) NCHW float32. Returns (B, EMBED_DIM) cls embeddings."""
    B = x.shape[0]
    p = PATCH
    # stride==kernel Conv2d == per-patch matmul; extract patches (plain XLA glue)
    patches = (x.reshape(B, IN_CHANS, IMG // p, p, IMG // p, p)
                 .transpose(0, 2, 4, 1, 3, 5)
                 .reshape(B, NUM_PATCHES, PATCH_K))
    # prepend a zero row per image: its embedding comes entirely from token_add
    patches = jnp.pad(patches, ((0, 0), (1, 0), (0, 0)))             # (B, N, K)

    flat = [patches, params["patch_w"], params["token_add"]]
    for blk in params["blocks"]:
        flat.extend(blk)
    flat += [params["norm_w"], params["norm_b"]]

    return pl.pallas_call(
        vit_kernel,
        out_shape=jax.ShapeDtypeStruct((B, EMBED_DIM), jnp.float32),
    )(*flat)


# ------------------------------ parameters ------------------------------------
def init_params(key):
    ks = jax.random.split(key, 4 + DEPTH)
    std = 0.02
    conv_w = std * jax.random.normal(
        ks[0], (EMBED_DIM, IN_CHANS, PATCH, PATCH), jnp.float32)
    conv_b = std * jax.random.normal(ks[1], (EMBED_DIM,), jnp.float32)
    cls_token = std * jax.random.normal(ks[2], (1, 1, EMBED_DIM), jnp.float32)
    pos_embed = std * jax.random.normal(ks[3], (1, N_TOK, EMBED_DIM), jnp.float32)

    p = {}
    # Pre-transposed patch-embedding weight: (K, E) so the kernel does x @ W.
    p["patch_w"] = conv_w.reshape(EMBED_DIM, PATCH_K).T
    # Fused additive matrix: row 0 = cls_token + pos[0]; rows 1.. = conv_b + pos[i].
    add = jnp.concatenate(
        [cls_token.reshape(1, EMBED_DIM),
         jnp.broadcast_to(conv_b[None, :], (NUM_PATCHES, EMBED_DIM))], axis=0)
    p["token_add"] = add + pos_embed.reshape(N_TOK, EMBED_DIM)
    p["norm_w"] = jnp.ones((1, EMBED_DIM), jnp.float32)
    p["norm_b"] = jnp.zeros((1, EMBED_DIM), jnp.float32)

    blocks = []
    for i in range(DEPTH):
        bk = jax.random.split(ks[4 + i], 4)
        qkv_w = std * jax.random.normal(bk[0], (EMBED_DIM, 3 * EMBED_DIM),
                                        jnp.float32)
        # Fold attention scale (head_dim ** -0.5) into the Q columns.
        qkv_w = qkv_w.at[:, :EMBED_DIM].multiply(ATTN_SCALE)
        blk = (
            jnp.ones((1, EMBED_DIM), jnp.float32),                   # ln1 w
            jnp.zeros((1, EMBED_DIM), jnp.float32),                  # ln1 b
            qkv_w,                                                   # qkv W^T (qkv_bias=False)
            std * jax.random.normal(bk[1], (EMBED_DIM, EMBED_DIM),
                                    jnp.float32),                    # proj W^T
            jnp.zeros((1, EMBED_DIM), jnp.float32),                  # proj b (init 0)
            jnp.ones((1, EMBED_DIM), jnp.float32),                   # ln2 w
            jnp.zeros((1, EMBED_DIM), jnp.float32),                  # ln2 b
            std * jax.random.normal(bk[2], (EMBED_DIM, MLP_HIDDEN),
                                    jnp.float32),                    # fc1 W^T
            jnp.zeros((1, MLP_HIDDEN), jnp.float32),                 # fc1 b (init 0)
            std * jax.random.normal(bk[3], (MLP_HIDDEN, EMBED_DIM),
                                    jnp.float32),                    # fc2 W^T
            jnp.zeros((1, EMBED_DIM), jnp.float32),                  # fc2 b (init 0)
        )
        blocks.append(blk)
    p["blocks"] = blocks
    return p


# -------------------------------- main ----------------------------------------
if __name__ == "__main__":
    key = jax.random.PRNGKey(0)
    k_x, k_p = jax.random.split(key)
    x = jax.random.normal(k_x, (BATCH, IN_CHANS, IMG, IMG), jnp.float32)
    params = init_params(k_p)

    out = vit_forward(x, params)
    out = jax.block_until_ready(out)
    assert out.shape == (BATCH, EMBED_DIM), out.shape
    assert bool(jnp.all(jnp.isfinite(out)))
    print("KERNEL_OK")
</pallas_src>

<mosaic_0001>
module attributes {stable_mosaic.version = 11 : i64} {
  func.func @vit_kernel(%arg0: memref<2x5x192xf32, #tpu.memory_space<vmem>>, %arg1: memref<192x32xf32, #tpu.memory_space<vmem>>, %arg2: memref<5x32xf32, #tpu.memory_space<vmem>>, %arg3: memref<1x32xf32, #tpu.memory_space<vmem>>, %arg4: memref<1x32xf32, #tpu.memory_space<vmem>>, %arg5: memref<32x96xf32, #tpu.memory_space<vmem>>, %arg6: memref<32x32xf32, #tpu.memory_space<vmem>>, %arg7: memref<1x32xf32, #tpu.memory_space<vmem>>, %arg8: memref<1x32xf32, #tpu.memory_space<vmem>>, %arg9: memref<1x32xf32, #tpu.memory_space<vmem>>, %arg10: memref<32x128xf32, #tpu.memory_space<vmem>>, %arg11: memref<1x128xf32, #tpu.memory_space<vmem>>, %arg12: memref<128x32xf32, #tpu.memory_space<vmem>>, %arg13: memref<1x32xf32, #tpu.memory_space<vmem>>, %arg14: memref<1x32xf32, #tpu.memory_space<vmem>>, %arg15: memref<1x32xf32, #tpu.memory_space<vmem>>, %arg16: memref<32x96xf32, #tpu.memory_space<vmem>>, %arg17: memref<32x32xf32, #tpu.memory_space<vmem>>, %arg18: memref<1x32xf32, #tpu.memory_space<vmem>>, %arg19: memref<1x32xf32, #tpu.memory_space<vmem>>, %arg20: memref<1x32xf32, #tpu.memory_space<vmem>>, %arg21: memref<32x128xf32, #tpu.memory_space<vmem>>, %arg22: memref<1x128xf32, #tpu.memory_space<vmem>>, %arg23: memref<128x32xf32, #tpu.memory_space<vmem>>, %arg24: memref<1x32xf32, #tpu.memory_space<vmem>>, %arg25: memref<1x32xf32, #tpu.memory_space<vmem>>, %arg26: memref<1x32xf32, #tpu.memory_space<vmem>>, %arg27: memref<32x96xf32, #tpu.memory_space<vmem>>, %arg28: memref<32x32xf32, #tpu.memory_space<vmem>>, %arg29: memref<1x32xf32, #tpu.memory_space<vmem>>, %arg30: memref<1x32xf32, #tpu.memory_space<vmem>>, %arg31: memref<1x32xf32, #tpu.memory_space<vmem>>, %arg32: memref<32x128xf32, #tpu.memory_space<vmem>>, %arg33: memref<1x128xf32, #tpu.memory_space<vmem>>, %arg34: memref<128x32xf32, #tpu.memory_space<vmem>>, %arg35: memref<1x32xf32, #tpu.memory_space<vmem>>, %arg36: memref<1x32xf32, #tpu.memory_space<vmem>>, %arg37: memref<1x32xf32, #tpu.memory_space<vmem>>, %arg38: memref<2x32xf32, #tpu.memory_space<vmem>>) attributes {dimension_semantics = [], scalar_prefetch = 0 : i64, scratch_operands = 0 : i64, tpu.core_type = #tpu.core_type<tc>} {
    %c0 = arith.constant 0 : index
    %c0_0 = arith.constant 0 : index
    %c0_1 = arith.constant 0 : index
    %0 = vector.load %arg0[%c0, %c0_0, %c0_1] : memref<2x5x192xf32, #tpu.memory_space<vmem>>, vector<2x5x192xf32>
    %c0_2 = arith.constant 0 : index
    %c0_3 = arith.constant 0 : index
    %1 = vector.load %arg1[%c0_2, %c0_3] : memref<192x32xf32, #tpu.memory_space<vmem>>, vector<192x32xf32>
    %2 = vector.shape_cast %1 : vector<192x32xf32> to vector<1x192x32xf32>
    %3 = vector.broadcast %2 : vector<1x192x32xf32> to vector<2x192x32xf32>
    "tpu.trace_start"() <{level = 10 : i32, message = "bnc,bcf->bnf"}> : () -> ()
    %cst = arith.constant dense<0.000000e+00> : vector<2x5x32xf32>
    %4 = tpu.matmul %0, %3, %cst {dimension_numbers = #tpu.dot_dimension_numbers<[2], [1], [1], [2], [0, 0, 0, 1, 1, 2], [0], [0]>} : vector<2x5x192xf32>, vector<2x192x32xf32>, vector<2x5x32xf32> -> vector<2x5x32xf32>
    "tpu.trace_stop"() : () -> ()
    %c0_4 = arith.constant 0 : index
    %c0_5 = arith.constant 0 : index
    %5 = vector.load %arg2[%c0_4, %c0_5] : memref<5x32xf32, #tpu.memory_space<vmem>>, vector<5x32xf32>
    %6 = vector.shape_cast %5 : vector<5x32xf32> to vector<1x5x32xf32>
    %7 = vector.broadcast %6 : vector<1x5x32xf32> to vector<2x5x32xf32>
    %8 = arith.addf %4, %7 : vector<2x5x32xf32>
    %c0_6 = arith.constant 0 : index
    %c0_7 = arith.constant 0 : index
    %9 = vector.load %arg3[%c0_6, %c0_7] : memref<1x32xf32, #tpu.memory_space<vmem>>, vector<1x32xf32>
    %c0_8 = arith.constant 0 : index
    %c0_9 = arith.constant 0 : index
    %10 = vector.load %arg4[%c0_8, %c0_9] : memref<1x32xf32, #tpu.memory_space<vmem>>, vector<1x32xf32>
    %c0_10 = arith.constant 0 : index
    %c0_11 = arith.constant 0 : index
    %11 = vector.load %arg5[%c0_10, %c0_11] : memref<32x96xf32, #tpu.memory_space<vmem>>, vector<32x96xf32>
    %c0_12 = arith.constant 0 : index
    %c0_13 = arith.constant 0 : index
    %12 = vector.load %arg6[%c0_12, %c0_13] : memref<32x32xf32, #tpu.memory_space<vmem>>, vector<32x32xf32>
    %c0_14 = arith.constant 0 : index
    %c0_15 = arith.constant 0 : index
    %13 = vector.load %arg7[%c0_14, %c0_15] : memref<1x32xf32, #tpu.memory_space<vmem>>, vector<1x32xf32>
    %c0_16 = arith.constant 0 : index
    %c0_17 = arith.constant 0 : index
    %14 = vector.load %arg8[%c0_16, %c0_17] : memref<1x32xf32, #tpu.memory_space<vmem>>, vector<1x32xf32>
    %c0_18 = arith.constant 0 : index
    %c0_19 = arith.constant 0 : index
    %15 = vector.load %arg9[%c0_18, %c0_19] : memref<1x32xf32, #tpu.memory_space<vmem>>, vector<1x32xf32>
    %c0_20 = arith.constant 0 : index
    %c0_21 = arith.constant 0 : index
    %16 = vector.load %arg10[%c0_20, %c0_21] : memref<32x128xf32, #tpu.memory_space<vmem>>, vector<32x128xf32>
    %c0_22 = arith.constant 0 : index
    %c0_23 = arith.constant 0 : index
    %17 = vector.load %arg11[%c0_22, %c0_23] : memref<1x128xf32, #tpu.memory_space<vmem>>, vector<1x128xf32>
    %c0_24 = arith.constant 0 : index
    %c0_25 = arith.constant 0 : index
    %18 = vector.load %arg12[%c0_24, %c0_25] : memref<128x32xf32, #tpu.memory_space<vmem>>, vector<128x32xf32>
    %c0_26 = arith.constant 0 : index
    %c0_27 = arith.constant 0 : index
    %19 = vector.load %arg13[%c0_26, %c0_27] : memref<1x32xf32, #tpu.memory_space<vmem>>, vector<1x32xf32>
    %cst_28 = arith.constant dense<0.000000e+00> : vector<2x5xf32>
    %20 = vector.multi_reduction <add>, %8, %cst_28 [2] : vector<2x5x32xf32> to vector<2x5xf32>
    %21 = vector.shape_cast %20 : vector<2x5xf32> to vector<2x5x1xf32>
    %cst_29 = arith.constant 3.200000e+01 : f32
    %22 = vector.broadcast %cst_29 : f32 to vector<2x5x1xf32>
    %23 = arith.divf %21, %22 : vector<2x5x1xf32>
    %24 = vector.broadcast %23 : vector<2x5x1xf32> to vector<2x5x32xf32>
    %25 = arith.subf %8, %24 : vector<2x5x32xf32>
    %26 = arith.mulf %25, %25 : vector<2x5x32xf32>
    %cst_30 = arith.constant dense<0.000000e+00> : vector<2x5xf32>
    %27 = vector.multi_reduction <add>, %26, %cst_30 [2] : vector<2x5x32xf32> to vector<2x5xf32>
    %28 = vector.shape_cast %27 : vector<2x5xf32> to vector<2x5x1xf32>
    %cst_31 = arith.constant 3.200000e+01 : f32
    %29 = vector.broadcast %cst_31 : f32 to vector<2x5x1xf32>
    %30 = arith.divf %28, %29 : vector<2x5x1xf32>
    %31 = vector.broadcast %23 : vector<2x5x1xf32> to vector<2x5x32xf32>
    %32 = arith.subf %8, %31 : vector<2x5x32xf32>
    %cst_32 = arith.constant 9.99999974E-6 : f32
    %33 = vector.broadcast %cst_32 : f32 to vector<2x5x1xf32>
    %34 = arith.addf %30, %33 : vector<2x5x1xf32>
    %35 = math.rsqrt %34 : vector<2x5x1xf32>
    %36 = vector.broadcast %35 : vector<2x5x1xf32> to vector<2x5x32xf32>
    %37 = arith.mulf %32, %36 : vector<2x5x32xf32>
    %38 = vector.shape_cast %9 : vector<1x32xf32> to vector<1x1x32xf32>
    %39 = vector.broadcast %38 : vector<1x1x32xf32> to vector<2x5x32xf32>
    %40 = arith.mulf %37, %39 : vector<2x5x32xf32>
    %41 = vector.shape_cast %10 : vector<1x32xf32> to vector<1x1x32xf32>
    %42 = vector.broadcast %41 : vector<1x1x32xf32> to vector<2x5x32xf32>
    %43 = arith.addf %40, %42 : vector<2x5x32xf32>
    %44 = vector.shape_cast %11 : vector<32x96xf32> to vector<1x32x96xf32>
    %45 = vector.broadcast %44 : vector<1x32x96xf32> to vector<2x32x96xf32>
    "tpu.trace_start"() <{level = 10 : i32, message = "bnc,bcf->bnf"}> : () -> ()
    %cst_33 = arith.constant dense<0.000000e+00> : vector<2x5x96xf32>
    %46 = tpu.matmul %43, %45, %cst_33 {dimension_numbers = #tpu.dot_dimension_numbers<[2], [1], [1], [2], [0, 0, 0, 1, 1, 2], [0], [0]>} : vector<2x5x32xf32>, vector<2x32x96xf32>, vector<2x5x96xf32> -> vector<2x5x96xf32>
    "tpu.trace_stop"() : () -> ()
    %47 = vector.extract_strided_slice %46 {offsets = [0, 0, 0], sizes = [2, 5, 8], strides = [1, 1, 1]} : vector<2x5x96xf32> to vector<2x5x8xf32>
    %48 = vector.extract_strided_slice %46 {offsets = [0, 0, 32], sizes = [2, 5, 8], strides = [1, 1, 1]} : vector<2x5x96xf32> to vector<2x5x8xf32>
    %49 = vector.extract_strided_slice %46 {offsets = [0, 0, 64], sizes = [2, 5, 8], strides = [1, 1, 1]} : vector<2x5x96xf32> to vector<2x5x8xf32>
    "tpu.trace_start"() <{level = 10 : i32, message = "bnd,bmd->bnm"}> : () -> ()
    %cst_34 = arith.constant dense<0.000000e+00> : vector<2x5x5xf32>
    %50 = tpu.matmul %47, %48, %cst_34 {dimension_numbers = #tpu.dot_dimension_numbers<[2], [2], [1], [1], [0, 0, 0, 1, 1, 1], [0], [0]>} : vector<2x5x8xf32>, vector<2x5x8xf32>, vector<2x5x5xf32> -> vector<2x5x5xf32>
    "tpu.trace_stop"() : () -> ()
    %cst_35 = arith.constant dense<0xFF800000> : vector<2x5xf32>
    %51 = vector.multi_reduction <maximumf>, %50, %cst_35 [2] : vector<2x5x5xf32> to vector<2x5xf32>
    %52 = vector.shape_cast %51 : vector<2x5xf32> to vector<2x5x1xf32>
    %53 = vector.broadcast %52 : vector<2x5x1xf32> to vector<2x5x5xf32>
    %54 = arith.subf %50, %53 : vector<2x5x5xf32>
    %55 = math.exp %54 : vector<2x5x5xf32>
    %cst_36 = arith.constant dense<0.000000e+00> : vector<2x5xf32>
    %56 = vector.multi_reduction <add>, %55, %cst_36 [2] : vector<2x5x5xf32> to vector<2x5xf32>
    %57 = vector.shape_cast %56 : vector<2x5xf32> to vector<2x5x1xf32>
    %58 = tpu.reciprocal %57 {approx = true} : vector<2x5x1xf32> -> vector<2x5x1xf32>
    %59 = vector.broadcast %58 : vector<2x5x1xf32> to vector<2x5x5xf32>
    %60 = arith.mulf %55, %59 : vector<2x5x5xf32>
    "tpu.trace_start"() <{level = 10 : i32, message = "bnm,bmd->bnd"}> : () -> ()
    %cst_37 = arith.constant dense<0.000000e+00> : vector<2x5x8xf32>
    %61 = tpu.matmul %60, %49, %cst_37 {dimension_numbers = #tpu.dot_dimension_numbers<[2], [1], [1], [2], [0, 0, 0, 1, 1, 2], [0], [0]>} : vector<2x5x5xf32>, vector<2x5x8xf32>, vector<2x5x8xf32> -> vector<2x5x8xf32>
    "tpu.trace_stop"() : () -> ()
    %62 = vector.extract_strided_slice %46 {offsets = [0, 0, 8], sizes = [2, 5, 8], strides = [1, 1, 1]} : vector<2x5x96xf32> to vector<2x5x8xf32>
    %63 = vector.extract_strided_slice %46 {offsets = [0, 0, 40], sizes = [2, 5, 8], strides = [1, 1, 1]} : vector<2x5x96xf32> to vector<2x5x8xf32>
    %64 = vector.extract_strided_slice %46 {offsets = [0, 0, 72], sizes = [2, 5, 8], strides = [1, 1, 1]} : vector<2x5x96xf32> to vector<2x5x8xf32>
    "tpu.trace_start"() <{level = 10 : i32, message = "bnd,bmd->bnm"}> : () -> ()
    %cst_38 = arith.constant dense<0.000000e+00> : vector<2x5x5xf32>
    %65 = tpu.matmul %62, %63, %cst_38 {dimension_numbers = #tpu.dot_dimension_numbers<[2], [2], [1], [1], [0, 0, 0, 1, 1, 1], [0], [0]>} : vector<2x5x8xf32>, vector<2x5x8xf32>, vector<2x5x5xf32> -> vector<2x5x5xf32>
    "tpu.trace_stop"() : () -> ()
    %cst_39 = arith.constant dense<0xFF800000> : vector<2x5xf32>
    %66 = vector.multi_reduction <maximumf>, %65, %cst_39 [2] : vector<2x5x5xf32> to vector<2x5xf32>
    %67 = vector.shape_cast %66 : vector<2x5xf32> to vector<2x5x1xf32>
    %68 = vector.broadcast %67 : vector<2x5x1xf32> to vector<2x5x5xf32>
    %69 = arith.subf %65, %68 : vector<2x5x5xf32>
    %70 = math.exp %69 : vector<2x5x5xf32>
    %cst_40 = arith.constant dense<0.000000e+00> : vector<2x5xf32>
    %71 = vector.multi_reduction <add>, %70, %cst_40 [2] : vector<2x5x5xf32> to vector<2x5xf32>
    %72 = vector.shape_cast %71 : vector<2x5xf32> to vector<2x5x1xf32>
    %73 = tpu.reciprocal %72 {approx = true} : vector<2x5x1xf32> -> vector<2x5x1xf32>
    %74 = vector.broadcast %73 : vector<2x5x1xf32> to vector<2x5x5xf32>
    %75 = arith.mulf %70, %74 : vector<2x5x5xf32>
    "tpu.trace_start"() <{level = 10 : i32, message = "bnm,bmd->bnd"}> : () -> ()
    %cst_41 = arith.constant dense<0.000000e+00> : vector<2x5x8xf32>
    %76 = tpu.matmul %75, %64, %cst_41 {dimension_numbers = #tpu.dot_dimension_numbers<[2], [1], [1], [2], [0, 0, 0, 1, 1, 2], [0], [0]>} : vector<2x5x5xf32>, vector<2x5x8xf32>, vector<2x5x8xf32> -> vector<2x5x8xf32>
    "tpu.trace_stop"() : () -> ()
    %77 = vector.extract_strided_slice %46 {offsets = [0, 0, 16], sizes = [2, 5, 8], strides = [1, 1, 1]} : vector<2x5x96xf32> to vector<2x5x8xf32>
    %78 = vector.extract_strided_slice %46 {offsets = [0, 0, 48], sizes = [2, 5, 8], strides = [1, 1, 1]} : vector<2x5x96xf32> to vector<2x5x8xf32>
    %79 = vector.extract_strided_slice %46 {offsets = [0, 0, 80], sizes = [2, 5, 8], strides = [1, 1, 1]} : vector<2x5x96xf32> to vector<2x5x8xf32>
    "tpu.trace_start"() <{level = 10 : i32, message = "bnd,bmd->bnm"}> : () -> ()
    %cst_42 = arith.constant dense<0.000000e+00> : vector<2x5x5xf32>
    %80 = tpu.matmul %77, %78, %cst_42 {dimension_numbers = #tpu.dot_dimension_numbers<[2], [2], [1], [1], [0, 0, 0, 1, 1, 1], [0], [0]>} : vector<2x5x8xf32>, vector<2x5x8xf32>, vector<2x5x5xf32> -> vector<2x5x5xf32>
    "tpu.trace_stop"() : () -> ()
    %cst_43 = arith.constant dense<0xFF800000> : vector<2x5xf32>
    %81 = vector.multi_reduction <maximumf>, %80, %cst_43 [2] : vector<2x5x5xf32> to vector<2x5xf32>
    %82 = vector.shape_cast %81 : vector<2x5xf32> to vector<2x5x1xf32>
    %83 = vector.broadcast %82 : vector<2x5x1xf32> to vector<2x5x5xf32>
    %84 = arith.subf %80, %83 : vector<2x5x5xf32>
    %85 = math.exp %84 : vector<2x5x5xf32>
    %cst_44 = arith.constant dense<0.000000e+00> : vector<2x5xf32>
    %86 = vector.multi_reduction <add>, %85, %cst_44 [2] : vector<2x5x5xf32> to vector<2x5xf32>
    %87 = vector.shape_cast %86 : vector<2x5xf32> to vector<2x5x1xf32>
    %88 = tpu.reciprocal %87 {approx = true} : vector<2x5x1xf32> -> vector<2x5x1xf32>
    %89 = vector.broadcast %88 : vector<2x5x1xf32> to vector<2x5x5xf32>
    %90 = arith.mulf %85, %89 : vector<2x5x5xf32>
    "tpu.trace_start"() <{level = 10 : i32, message = "bnm,bmd->bnd"}> : () -> ()
    %cst_45 = arith.constant dense<0.000000e+00> : vector<2x5x8xf32>
    %91 = tpu.matmul %90, %79, %cst_45 {dimension_numbers = #tpu.dot_dimension_numbers<[2], [1], [1], [2], [0, 0, 0, 1, 1, 2], [0], [0]>} : vector<2x5x5xf32>, vector<2x5x8xf32>, vector<2x5x8xf32> -> vector<2x5x8xf32>
    "tpu.trace_stop"() : () -> ()
    %92 = vector.extract_strided_slice %46 {offsets = [0, 0, 24], sizes = [2, 5, 8], strides = [1, 1, 1]} : vector<2x5x96xf32> to vector<2x5x8xf32>
    %93 = vector.extract_strided_slice %46 {offsets = [0, 0, 56], sizes = [2, 5, 8], strides = [1, 1, 1]} : vector<2x5x96xf32> to vector<2x5x8xf32>
    %94 = vector.extract_strided_slice %46 {offsets = [0, 0, 88], sizes = [2, 5, 8], strides = [1, 1, 1]} : vector<2x5x96xf32> to vector<2x5x8xf32>
    "tpu.trace_start"() <{level = 10 : i32, message = "bnd,bmd->bnm"}> : () -> ()
    %cst_46 = arith.constant dense<0.000000e+00> : vector<2x5x5xf32>
    %95 = tpu.matmul %92, %93, %cst_46 {dimension_numbers = #tpu.dot_dimension_numbers<[2], [2], [1], [1], [0, 0, 0, 1, 1, 1], [0], [0]>} : vector<2x5x8xf32>, vector<2x5x8xf32>, vector<2x5x5xf32> -> vector<2x5x5xf32>
    "tpu.trace_stop"() : () -> ()
    %cst_47 = arith.constant dense<0xFF800000> : vector<2x5xf32>
    %96 = vector.multi_reduction <maximumf>, %95, %cst_47 [2] : vector<2x5x5xf32> to vector<2x5xf32>
    %97 = vector.shape_cast %96 : vector<2x5xf32> to vector<2x5x1xf32>
    %98 = vector.broadcast %97 : vector<2x5x1xf32> to vector<2x5x5xf32>
    %99 = arith.subf %95, %98 : vector<2x5x5xf32>
    %100 = math.exp %99 : vector<2x5x5xf32>
    %cst_48 = arith.constant dense<0.000000e+00> : vector<2x5xf32>
    %101 = vector.multi_reduction <add>, %100, %cst_48 [2] : vector<2x5x5xf32> to vector<2x5xf32>
    %102 = vector.shape_cast %101 : vector<2x5xf32> to vector<2x5x1xf32>
    %103 = tpu.reciprocal %102 {approx = true} : vector<2x5x1xf32> -> vector<2x5x1xf32>
    %104 = vector.broadcast %103 : vector<2x5x1xf32> to vector<2x5x5xf32>
    %105 = arith.mulf %100, %104 : vector<2x5x5xf32>
    "tpu.trace_start"() <{level = 10 : i32, message = "bnm,bmd->bnd"}> : () -> ()
    %cst_49 = arith.constant dense<0.000000e+00> : vector<2x5x8xf32>
    %106 = tpu.matmul %105, %94, %cst_49 {dimension_numbers = #tpu.dot_dimension_numbers<[2], [1], [1], [2], [0, 0, 0, 1, 1, 2], [0], [0]>} : vector<2x5x5xf32>, vector<2x5x8xf32>, vector<2x5x8xf32> -> vector<2x5x8xf32>
    "tpu.trace_stop"() : () -> ()
    %107 = tpu.concatenate %61, %76, %91, %106 in 2 : vector<2x5x8xf32>, vector<2x5x8xf32>, vector<2x5x8xf32>, vector<2x5x8xf32> -> vector<2x5x32xf32>
    %108 = vector.shape_cast %12 : vector<32x32xf32> to vector<1x32x32xf32>
    %109 = vector.broadcast %108 : vector<1x32x32xf32> to vector<2x32x32xf32>
    "tpu.trace_start"() <{level = 10 : i32, message = "bnc,bcf->bnf"}> : () -> ()
    %cst_50 = arith.constant dense<0.000000e+00> : vector<2x5x32xf32>
    %110 = tpu.matmul %107, %109, %cst_50 {dimension_numbers = #tpu.dot_dimension_numbers<[2], [1], [1], [2], [0, 0, 0, 1, 1, 2], [0], [0]>} : vector<2x5x32xf32>, vector<2x32x32xf32>, vector<2x5x32xf32> -> vector<2x5x32xf32>
    "tpu.trace_stop"() : () -> ()
    %111 = arith.addf %8, %110 : vector<2x5x32xf32>
    %112 = vector.shape_cast %13 : vector<1x32xf32> to vector<1x1x32xf32>
    %113 = vector.broadcast %112 : vector<1x1x32xf32> to vector<2x5x32xf32>
    %114 = arith.addf %111, %113 : vector<2x5x32xf32>
    %cst_51 = arith.constant dense<0.000000e+00> : vector<2x5xf32>
    %115 = vector.multi_reduction <add>, %114, %cst_51 [2] : vector<2x5x32xf32> to vector<2x5xf32>
    %116 = vector.shape_cast %115 : vector<2x5xf32> to vector<2x5x1xf32>
    %cst_52 = arith.constant 3.200000e+01 : f32
    %117 = vector.broadcast %cst_52 : f32 to vector<2x5x1xf32>
    %118 = arith.divf %116, %117 : vector<2x5x1xf32>
    %119 = vector.broadcast %118 : vector<2x5x1xf32> to vector<2x5x32xf32>
    %120 = arith.subf %114, %119 : vector<2x5x32xf32>
    %121 = arith.mulf %120, %120 : vector<2x5x32xf32>
    %cst_53 = arith.constant dense<0.000000e+00> : vector<2x5xf32>
    %122 = vector.multi_reduction <add>, %121, %cst_53 [2] : vector<2x5x32xf32> to vector<2x5xf32>
    %123 = vector.shape_cast %122 : vector<2x5xf32> to vector<2x5x1xf32>
    %cst_54 = arith.constant 3.200000e+01 : f32
    %124 = vector.broadcast %cst_54 : f32 to vector<2x5x1xf32>
    %125 = arith.divf %123, %124 : vector<2x5x1xf32>
    %126 = vector.broadcast %118 : vector<2x5x1xf32> to vector<2x5x32xf32>
    %127 = arith.subf %114, %126 : vector<2x5x32xf32>
    %cst_55 = arith.constant 9.99999974E-6 : f32
    %128 = vector.broadcast %cst_55 : f32 to vector<2x5x1xf32>
    %129 = arith.addf %125, %128 : vector<2x5x1xf32>
    %130 = math.rsqrt %129 : vector<2x5x1xf32>
    %131 = vector.broadcast %130 : vector<2x5x1xf32> to vector<2x5x32xf32>
    %132 = arith.mulf %127, %131 : vector<2x5x32xf32>
    %133 = vector.shape_cast %14 : vector<1x32xf32> to vector<1x1x32xf32>
    %134 = vector.broadcast %133 : vector<1x1x32xf32> to vector<2x5x32xf32>
    %135 = arith.mulf %132, %134 : vector<2x5x32xf32>
    %136 = vector.shape_cast %15 : vector<1x32xf32> to vector<1x1x32xf32>
    %137 = vector.broadcast %136 : vector<1x1x32xf32> to vector<2x5x32xf32>
    %138 = arith.addf %135, %137 : vector<2x5x32xf32>
    %139 = vector.shape_cast %16 : vector<32x128xf32> to vector<1x32x128xf32>
    %140 = vector.broadcast %139 : vector<1x32x128xf32> to vector<2x32x128xf32>
    "tpu.trace_start"() <{level = 10 : i32, message = "bnc,bcf->bnf"}> : () -> ()
    %cst_56 = arith.constant dense<0.000000e+00> : vector<2x5x128xf32>
    %141 = tpu.matmul %138, %140, %cst_56 {dimension_numbers = #tpu.dot_dimension_numbers<[2], [1], [1], [2], [0, 0, 0, 1, 1, 2], [0], [0]>} : vector<2x5x32xf32>, vector<2x32x128xf32>, vector<2x5x128xf32> -> vector<2x5x128xf32>
    "tpu.trace_stop"() : () -> ()
    %142 = vector.shape_cast %17 : vector<1x128xf32> to vector<1x1x128xf32>
    %143 = vector.broadcast %142 : vector<1x1x128xf32> to vector<2x5x128xf32>
    %144 = arith.addf %141, %143 : vector<2x5x128xf32>
    %cst_57 = arith.constant 5.000000e-01 : f32
    %145 = vector.broadcast %cst_57 : f32 to vector<2x5x128xf32>
    %146 = arith.mulf %145, %144 : vector<2x5x128xf32>
    %cst_58 = arith.constant 0.707106769 : f32
    %147 = vector.broadcast %cst_58 : f32 to vector<2x5x128xf32>
    %148 = arith.mulf %144, %147 : vector<2x5x128xf32>
    %cst_59 = arith.constant 0.000000e+00 : f32
    %149 = vector.broadcast %cst_59 : f32 to vector<2x5x128xf32>
    %150 = arith.cmpf oge, %148, %149 : vector<2x5x128xf32>
    %cst_60 = arith.constant 1.000000e+00 : f32
    %cst_61 = arith.constant -1.000000e+00 : f32
    %151 = vector.broadcast %cst_60 : f32 to vector<2x5x128xf32>
    %152 = vector.broadcast %cst_61 : f32 to vector<2x5x128xf32>
    %153 = arith.select %150, %151, %152 : vector<2x5x128xi1>, vector<2x5x128xf32>
    %154 = math.absf %148 : vector<2x5x128xf32>
    %cst_62 = arith.constant 0.327591091 : f32
    %155 = vector.broadcast %cst_62 : f32 to vector<2x5x128xf32>
    %156 = arith.mulf %155, %154 : vector<2x5x128xf32>
    %cst_63 = arith.constant 1.000000e+00 : f32
    %157 = vector.broadcast %cst_63 : f32 to vector<2x5x128xf32>
    %158 = arith.addf %157, %156 : vector<2x5x128xf32>
    %cst_64 = arith.constant 1.000000e+00 : f32
    %159 = vector.broadcast %cst_64 : f32 to vector<2x5x128xf32>
    %160 = arith.divf %159, %158 : vector<2x5x128xf32>
    %cst_65 = arith.constant 1.06140542 : f32
    %161 = vector.broadcast %cst_65 : f32 to vector<2x5x128xf32>
    %162 = arith.mulf %160, %161 : vector<2x5x128xf32>
    %cst_66 = arith.constant -1.45315206 : f32
    %163 = vector.broadcast %cst_66 : f32 to vector<2x5x128xf32>
    %164 = arith.addf %163, %162 : vector<2x5x128xf32>
    %165 = arith.mulf %160, %164 : vector<2x5x128xf32>
    %cst_67 = arith.constant 1.42141378 : f32
    %166 = vector.broadcast %cst_67 : f32 to vector<2x5x128xf32>
    %167 = arith.addf %166, %165 : vector<2x5x128xf32>
    %168 = arith.mulf %160, %167 : vector<2x5x128xf32>
    %cst_68 = arith.constant -0.284496725 : f32
    %169 = vector.broadcast %cst_68 : f32 to vector<2x5x128xf32>
    %170 = arith.addf %169, %168 : vector<2x5x128xf32>
    %171 = arith.mulf %160, %170 : vector<2x5x128xf32>
    %cst_69 = arith.constant 0.254829586 : f32
    %172 = vector.broadcast %cst_69 : f32 to vector<2x5x128xf32>
    %173 = arith.addf %172, %171 : vector<2x5x128xf32>
    %174 = arith.mulf %160, %173 : vector<2x5x128xf32>
    %175 = arith.mulf %154, %154 : vector<2x5x128xf32>
    %cst_70 = arith.constant 0.000000e+00 : f32
    %176 = vector.broadcast %cst_70 : f32 to vector<2x5x128xf32>
    %177 = arith.subf %176, %175 : vector<2x5x128xf32>
    %178 = math.exp %177 : vector<2x5x128xf32>
    %179 = arith.mulf %174, %178 : vector<2x5x128xf32>
    %cst_71 = arith.constant 1.000000e+00 : f32
    %180 = vector.broadcast %cst_71 : f32 to vector<2x5x128xf32>
    %181 = arith.subf %180, %179 : vector<2x5x128xf32>
    %182 = arith.mulf %153, %181 : vector<2x5x128xf32>
    %cst_72 = arith.constant 1.000000e+00 : f32
    %183 = vector.broadcast %cst_72 : f32 to vector<2x5x128xf32>
    %184 = arith.addf %183, %182 : vector<2x5x128xf32>
    %185 = arith.mulf %146, %184 : vector<2x5x128xf32>
    %186 = vector.shape_cast %18 : vector<128x32xf32> to vector<1x128x32xf32>
    %187 = vector.broadcast %186 : vector<1x128x32xf32> to vector<2x128x32xf32>
    "tpu.trace_start"() <{level = 10 : i32, message = "bnc,bcf->bnf"}> : () -> ()
    %cst_73 = arith.constant dense<0.000000e+00> : vector<2x5x32xf32>
    %188 = tpu.matmul %185, %187, %cst_73 {dimension_numbers = #tpu.dot_dimension_numbers<[2], [1], [1], [2], [0, 0, 0, 1, 1, 2], [0], [0]>} : vector<2x5x128xf32>, vector<2x128x32xf32>, vector<2x5x32xf32> -> vector<2x5x32xf32>
    "tpu.trace_stop"() : () -> ()
    %189 = arith.addf %114, %188 : vector<2x5x32xf32>
    %190 = vector.shape_cast %19 : vector<1x32xf32> to vector<1x1x32xf32>
    %191 = vector.broadcast %190 : vector<1x1x32xf32> to vector<2x5x32xf32>
    %192 = arith.addf %189, %191 : vector<2x5x32xf32>
    %c0_74 = arith.constant 0 : index
    %c0_75 = arith.constant 0 : index
    %193 = vector.load %arg14[%c0_74, %c0_75] : memref<1x32xf32, #tpu.memory_space<vmem>>, vector<1x32xf32>
    %c0_76 = arith.constant 0 : index
    %c0_77 = arith.constant 0 : index
    %194 = vector.load %arg15[%c0_76, %c0_77] : memref<1x32xf32, #tpu.memory_space<vmem>>, vector<1x32xf32>
    %c0_78 = arith.constant 0 : index
    %c0_79 = arith.constant 0 : index
    %195 = vector.load %arg16[%c0_78, %c0_79] : memref<32x96xf32, #tpu.memory_space<vmem>>, vector<32x96xf32>
    %c0_80 = arith.constant 0 : index
    %c0_81 = arith.constant 0 : index
    %196 = vector.load %arg17[%c0_80, %c0_81] : memref<32x32xf32, #tpu.memory_space<vmem>>, vector<32x32xf32>
    %c0_82 = arith.constant 0 : index
    %c0_83 = arith.constant 0 : index
    %197 = vector.load %arg18[%c0_82, %c0_83] : memref<1x32xf32, #tpu.memory_space<vmem>>, vector<1x32xf32>
    %c0_84 = arith.constant 0 : index
    %c0_85 = arith.constant 0 : index
    %198 = vector.load %arg19[%c0_84, %c0_85] : memref<1x32xf32, #tpu.memory_space<vmem>>, vector<1x32xf32>
    %c0_86 = arith.constant 0 : index
    %c0_87 = arith.constant 0 : index
    %199 = vector.load %arg20[%c0_86, %c0_87] : memref<1x32xf32, #tpu.memory_space<vmem>>, vector<1x32xf32>
    %c0_88 = arith.constant 0 : index
    %c0_89 = arith.constant 0 : index
    %200 = vector.load %arg21[%c0_88, %c0_89] : memref<32x128xf32, #tpu.memory_space<vmem>>, vector<32x128xf32>
    %c0_90 = arith.constant 0 : index
    %c0_91 = arith.constant 0 : index
    %201 = vector.load %arg22[%c0_90, %c0_91] : memref<1x128xf32, #tpu.memory_space<vmem>>, vector<1x128xf32>
    %c0_92 = arith.constant 0 : index
    %c0_93 = arith.constant 0 : index
    %202 = vector.load %arg23[%c0_92, %c0_93] : memref<128x32xf32, #tpu.memory_space<vmem>>, vector<128x32xf32>
    %c0_94 = arith.constant 0 : index
    %c0_95 = arith.constant 0 : index
    %203 = vector.load %arg24[%c0_94, %c0_95] : memref<1x32xf32, #tpu.memory_space<vmem>>, vector<1x32xf32>
    %cst_96 = arith.constant dense<0.000000e+00> : vector<2x5xf32>
    %204 = vector.multi_reduction <add>, %192, %cst_96 [2] : vector<2x5x32xf32> to vector<2x5xf32>
    %205 = vector.shape_cast %204 : vector<2x5xf32> to vector<2x5x1xf32>
    %cst_97 = arith.constant 3.200000e+01 : f32
    %206 = vector.broadcast %cst_97 : f32 to vector<2x5x1xf32>
    %207 = arith.divf %205, %206 : vector<2x5x1xf32>
    %208 = vector.broadcast %207 : vector<2x5x1xf32> to vector<2x5x32xf32>
    %209 = arith.subf %192, %208 : vector<2x5x32xf32>
    %210 = arith.mulf %209, %209 : vector<2x5x32xf32>
    %cst_98 = arith.constant dense<0.000000e+00> : vector<2x5xf32>
    %211 = vector.multi_reduction <add>, %210, %cst_98 [2] : vector<2x5x32xf32> to vector<2x5xf32>
    %212 = vector.shape_cast %211 : vector<2x5xf32> to vector<2x5x1xf32>
    %cst_99 = arith.constant 3.200000e+01 : f32
    %213 = vector.broadcast %cst_99 : f32 to vector<2x5x1xf32>
    %214 = arith.divf %212, %213 : vector<2x5x1xf32>
    %215 = vector.broadcast %207 : vector<2x5x1xf32> to vector<2x5x32xf32>
    %216 = arith.subf %192, %215 : vector<2x5x32xf32>
    %cst_100 = arith.constant 9.99999974E-6 : f32
    %217 = vector.broadcast %cst_100 : f32 to vector<2x5x1xf32>
    %218 = arith.addf %214, %217 : vector<2x5x1xf32>
    %219 = math.rsqrt %218 : vector<2x5x1xf32>
    %220 = vector.broadcast %219 : vector<2x5x1xf32> to vector<2x5x32xf32>
    %221 = arith.mulf %216, %220 : vector<2x5x32xf32>
    %222 = vector.shape_cast %193 : vector<1x32xf32> to vector<1x1x32xf32>
    %223 = vector.broadcast %222 : vector<1x1x32xf32> to vector<2x5x32xf32>
    %224 = arith.mulf %221, %223 : vector<2x5x32xf32>
    %225 = vector.shape_cast %194 : vector<1x32xf32> to vector<1x1x32xf32>
    %226 = vector.broadcast %225 : vector<1x1x32xf32> to vector<2x5x32xf32>
    %227 = arith.addf %224, %226 : vector<2x5x32xf32>
    %228 = vector.shape_cast %195 : vector<32x96xf32> to vector<1x32x96xf32>
    %229 = vector.broadcast %228 : vector<1x32x96xf32> to vector<2x32x96xf32>
    "tpu.trace_start"() <{level = 10 : i32, message = "bnc,bcf->bnf"}> : () -> ()
    %cst_101 = arith.constant dense<0.000000e+00> : vector<2x5x96xf32>
    %230 = tpu.matmul %227, %229, %cst_101 {dimension_numbers = #tpu.dot_dimension_numbers<[2], [1], [1], [2], [0, 0, 0, 1, 1, 2], [0], [0]>} : vector<2x5x32xf32>, vector<2x32x96xf32>, vector<2x5x96xf32> -> vector<2x5x96xf32>
    "tpu.trace_stop"() : () -> ()
    %231 = vector.extract_strided_slice %230 {offsets = [0, 0, 0], sizes = [2, 5, 8], strides = [1, 1, 1]} : vector<2x5x96xf32> to vector<2x5x8xf32>
    %232 = vector.extract_strided_slice %230 {offsets = [0, 0, 32], sizes = [2, 5, 8], strides = [1, 1, 1]} : vector<2x5x96xf32> to vector<2x5x8xf32>
    %233 = vector.extract_strided_slice %230 {offsets = [0, 0, 64], sizes = [2, 5, 8], strides = [1, 1, 1]} : vector<2x5x96xf32> to vector<2x5x8xf32>
    "tpu.trace_start"() <{level = 10 : i32, message = "bnd,bmd->bnm"}> : () -> ()
    %cst_102 = arith.constant dense<0.000000e+00> : vector<2x5x5xf32>
    %234 = tpu.matmul %231, %232, %cst_102 {dimension_numbers = #tpu.dot_dimension_numbers<[2], [2], [1], [1], [0, 0, 0, 1, 1, 1], [0], [0]>} : vector<2x5x8xf32>, vector<2x5x8xf32>, vector<2x5x5xf32> -> vector<2x5x5xf32>
    "tpu.trace_stop"() : () -> ()
    %cst_103 = arith.constant dense<0xFF800000> : vector<2x5xf32>
    %235 = vector.multi_reduction <maximumf>, %234, %cst_103 [2] : vector<2x5x5xf32> to vector<2x5xf32>
    %236 = vector.shape_cast %235 : vector<2x5xf32> to vector<2x5x1xf32>
    %237 = vector.broadcast %236 : vector<2x5x1xf32> to vector<2x5x5xf32>
    %238 = arith.subf %234, %237 : vector<2x5x5xf32>
    %239 = math.exp %238 : vector<2x5x5xf32>
    %cst_104 = arith.constant dense<0.000000e+00> : vector<2x5xf32>
    %240 = vector.multi_reduction <add>, %239, %cst_104 [2] : vector<2x5x5xf32> to vector<2x5xf32>
    %241 = vector.shape_cast %240 : vector<2x5xf32> to vector<2x5x1xf32>
    %242 = tpu.reciprocal %241 {approx = true} : vector<2x5x1xf32> -> vector<2x5x1xf32>
    %243 = vector.broadcast %242 : vector<2x5x1xf32> to vector<2x5x5xf32>
    %244 = arith.mulf %239, %243 : vector<2x5x5xf32>
    "tpu.trace_start"() <{level = 10 : i32, message = "bnm,bmd->bnd"}> : () -> ()
    %cst_105 = arith.constant dense<0.000000e+00> : vector<2x5x8xf32>
    %245 = tpu.matmul %244, %233, %cst_105 {dimension_numbers = #tpu.dot_dimension_numbers<[2], [1], [1], [2], [0, 0, 0, 1, 1, 2], [0], [0]>} : vector<2x5x5xf32>, vector<2x5x8xf32>, vector<2x5x8xf32> -> vector<2x5x8xf32>
    "tpu.trace_stop"() : () -> ()
    %246 = vector.extract_strided_slice %230 {offsets = [0, 0, 8], sizes = [2, 5, 8], strides = [1, 1, 1]} : vector<2x5x96xf32> to vector<2x5x8xf32>
    %247 = vector.extract_strided_slice %230 {offsets = [0, 0, 40], sizes = [2, 5, 8], strides = [1, 1, 1]} : vector<2x5x96xf32> to vector<2x5x8xf32>
    %248 = vector.extract_strided_slice %230 {offsets = [0, 0, 72], sizes = [2, 5, 8], strides = [1, 1, 1]} : vector<2x5x96xf32> to vector<2x5x8xf32>
    "tpu.trace_start"() <{level = 10 : i32, message = "bnd,bmd->bnm"}> : () -> ()
    %cst_106 = arith.constant dense<0.000000e+00> : vector<2x5x5xf32>
    %249 = tpu.matmul %246, %247, %cst_106 {dimension_numbers = #tpu.dot_dimension_numbers<[2], [2], [1], [1], [0, 0, 0, 1, 1, 1], [0], [0]>} : vector<2x5x8xf32>, vector<2x5x8xf32>, vector<2x5x5xf32> -> vector<2x5x5xf32>
    "tpu.trace_stop"() : () -> ()
    %cst_107 = arith.constant dense<0xFF800000> : vector<2x5xf32>
    %250 = vector.multi_reduction <maximumf>, %249, %cst_107 [2] : vector<2x5x5xf32> to vector<2x5xf32>
    %251 = vector.shape_cast %250 : vector<2x5xf32> to vector<2x5x1xf32>
    %252 = vector.broadcast %251 : vector<2x5x1xf32> to vector<2x5x5xf32>
    %253 = arith.subf %249, %252 : vector<2x5x5xf32>
    %254 = math.exp %253 : vector<2x5x5xf32>
    %cst_108 = arith.constant dense<0.000000e+00> : vector<2x5xf32>
    %255 = vector.multi_reduction <add>, %254, %cst_108 [2] : vector<2x5x5xf32> to vector<2x5xf32>
    %256 = vector.shape_cast %255 : vector<2x5xf32> to vector<2x5x1xf32>
    %257 = tpu.reciprocal %256 {approx = true} : vector<2x5x1xf32> -> vector<2x5x1xf32>
    %258 = vector.broadcast %257 : vector<2x5x1xf32> to vector<2x5x5xf32>
    %259 = arith.mulf %254, %258 : vector<2x5x5xf32>
    "tpu.trace_start"() <{level = 10 : i32, message = "bnm,bmd->bnd"}> : () -> ()
    %cst_109 = arith.constant dense<0.000000e+00> : vector<2x5x8xf32>
    %260 = tpu.matmul %259, %248, %cst_109 {dimension_numbers = #tpu.dot_dimension_numbers<[2], [1], [1], [2], [0, 0, 0, 1, 1, 2], [0], [0]>} : vector<2x5x5xf32>, vector<2x5x8xf32>, vector<2x5x8xf32> -> vector<2x5x8xf32>
    "tpu.trace_stop"() : () -> ()
    %261 = vector.extract_strided_slice %230 {offsets = [0, 0, 16], sizes = [2, 5, 8], strides = [1, 1, 1]} : vector<2x5x96xf32> to vector<2x5x8xf32>
    %262 = vector.extract_strided_slice %230 {offsets = [0, 0, 48], sizes = [2, 5, 8], strides = [1, 1, 1]} : vector<2x5x96xf32> to vector<2x5x8xf32>
    %263 = vector.extract_strided_slice %230 {offsets = [0, 0, 80], sizes = [2, 5, 8], strides = [1, 1, 1]} : vector<2x5x96xf32> to vector<2x5x8xf32>
    "tpu.trace_start"() <{level = 10 : i32, message = "bnd,bmd->bnm"}> : () -> ()
    %cst_110 = arith.constant dense<0.000000e+00> : vector<2x5x5xf32>
    %264 = tpu.matmul %261, %262, %cst_110 {dimension_numbers = #tpu.dot_dimension_numbers<[2], [2], [1], [1], [0, 0, 0, 1, 1, 1], [0], [0]>} : vector<2x5x8xf32>, vector<2x5x8xf32>, vector<2x5x5xf32> -> vector<2x5x5xf32>
    "tpu.trace_stop"() : () -> ()
    %cst_111 = arith.constant dense<0xFF800000> : vector<2x5xf32>
    %265 = vector.multi_reduction <maximumf>, %264, %cst_111 [2] : vector<2x5x5xf32> to vector<2x5xf32>
    %266 = vector.shape_cast %265 : vector<2x5xf32> to vector<2x5x1xf32>
    %267 = vector.broadcast %266 : vector<2x5x1xf32> to vector<2x5x5xf32>
    %268 = arith.subf %264, %267 : vector<2x5x5xf32>
    %269 = math.exp %268 : vector<2x5x5xf32>
    %cst_112 = arith.constant dense<0.000000e+00> : vector<2x5xf32>
    %270 = vector.multi_reduction <add>, %269, %cst_112 [2] : vector<2x5x5xf32> to vector<2x5xf32>
    %271 = vector.shape_cast %270 : vector<2x5xf32> to vector<2x5x1xf32>
    %272 = tpu.reciprocal %271 {approx = true} : vector<2x5x1xf32> -> vector<2x5x1xf32>
    %273 = vector.broadcast %272 : vector<2x5x1xf32> to vector<2x5x5xf32>
    %274 = arith.mulf %269, %273 : vector<2x5x5xf32>
    "tpu.trace_start"() <{level = 10 : i32, message = "bnm,bmd->bnd"}> : () -> ()
    %cst_113 = arith.constant dense<0.000000e+00> : vector<2x5x8xf32>
    %275 = tpu.matmul %274, %263, %cst_113 {dimension_numbers = #tpu.dot_dimension_numbers<[2], [1], [1], [2], [0, 0, 0, 1, 1, 2], [0], [0]>} : vector<2x5x5xf32>, vector<2x5x8xf32>, vector<2x5x8xf32> -> vector<2x5x8xf32>
    "tpu.trace_stop"() : () -> ()
    %276 = vector.extract_strided_slice %230 {offsets = [0, 0, 24], sizes = [2, 5, 8], strides = [1, 1, 1]} : vector<2x5x96xf32> to vector<2x5x8xf32>
    %277 = vector.extract_strided_slice %230 {offsets = [0, 0, 56], sizes = [2, 5, 8], strides = [1, 1, 1]} : vector<2x5x96xf32> to vector<2x5x8xf32>
    %278 = vector.extract_strided_slice %230 {offsets = [0, 0, 88], sizes = [2, 5, 8], strides = [1, 1, 1]} : vector<2x5x96xf32> to vector<2x5x8xf32>
    "tpu.trace_start"() <{level = 10 : i32, message = "bnd,bmd->bnm"}> : () -> ()
    %cst_114 = arith.constant dense<0.000000e+00> : vector<2x5x5xf32>
    %279 = tpu.matmul %276, %277, %cst_114 {dimension_numbers = #tpu.dot_dimension_numbers<[2], [2], [1], [1], [0, 0, 0, 1, 1, 1], [0], [0]>} : vector<2x5x8xf32>, vector<2x5x8xf32>, vector<2x5x5xf32> -> vector<2x5x5xf32>
    "tpu.trace_stop"() : () -> ()
    %cst_115 = arith.constant dense<0xFF800000> : vector<2x5xf32>
    %280 = vector.multi_reduction <maximumf>, %279, %cst_115 [2] : vector<2x5x5xf32> to vector<2x5xf32>
    %281 = vector.shape_cast %280 : vector<2x5xf32> to vector<2x5x1xf32>
    %282 = vector.broadcast %281 : vector<2x5x1xf32> to vector<2x5x5xf32>
    %283 = arith.subf %279, %282 : vector<2x5x5xf32>
    %284 = math.exp %283 : vector<2x5x5xf32>
    %cst_116 = arith.constant dense<0.000000e+00> : vector<2x5xf32>
    %285 = vector.multi_reduction <add>, %284, %cst_116 [2] : vector<2x5x5xf32> to vector<2x5xf32>
    %286 = vector.shape_cast %285 : vector<2x5xf32> to vector<2x5x1xf32>
    %287 = tpu.reciprocal %286 {approx = true} : vector<2x5x1xf32> -> vector<2x5x1xf32>
    %288 = vector.broadcast %287 : vector<2x5x1xf32> to vector<2x5x5xf32>
    %289 = arith.mulf %284, %288 : vector<2x5x5xf32>
    "tpu.trace_start"() <{level = 10 : i32, message = "bnm,bmd->bnd"}> : () -> ()
    %cst_117 = arith.constant dense<0.000000e+00> : vector<2x5x8xf32>
    %290 = tpu.matmul %289, %278, %cst_117 {dimension_numbers = #tpu.dot_dimension_numbers<[2], [1], [1], [2], [0, 0, 0, 1, 1, 2], [0], [0]>} : vector<2x5x5xf32>, vector<2x5x8xf32>, vector<2x5x8xf32> -> vector<2x5x8xf32>
    "tpu.trace_stop"() : () -> ()
    %291 = tpu.concatenate %245, %260, %275, %290 in 2 : vector<2x5x8xf32>, vector<2x5x8xf32>, vector<2x5x8xf32>, vector<2x5x8xf32> -> vector<2x5x32xf32>
    %292 = vector.shape_cast %196 : vector<32x32xf32> to vector<1x32x32xf32>
    %293 = vector.broadcast %292 : vector<1x32x32xf32> to vector<2x32x32xf32>
    "tpu.trace_start"() <{level = 10 : i32, message = "bnc,bcf->bnf"}> : () -> ()
    %cst_118 = arith.constant dense<0.000000e+00> : vector<2x5x32xf32>
    %294 = tpu.matmul %291, %293, %cst_118 {dimension_numbers = #tpu.dot_dimension_numbers<[2], [1], [1], [2], [0, 0, 0, 1, 1, 2], [0], [0]>} : vector<2x5x32xf32>, vector<2x32x32xf32>, vector<2x5x32xf32> -> vector<2x5x32xf32>
    "tpu.trace_stop"() : () -> ()
    %295 = arith.addf %192, %294 : vector<2x5x32xf32>
    %296 = vector.shape_cast %197 : vector<1x32xf32> to vector<1x1x32xf32>
    %297 = vector.broadcast %296 : vector<1x1x32xf32> to vector<2x5x32xf32>
    %298 = arith.addf %295, %297 : vector<2x5x32xf32>
    %cst_119 = arith.constant dense<0.000000e+00> : vector<2x5xf32>
    %299 = vector.multi_reduction <add>, %298, %cst_119 [2] : vector<2x5x32xf32> to vector<2x5xf32>
    %300 = vector.shape_cast %299 : vector<2x5xf32> to vector<2x5x1xf32>
    %cst_120 = arith.constant 3.200000e+01 : f32
    %301 = vector.broadcast %cst_120 : f32 to vector<2x5x1xf32>
    %302 = arith.divf %300, %301 : vector<2x5x1xf32>
    %303 = vector.broadcast %302 : vector<2x5x1xf32> to vector<2x5x32xf32>
    %304 = arith.subf %298, %303 : vector<2x5x32xf32>
    %305 = arith.mulf %304, %304 : vector<2x5x32xf32>
    %cst_121 = arith.constant dense<0.000000e+00> : vector<2x5xf32>
    %306 = vector.multi_reduction <add>, %305, %cst_121 [2] : vector<2x5x32xf32> to vector<2x5xf32>
    %307 = vector.shape_cast %306 : vector<2x5xf32> to vector<2x5x1xf32>
    %cst_122 = arith.constant 3.200000e+01 : f32
    %308 = vector.broadcast %cst_122 : f32 to vector<2x5x1xf32>
    %309 = arith.divf %307, %308 : vector<2x5x1xf32>
    %310 = vector.broadcast %302 : vector<2x5x1xf32> to vector<2x5x32xf32>
    %311 = arith.subf %298, %310 : vector<2x5x32xf32>
    %cst_123 = arith.constant 9.99999974E-6 : f32
    %312 = vector.broadcast %cst_123 : f32 to vector<2x5x1xf32>
    %313 = arith.addf %309, %312 : vector<2x5x1xf32>
    %314 = math.rsqrt %313 : vector<2x5x1xf32>
    %315 = vector.broadcast %314 : vector<2x5x1xf32> to vector<2x5x32xf32>
    %316 = arith.mulf %311, %315 : vector<2x5x32xf32>
    %317 = vector.shape_cast %198 : vector<1x32xf32> to vector<1x1x32xf32>
    %318 = vector.broadcast %317 : vector<1x1x32xf32> to vector<2x5x32xf32>
    %319 = arith.mulf %316, %318 : vector<2x5x32xf32>
    %320 = vector.shape_cast %199 : vector<1x32xf32> to vector<1x1x32xf32>
    %321 = vector.broadcast %320 : vector<1x1x32xf32> to vector<2x5x32xf32>
    %322 = arith.addf %319, %321 : vector<2x5x32xf32>
    %323 = vector.shape_cast %200 : vector<32x128xf32> to vector<1x32x128xf32>
    %324 = vector.broadcast %323 : vector<1x32x128xf32> to vector<2x32x128xf32>
    "tpu.trace_start"() <{level = 10 : i32, message = "bnc,bcf->bnf"}> : () -> ()
    %cst_124 = arith.constant dense<0.000000e+00> : vector<2x5x128xf32>
    %325 = tpu.matmul %322, %324, %cst_124 {dimension_numbers = #tpu.dot_dimension_numbers<[2], [1], [1], [2], [0, 0, 0, 1, 1, 2], [0], [0]>} : vector<2x5x32xf32>, vector<2x32x128xf32>, vector<2x5x128xf32> -> vector<2x5x128xf32>
    "tpu.trace_stop"() : () -> ()
    %326 = vector.shape_cast %201 : vector<1x128xf32> to vector<1x1x128xf32>
    %327 = vector.broadcast %326 : vector<1x1x128xf32> to vector<2x5x128xf32>
    %328 = arith.addf %325, %327 : vector<2x5x128xf32>
    %cst_125 = arith.constant 5.000000e-01 : f32
    %329 = vector.broadcast %cst_125 : f32 to vector<2x5x128xf32>
    %330 = arith.mulf %329, %328 : vector<2x5x128xf32>
    %cst_126 = arith.constant 0.707106769 : f32
    %331 = vector.broadcast %cst_126 : f32 to vector<2x5x128xf32>
    %332 = arith.mulf %328, %331 : vector<2x5x128xf32>
    %cst_127 = arith.constant 0.000000e+00 : f32
    %333 = vector.broadcast %cst_127 : f32 to vector<2x5x128xf32>
    %334 = arith.cmpf oge, %332, %333 : vector<2x5x128xf32>
    %cst_128 = arith.constant 1.000000e+00 : f32
    %cst_129 = arith.constant -1.000000e+00 : f32
    %335 = vector.broadcast %cst_128 : f32 to vector<2x5x128xf32>
    %336 = vector.broadcast %cst_129 : f32 to vector<2x5x128xf32>
    %337 = arith.select %334, %335, %336 : vector<2x5x128xi1>, vector<2x5x128xf32>
    %338 = math.absf %332 : vector<2x5x128xf32>
    %cst_130 = arith.constant 0.327591091 : f32
    %339 = vector.broadcast %cst_130 : f32 to vector<2x5x128xf32>
    %340 = arith.mulf %339, %338 : vector<2x5x128xf32>
    %cst_131 = arith.constant 1.000000e+00 : f32
    %341 = vector.broadcast %cst_131 : f32 to vector<2x5x128xf32>
    %342 = arith.addf %341, %340 : vector<2x5x128xf32>
    %cst_132 = arith.constant 1.000000e+00 : f32
    %343 = vector.broadcast %cst_132 : f32 to vector<2x5x128xf32>
    %344 = arith.divf %343, %342 : vector<2x5x128xf32>
    %cst_133 = arith.constant 1.06140542 : f32
    %345 = vector.broadcast %cst_133 : f32 to vector<2x5x128xf32>
    %346 = arith.mulf %344, %345 : vector<2x5x128xf32>
    %cst_134 = arith.constant -1.45315206 : f32
    %347 = vector.broadcast %cst_134 : f32 to vector<2x5x128xf32>
    %348 = arith.addf %347, %346 : vector<2x5x128xf32>
    %349 = arith.mulf %344, %348 : vector<2x5x128xf32>
    %cst_135 = arith.constant 1.42141378 : f32
    %350 = vector.broadcast %cst_135 : f32 to vector<2x5x128xf32>
    %351 = arith.addf %350, %349 : vector<2x5x128xf32>
    %352 = arith.mulf %344, %351 : vector<2x5x128xf32>
    %cst_136 = arith.constant -0.284496725 : f32
    %353 = vector.broadcast %cst_136 : f32 to vector<2x5x128xf32>
    %354 = arith.addf %353, %352 : vector<2x5x128xf32>
    %355 = arith.mulf %344, %354 : vector<2x5x128xf32>
    %cst_137 = arith.constant 0.254829586 : f32
    %356 = vector.broadcast %cst_137 : f32 to vector<2x5x128xf32>
    %357 = arith.addf %356, %355 : vector<2x5x128xf32>
    %358 = arith.mulf %344, %357 : vector<2x5x128xf32>
    %359 = arith.mulf %338, %338 : vector<2x5x128xf32>
    %cst_138 = arith.constant 0.000000e+00 : f32
    %360 = vector.broadcast %cst_138 : f32 to vector<2x5x128xf32>
    %361 = arith.subf %360, %359 : vector<2x5x128xf32>
    %362 = math.exp %361 : vector<2x5x128xf32>
    %363 = arith.mulf %358, %362 : vector<2x5x128xf32>
    %cst_139 = arith.constant 1.000000e+00 : f32
    %364 = vector.broadcast %cst_139 : f32 to vector<2x5x128xf32>
    %365 = arith.subf %364, %363 : vector<2x5x128xf32>
    %366 = arith.mulf %337, %365 : vector<2x5x128xf32>
    %cst_140 = arith.constant 1.000000e+00 : f32
    %367 = vector.broadcast %cst_140 : f32 to vector<2x5x128xf32>
    %368 = arith.addf %367, %366 : vector<2x5x128xf32>
    %369 = arith.mulf %330, %368 : vector<2x5x128xf32>
    %370 = vector.shape_cast %202 : vector<128x32xf32> to vector<1x128x32xf32>
    %371 = vector.broadcast %370 : vector<1x128x32xf32> to vector<2x128x32xf32>
    "tpu.trace_start"() <{level = 10 : i32, message = "bnc,bcf->bnf"}> : () -> ()
    %cst_141 = arith.constant dense<0.000000e+00> : vector<2x5x32xf32>
    %372 = tpu.matmul %369, %371, %cst_141 {dimension_numbers = #tpu.dot_dimension_numbers<[2], [1], [1], [2], [0, 0, 0, 1, 1, 2], [0], [0]>} : vector<2x5x128xf32>, vector<2x128x32xf32>, vector<2x5x32xf32> -> vector<2x5x32xf32>
    "tpu.trace_stop"() : () -> ()
    %373 = arith.addf %298, %372 : vector<2x5x32xf32>
    %374 = vector.shape_cast %203 : vector<1x32xf32> to vector<1x1x32xf32>
    %375 = vector.broadcast %374 : vector<1x1x32xf32> to vector<2x5x32xf32>
    %376 = arith.addf %373, %375 : vector<2x5x32xf32>
    %c0_142 = arith.constant 0 : index
    %c0_143 = arith.constant 0 : index
    %377 = vector.load %arg25[%c0_142, %c0_143] : memref<1x32xf32, #tpu.memory_space<vmem>>, vector<1x32xf32>
    %c0_144 = arith.constant 0 : index
    %c0_145 = arith.constant 0 : index
    %378 = vector.load %arg26[%c0_144, %c0_145] : memref<1x32xf32, #tpu.memory_space<vmem>>, vector<1x32xf32>
    %c0_146 = arith.constant 0 : index
    %c0_147 = arith.constant 0 : index
    %379 = vector.load %arg27[%c0_146, %c0_147] : memref<32x96xf32, #tpu.memory_space<vmem>>, vector<32x96xf32>
    %c0_148 = arith.constant 0 : index
    %c0_149 = arith.constant 0 : index
    %380 = vector.load %arg28[%c0_148, %c0_149] : memref<32x32xf32, #tpu.memory_space<vmem>>, vector<32x32xf32>
    %c0_150 = arith.constant 0 : index
    %c0_151 = arith.constant 0 : index
    %381 = vector.load %arg29[%c0_150, %c0_151] : memref<1x32xf32, #tpu.memory_space<vmem>>, vector<1x32xf32>
    %c0_152 = arith.constant 0 : index
    %c0_153 = arith.constant 0 : index
    %382 = vector.load %arg30[%c0_152, %c0_153] : memref<1x32xf32, #tpu.memory_space<vmem>>, vector<1x32xf32>
    %c0_154 = arith.constant 0 : index
    %c0_155 = arith.constant 0 : index
    %383 = vector.load %arg31[%c0_154, %c0_155] : memref<1x32xf32, #tpu.memory_space<vmem>>, vector<1x32xf32>
    %c0_156 = arith.constant 0 : index
    %c0_157 = arith.constant 0 : index
    %384 = vector.load %arg32[%c0_156, %c0_157] : memref<32x128xf32, #tpu.memory_space<vmem>>, vector<32x128xf32>
    %c0_158 = arith.constant 0 : index
    %c0_159 = arith.constant 0 : index
    %385 = vector.load %arg33[%c0_158, %c0_159] : memref<1x128xf32, #tpu.memory_space<vmem>>, vector<1x128xf32>
    %c0_160 = arith.constant 0 : index
    %c0_161 = arith.constant 0 : index
    %386 = vector.load %arg34[%c0_160, %c0_161] : memref<128x32xf32, #tpu.memory_space<vmem>>, vector<128x32xf32>
    %c0_162 = arith.constant 0 : index
    %c0_163 = arith.constant 0 : index
    %387 = vector.load %arg35[%c0_162, %c0_163] : memref<1x32xf32, #tpu.memory_space<vmem>>, vector<1x32xf32>
    %cst_164 = arith.constant dense<0.000000e+00> : vector<2x5xf32>
    %388 = vector.multi_reduction <add>, %376, %cst_164 [2] : vector<2x5x32xf32> to vector<2x5xf32>
    %389 = vector.shape_cast %388 : vector<2x5xf32> to vector<2x5x1xf32>
    %cst_165 = arith.constant 3.200000e+01 : f32
    %390 = vector.broadcast %cst_165 : f32 to vector<2x5x1xf32>
    %391 = arith.divf %389, %390 : vector<2x5x1xf32>
    %392 = vector.broadcast %391 : vector<2x5x1xf32> to vector<2x5x32xf32>
    %393 = arith.subf %376, %392 : vector<2x5x32xf32>
    %394 = arith.mulf %393, %393 : vector<2x5x32xf32>
    %cst_166 = arith.constant dense<0.000000e+00> : vector<2x5xf32>
    %395 = vector.multi_reduction <add>, %394, %cst_166 [2] : vector<2x5x32xf32> to vector<2x5xf32>
    %396 = vector.shape_cast %395 : vector<2x5xf32> to vector<2x5x1xf32>
    %cst_167 = arith.constant 3.200000e+01 : f32
    %397 = vector.broadcast %cst_167 : f32 to vector<2x5x1xf32>
    %398 = arith.divf %396, %397 : vector<2x5x1xf32>
    %399 = vector.broadcast %391 : vector<2x5x1xf32> to vector<2x5x32xf32>
    %400 = arith.subf %376, %399 : vector<2x5x32xf32>
    %cst_168 = arith.constant 9.99999974E-6 : f32
    %401 = vector.broadcast %cst_168 : f32 to vector<2x5x1xf32>
    %402 = arith.addf %398, %401 : vector<2x5x1xf32>
    %403 = math.rsqrt %402 : vector<2x5x1xf32>
    %404 = vector.broadcast %403 : vector<2x5x1xf32> to vector<2x5x32xf32>
    %405 = arith.mulf %400, %404 : vector<2x5x32xf32>
    %406 = vector.shape_cast %377 : vector<1x32xf32> to vector<1x1x32xf32>
    %407 = vector.broadcast %406 : vector<1x1x32xf32> to vector<2x5x32xf32>
    %408 = arith.mulf %405, %407 : vector<2x5x32xf32>
    %409 = vector.shape_cast %378 : vector<1x32xf32> to vector<1x1x32xf32>
    %410 = vector.broadcast %409 : vector<1x1x32xf32> to vector<2x5x32xf32>
    %411 = arith.addf %408, %410 : vector<2x5x32xf32>
    %412 = vector.shape_cast %379 : vector<32x96xf32> to vector<1x32x96xf32>
    %413 = vector.broadcast %412 : vector<1x32x96xf32> to vector<2x32x96xf32>
    "tpu.trace_start"() <{level = 10 : i32, message = "bnc,bcf->bnf"}> : () -> ()
    %cst_169 = arith.constant dense<0.000000e+00> : vector<2x5x96xf32>
    %414 = tpu.matmul %411, %413, %cst_169 {dimension_numbers = #tpu.dot_dimension_numbers<[2], [1], [1], [2], [0, 0, 0, 1, 1, 2], [0], [0]>} : vector<2x5x32xf32>, vector<2x32x96xf32>, vector<2x5x96xf32> -> vector<2x5x96xf32>
    "tpu.trace_stop"() : () -> ()
    %415 = vector.extract_strided_slice %414 {offsets = [0, 0, 0], sizes = [2, 5, 8], strides = [1, 1, 1]} : vector<2x5x96xf32> to vector<2x5x8xf32>
    %416 = vector.extract_strided_slice %414 {offsets = [0, 0, 32], sizes = [2, 5, 8], strides = [1, 1, 1]} : vector<2x5x96xf32> to vector<2x5x8xf32>
    %417 = vector.extract_strided_slice %414 {offsets = [0, 0, 64], sizes = [2, 5, 8], strides = [1, 1, 1]} : vector<2x5x96xf32> to vector<2x5x8xf32>
    "tpu.trace_start"() <{level = 10 : i32, message = "bnd,bmd->bnm"}> : () -> ()
    %cst_170 = arith.constant dense<0.000000e+00> : vector<2x5x5xf32>
    %418 = tpu.matmul %415, %416, %cst_170 {dimension_numbers = #tpu.dot_dimension_numbers<[2], [2], [1], [1], [0, 0, 0, 1, 1, 1], [0], [0]>} : vector<2x5x8xf32>, vector<2x5x8xf32>, vector<2x5x5xf32> -> vector<2x5x5xf32>
    "tpu.trace_stop"() : () -> ()
    %cst_171 = arith.constant dense<0xFF800000> : vector<2x5xf32>
    %419 = vector.multi_reduction <maximumf>, %418, %cst_171 [2] : vector<2x5x5xf32> to vector<2x5xf32>
    %420 = vector.shape_cast %419 : vector<2x5xf32> to vector<2x5x1xf32>
    %421 = vector.broadcast %420 : vector<2x5x1xf32> to vector<2x5x5xf32>
    %422 = arith.subf %418, %421 : vector<2x5x5xf32>
    %423 = math.exp %422 : vector<2x5x5xf32>
    %cst_172 = arith.constant dense<0.000000e+00> : vector<2x5xf32>
    %424 = vector.multi_reduction <add>, %423, %cst_172 [2] : vector<2x5x5xf32> to vector<2x5xf32>
    %425 = vector.shape_cast %424 : vector<2x5xf32> to vector<2x5x1xf32>
    %426 = tpu.reciprocal %425 {approx = true} : vector<2x5x1xf32> -> vector<2x5x1xf32>
    %427 = vector.broadcast %426 : vector<2x5x1xf32> to vector<2x5x5xf32>
    %428 = arith.mulf %423, %427 : vector<2x5x5xf32>
    "tpu.trace_start"() <{level = 10 : i32, message = "bnm,bmd->bnd"}> : () -> ()
    %cst_173 = arith.constant dense<0.000000e+00> : vector<2x5x8xf32>
    %429 = tpu.matmul %428, %417, %cst_173 {dimension_numbers = #tpu.dot_dimension_numbers<[2], [1], [1], [2], [0, 0, 0, 1, 1, 2], [0], [0]>} : vector<2x5x5xf32>, vector<2x5x8xf32>, vector<2x5x8xf32> -> vector<2x5x8xf32>
    "tpu.trace_stop"() : () -> ()
    %430 = vector.extract_strided_slice %414 {offsets = [0, 0, 8], sizes = [2, 5, 8], strides = [1, 1, 1]} : vector<2x5x96xf32> to vector<2x5x8xf32>
    %431 = vector.extract_strided_slice %414 {offsets = [0, 0, 40], sizes = [2, 5, 8], strides = [1, 1, 1]} : vector<2x5x96xf32> to vector<2x5x8xf32>
    %432 = vector.extract_strided_slice %414 {offsets = [0, 0, 72], sizes = [2, 5, 8], strides = [1, 1, 1]} : vector<2x5x96xf32> to vector<2x5x8xf32>
    "tpu.trace_start"() <{level = 10 : i32, message = "bnd,bmd->bnm"}> : () -> ()
    %cst_174 = arith.constant dense<0.000000e+00> : vector<2x5x5xf32>
    %433 = tpu.matmul %430, %431, %cst_174 {dimension_numbers = #tpu.dot_dimension_numbers<[2], [2], [1], [1], [0, 0, 0, 1, 1, 1], [0], [0]>} : vector<2x5x8xf32>, vector<2x5x8xf32>, vector<2x5x5xf32> -> vector<2x5x5xf32>
    "tpu.trace_stop"() : () -> ()
    %cst_175 = arith.constant dense<0xFF800000> : vector<2x5xf32>
    %434 = vector.multi_reduction <maximumf>, %433, %cst_175 [2] : vector<2x5x5xf32> to vector<2x5xf32>
    %435 = vector.shape_cast %434 : vector<2x5xf32> to vector<2x5x1xf32>
    %436 = vector.broadcast %435 : vector<2x5x1xf32> to vector<2x5x5xf32>
    %437 = arith.subf %433, %436 : vector<2x5x5xf32>
    %438 = math.exp %437 : vector<2x5x5xf32>
    %cst_176 = arith.constant dense<0.000000e+00> : vector<2x5xf32>
    %439 = vector.multi_reduction <add>, %438, %cst_176 [2] : vector<2x5x5xf32> to vector<2x5xf32>
    %440 = vector.shape_cast %439 : vector<2x5xf32> to vector<2x5x1xf32>
    %441 = tpu.reciprocal %440 {approx = true} : vector<2x5x1xf32> -> vector<2x5x1xf32>
    %442 = vector.broadcast %441 : vector<2x5x1xf32> to vector<2x5x5xf32>
    %443 = arith.mulf %438, %442 : vector<2x5x5xf32>
    "tpu.trace_start"() <{level = 10 : i32, message = "bnm,bmd->bnd"}> : () -> ()
    %cst_177 = arith.constant dense<0.000000e+00> : vector<2x5x8xf32>
    %444 = tpu.matmul %443, %432, %cst_177 {dimension_numbers = #tpu.dot_dimension_numbers<[2], [1], [1], [2], [0, 0, 0, 1, 1, 2], [0], [0]>} : vector<2x5x5xf32>, vector<2x5x8xf32>, vector<2x5x8xf32> -> vector<2x5x8xf32>
    "tpu.trace_stop"() : () -> ()
    %445 = vector.extract_strided_slice %414 {offsets = [0, 0, 16], sizes = [2, 5, 8], strides = [1, 1, 1]} : vector<2x5x96xf32> to vector<2x5x8xf32>
    %446 = vector.extract_strided_slice %414 {offsets = [0, 0, 48], sizes = [2, 5, 8], strides = [1, 1, 1]} : vector<2x5x96xf32> to vector<2x5x8xf32>
    %447 = vector.extract_strided_slice %414 {offsets = [0, 0, 80], sizes = [2, 5, 8], strides = [1, 1, 1]} : vector<2x5x96xf32> to vector<2x5x8xf32>
    "tpu.trace_start"() <{level = 10 : i32, message = "bnd,bmd->bnm"}> : () -> ()
    %cst_178 = arith.constant dense<0.000000e+00> : vector<2x5x5xf32>
    %448 = tpu.matmul %445, %446, %cst_178 {dimension_numbers = #tpu.dot_dimension_numbers<[2], [2], [1], [1], [0, 0, 0, 1, 1, 1], [0], [0]>} : vector<2x5x8xf32>, vector<2x5x8xf32>, vector<2x5x5xf32> -> vector<2x5x5xf32>
    "tpu.trace_stop"() : () -> ()
    %cst_179 = arith.constant dense<0xFF800000> : vector<2x5xf32>
    %449 = vector.multi_reduction <maximumf>, %448, %cst_179 [2] : vector<2x5x5xf32> to vector<2x5xf32>
    %450 = vector.shape_cast %449 : vector<2x5xf32> to vector<2x5x1xf32>
    %451 = vector.broadcast %450 : vector<2x5x1xf32> to vector<2x5x5xf32>
    %452 = arith.subf %448, %451 : vector<2x5x5xf32>
    %453 = math.exp %452 : vector<2x5x5xf32>
    %cst_180 = arith.constant dense<0.000000e+00> : vector<2x5xf32>
    %454 = vector.multi_reduction <add>, %453, %cst_180 [2] : vector<2x5x5xf32> to vector<2x5xf32>
    %455 = vector.shape_cast %454 : vector<2x5xf32> to vector<2x5x1xf32>
    %456 = tpu.reciprocal %455 {approx = true} : vector<2x5x1xf32> -> vector<2x5x1xf32>
    %457 = vector.broadcast %456 : vector<2x5x1xf32> to vector<2x5x5xf32>
    %458 = arith.mulf %453, %457 : vector<2x5x5xf32>
    "tpu.trace_start"() <{level = 10 : i32, message = "bnm,bmd->bnd"}> : () -> ()
    %cst_181 = arith.constant dense<0.000000e+00> : vector<2x5x8xf32>
    %459 = tpu.matmul %458, %447, %cst_181 {dimension_numbers = #tpu.dot_dimension_numbers<[2], [1], [1], [2], [0, 0, 0, 1, 1, 2], [0], [0]>} : vector<2x5x5xf32>, vector<2x5x8xf32>, vector<2x5x8xf32> -> vector<2x5x8xf32>
    "tpu.trace_stop"() : () -> ()
    %460 = vector.extract_strided_slice %414 {offsets = [0, 0, 24], sizes = [2, 5, 8], strides = [1, 1, 1]} : vector<2x5x96xf32> to vector<2x5x8xf32>
    %461 = vector.extract_strided_slice %414 {offsets = [0, 0, 56], sizes = [2, 5, 8], strides = [1, 1, 1]} : vector<2x5x96xf32> to vector<2x5x8xf32>
    %462 = vector.extract_strided_slice %414 {offsets = [0, 0, 88], sizes = [2, 5, 8], strides = [1, 1, 1]} : vector<2x5x96xf32> to vector<2x5x8xf32>
    "tpu.trace_start"() <{level = 10 : i32, message = "bnd,bmd->bnm"}> : () -> ()
    %cst_182 = arith.constant dense<0.000000e+00> : vector<2x5x5xf32>
    %463 = tpu.matmul %460, %461, %cst_182 {dimension_numbers = #tpu.dot_dimension_numbers<[2], [2], [1], [1], [0, 0, 0, 1, 1, 1], [0], [0]>} : vector<2x5x8xf32>, vector<2x5x8xf32>, vector<2x5x5xf32> -> vector<2x5x5xf32>
    "tpu.trace_stop"() : () -> ()
    %cst_183 = arith.constant dense<0xFF800000> : vector<2x5xf32>
    %464 = vector.multi_reduction <maximumf>, %463, %cst_183 [2] : vector<2x5x5xf32> to vector<2x5xf32>
    %465 = vector.shape_cast %464 : vector<2x5xf32> to vector<2x5x1xf32>
    %466 = vector.broadcast %465 : vector<2x5x1xf32> to vector<2x5x5xf32>
    %467 = arith.subf %463, %466 : vector<2x5x5xf32>
    %468 = math.exp %467 : vector<2x5x5xf32>
    %cst_184 = arith.constant dense<0.000000e+00> : vector<2x5xf32>
    %469 = vector.multi_reduction <add>, %468, %cst_184 [2] : vector<2x5x5xf32> to vector<2x5xf32>
    %470 = vector.shape_cast %469 : vector<2x5xf32> to vector<2x5x1xf32>
    %471 = tpu.reciprocal %470 {approx = true} : vector<2x5x1xf32> -> vector<2x5x1xf32>
    %472 = vector.broadcast %471 : vector<2x5x1xf32> to vector<2x5x5xf32>
    %473 = arith.mulf %468, %472 : vector<2x5x5xf32>
    "tpu.trace_start"() <{level = 10 : i32, message = "bnm,bmd->bnd"}> : () -> ()
    %cst_185 = arith.constant dense<0.000000e+00> : vector<2x5x8xf32>
    %474 = tpu.matmul %473, %462, %cst_185 {dimension_numbers = #tpu.dot_dimension_numbers<[2], [1], [1], [2], [0, 0, 0, 1, 1, 2], [0], [0]>} : vector<2x5x5xf32>, vector<2x5x8xf32>, vector<2x5x8xf32> -> vector<2x5x8xf32>
    "tpu.trace_stop"() : () -> ()
    %475 = tpu.concatenate %429, %444, %459, %474 in 2 : vector<2x5x8xf32>, vector<2x5x8xf32>, vector<2x5x8xf32>, vector<2x5x8xf32> -> vector<2x5x32xf32>
    %476 = vector.shape_cast %380 : vector<32x32xf32> to vector<1x32x32xf32>
    %477 = vector.broadcast %476 : vector<1x32x32xf32> to vector<2x32x32xf32>
    "tpu.trace_start"() <{level = 10 : i32, message = "bnc,bcf->bnf"}> : () -> ()
    %cst_186 = arith.constant dense<0.000000e+00> : vector<2x5x32xf32>
    %478 = tpu.matmul %475, %477, %cst_186 {dimension_numbers = #tpu.dot_dimension_numbers<[2], [1], [1], [2], [0, 0, 0, 1, 1, 2], [0], [0]>} : vector<2x5x32xf32>, vector<2x32x32xf32>, vector<2x5x32xf32> -> vector<2x5x32xf32>
    "tpu.trace_stop"() : () -> ()
    %479 = arith.addf %376, %478 : vector<2x5x32xf32>
    %480 = vector.shape_cast %381 : vector<1x32xf32> to vector<1x1x32xf32>
    %481 = vector.broadcast %480 : vector<1x1x32xf32> to vector<2x5x32xf32>
    %482 = arith.addf %479, %481 : vector<2x5x32xf32>
    %cst_187 = arith.constant dense<0.000000e+00> : vector<2x5xf32>
    %483 = vector.multi_reduction <add>, %482, %cst_187 [2] : vector<2x5x32xf32> to vector<2x5xf32>
    %484 = vector.shape_cast %483 : vector<2x5xf32> to vector<2x5x1xf32>
    %cst_188 = arith.constant 3.200000e+01 : f32
    %485 = vector.broadcast %cst_188 : f32 to vector<2x5x1xf32>
    %486 = arith.divf %484, %485 : vector<2x5x1xf32>
    %487 = vector.broadcast %486 : vector<2x5x1xf32> to vector<2x5x32xf32>
    %488 = arith.subf %482, %487 : vector<2x5x32xf32>
    %489 = arith.mulf %488, %488 : vector<2x5x32xf32>
    %cst_189 = arith.constant dense<0.000000e+00> : vector<2x5xf32>
    %490 = vector.multi_reduction <add>, %489, %cst_189 [2] : vector<2x5x32xf32> to vector<2x5xf32>
    %491 = vector.shape_cast %490 : vector<2x5xf32> to vector<2x5x1xf32>
    %cst_190 = arith.constant 3.200000e+01 : f32
    %492 = vector.broadcast %cst_190 : f32 to vector<2x5x1xf32>
    %493 = arith.divf %491, %492 : vector<2x5x1xf32>
    %494 = vector.broadcast %486 : vector<2x5x1xf32> to vector<2x5x32xf32>
    %495 = arith.subf %482, %494 : vector<2x5x32xf32>
    %cst_191 = arith.constant 9.99999974E-6 : f32
    %496 = vector.broadcast %cst_191 : f32 to vector<2x5x1xf32>
    %497 = arith.addf %493, %496 : vector<2x5x1xf32>
    %498 = math.rsqrt %497 : vector<2x5x1xf32>
    %499 = vector.broadcast %498 : vector<2x5x1xf32> to vector<2x5x32xf32>
    %500 = arith.mulf %495, %499 : vector<2x5x32xf32>
    %501 = vector.shape_cast %382 : vector<1x32xf32> to vector<1x1x32xf32>
    %502 = vector.broadcast %501 : vector<1x1x32xf32> to vector<2x5x32xf32>
    %503 = arith.mulf %500, %502 : vector<2x5x32xf32>
    %504 = vector.shape_cast %383 : vector<1x32xf32> to vector<1x1x32xf32>
    %505 = vector.broadcast %504 : vector<1x1x32xf32> to vector<2x5x32xf32>
    %506 = arith.addf %503, %505 : vector<2x5x32xf32>
    %507 = vector.shape_cast %384 : vector<32x128xf32> to vector<1x32x128xf32>
    %508 = vector.broadcast %507 : vector<1x32x128xf32> to vector<2x32x128xf32>
    "tpu.trace_start"() <{level = 10 : i32, message = "bnc,bcf->bnf"}> : () -> ()
    %cst_192 = arith.constant dense<0.000000e+00> : vector<2x5x128xf32>
    %509 = tpu.matmul %506, %508, %cst_192 {dimension_numbers = #tpu.dot_dimension_numbers<[2], [1], [1], [2], [0, 0, 0, 1, 1, 2], [0], [0]>} : vector<2x5x32xf32>, vector<2x32x128xf32>, vector<2x5x128xf32> -> vector<2x5x128xf32>
    "tpu.trace_stop"() : () -> ()
    %510 = vector.shape_cast %385 : vector<1x128xf32> to vector<1x1x128xf32>
    %511 = vector.broadcast %510 : vector<1x1x128xf32> to vector<2x5x128xf32>
    %512 = arith.addf %509, %511 : vector<2x5x128xf32>
    %cst_193 = arith.constant 5.000000e-01 : f32
    %513 = vector.broadcast %cst_193 : f32 to vector<2x5x128xf32>
    %514 = arith.mulf %513, %512 : vector<2x5x128xf32>
    %cst_194 = arith.constant 0.707106769 : f32
    %515 = vector.broadcast %cst_194 : f32 to vector<2x5x128xf32>
    %516 = arith.mulf %512, %515 : vector<2x5x128xf32>
    %cst_195 = arith.constant 0.000000e+00 : f32
    %517 = vector.broadcast %cst_195 : f32 to vector<2x5x128xf32>
    %518 = arith.cmpf oge, %516, %517 : vector<2x5x128xf32>
    %cst_196 = arith.constant 1.000000e+00 : f32
    %cst_197 = arith.constant -1.000000e+00 : f32
    %519 = vector.broadcast %cst_196 : f32 to vector<2x5x128xf32>
    %520 = vector.broadcast %cst_197 : f32 to vector<2x5x128xf32>
    %521 = arith.select %518, %519, %520 : vector<2x5x128xi1>, vector<2x5x128xf32>
    %522 = math.absf %516 : vector<2x5x128xf32>
    %cst_198 = arith.constant 0.327591091 : f32
    %523 = vector.broadcast %cst_198 : f32 to vector<2x5x128xf32>
    %524 = arith.mulf %523, %522 : vector<2x5x128xf32>
    %cst_199 = arith.constant 1.000000e+00 : f32
    %525 = vector.broadcast %cst_199 : f32 to vector<2x5x128xf32>
    %526 = arith.addf %525, %524 : vector<2x5x128xf32>
    %cst_200 = arith.constant 1.000000e+00 : f32
    %527 = vector.broadcast %cst_200 : f32 to vector<2x5x128xf32>
    %528 = arith.divf %527, %526 : vector<2x5x128xf32>
    %cst_201 = arith.constant 1.06140542 : f32
    %529 = vector.broadcast %cst_201 : f32 to vector<2x5x128xf32>
    %530 = arith.mulf %528, %529 : vector<2x5x128xf32>
    %cst_202 = arith.constant -1.45315206 : f32
    %531 = vector.broadcast %cst_202 : f32 to vector<2x5x128xf32>
    %532 = arith.addf %531, %530 : vector<2x5x128xf32>
    %533 = arith.mulf %528, %532 : vector<2x5x128xf32>
    %cst_203 = arith.constant 1.42141378 : f32
    %534 = vector.broadcast %cst_203 : f32 to vector<2x5x128xf32>
    %535 = arith.addf %534, %533 : vector<2x5x128xf32>
    %536 = arith.mulf %528, %535 : vector<2x5x128xf32>
    %cst_204 = arith.constant -0.284496725 : f32
    %537 = vector.broadcast %cst_204 : f32 to vector<2x5x128xf32>
    %538 = arith.addf %537, %536 : vector<2x5x128xf32>
    %539 = arith.mulf %528, %538 : vector<2x5x128xf32>
    %cst_205 = arith.constant 0.254829586 : f32
    %540 = vector.broadcast %cst_205 : f32 to vector<2x5x128xf32>
    %541 = arith.addf %540, %539 : vector<2x5x128xf32>
    %542 = arith.mulf %528, %541 : vector<2x5x128xf32>
    %543 = arith.mulf %522, %522 : vector<2x5x128xf32>
    %cst_206 = arith.constant 0.000000e+00 : f32
    %544 = vector.broadcast %cst_206 : f32 to vector<2x5x128xf32>
    %545 = arith.subf %544, %543 : vector<2x5x128xf32>
    %546 = math.exp %545 : vector<2x5x128xf32>
    %547 = arith.mulf %542, %546 : vector<2x5x128xf32>
    %cst_207 = arith.constant 1.000000e+00 : f32
    %548 = vector.broadcast %cst_207 : f32 to vector<2x5x128xf32>
    %549 = arith.subf %548, %547 : vector<2x5x128xf32>
    %550 = arith.mulf %521, %549 : vector<2x5x128xf32>
    %cst_208 = arith.constant 1.000000e+00 : f32
    %551 = vector.broadcast %cst_208 : f32 to vector<2x5x128xf32>
    %552 = arith.addf %551, %550 : vector<2x5x128xf32>
    %553 = arith.mulf %514, %552 : vector<2x5x128xf32>
    %554 = vector.shape_cast %386 : vector<128x32xf32> to vector<1x128x32xf32>
    %555 = vector.broadcast %554 : vector<1x128x32xf32> to vector<2x128x32xf32>
    "tpu.trace_start"() <{level = 10 : i32, message = "bnc,bcf->bnf"}> : () -> ()
    %cst_209 = arith.constant dense<0.000000e+00> : vector<2x5x32xf32>
    %556 = tpu.matmul %553, %555, %cst_209 {dimension_numbers = #tpu.dot_dimension_numbers<[2], [1], [1], [2], [0, 0, 0, 1, 1, 2], [0], [0]>} : vector<2x5x128xf32>, vector<2x128x32xf32>, vector<2x5x32xf32> -> vector<2x5x32xf32>
    "tpu.trace_stop"() : () -> ()
    %557 = arith.addf %482, %556 : vector<2x5x32xf32>
    %558 = vector.shape_cast %387 : vector<1x32xf32> to vector<1x1x32xf32>
    %559 = vector.broadcast %558 : vector<1x1x32xf32> to vector<2x5x32xf32>
    %560 = arith.addf %557, %559 : vector<2x5x32xf32>
    %561 = vector.extract_strided_slice %560 {offsets = [0, 0, 0], sizes = [2, 1, 32], strides = [1, 1, 1]} : vector<2x5x32xf32> to vector<2x1x32xf32>
    %562 = vector.shape_cast %561 : vector<2x1x32xf32> to vector<2x32xf32>
    %c0_210 = arith.constant 0 : index
    %c0_211 = arith.constant 0 : index
    %563 = vector.load %arg36[%c0_210, %c0_211] : memref<1x32xf32, #tpu.memory_space<vmem>>, vector<1x32xf32>
    %c0_212 = arith.constant 0 : index
    %c0_213 = arith.constant 0 : index
    %564 = vector.load %arg37[%c0_212, %c0_213] : memref<1x32xf32, #tpu.memory_space<vmem>>, vector<1x32xf32>
    %cst_214 = arith.constant dense<0.000000e+00> : vector<2xf32>
    %565 = vector.multi_reduction <add>, %562, %cst_214 [1] : vector<2x32xf32> to vector<2xf32>
    %566 = vector.shape_cast %565 : vector<2xf32> to vector<2x1xf32>
    %cst_215 = arith.constant 3.200000e+01 : f32
    %567 = vector.broadcast %cst_215 : f32 to vector<2x1xf32>
    %568 = arith.divf %566, %567 : vector<2x1xf32>
    %569 = vector.broadcast %568 : vector<2x1xf32> to vector<2x32xf32>
    %570 = arith.subf %562, %569 : vector<2x32xf32>
    %571 = arith.mulf %570, %570 : vector<2x32xf32>
    %cst_216 = arith.constant dense<0.000000e+00> : vector<2xf32>
    %572 = vector.multi_reduction <add>, %571, %cst_216 [1] : vector<2x32xf32> to vector<2xf32>
    %573 = vector.shape_cast %572 : vector<2xf32> to vector<2x1xf32>
    %cst_217 = arith.constant 3.200000e+01 : f32
    %574 = vector.broadcast %cst_217 : f32 to vector<2x1xf32>
    %575 = arith.divf %573, %574 : vector<2x1xf32>
    %576 = vector.broadcast %568 : vector<2x1xf32> to vector<2x32xf32>
    %577 = arith.subf %562, %576 : vector<2x32xf32>
    %cst_218 = arith.constant 9.99999974E-6 : f32
    %578 = vector.broadcast %cst_218 : f32 to vector<2x1xf32>
    %579 = arith.addf %575, %578 : vector<2x1xf32>
    %580 = math.rsqrt %579 : vector<2x1xf32>
    %581 = vector.broadcast %580 : vector<2x1xf32> to vector<2x32xf32>
    %582 = arith.mulf %577, %581 : vector<2x32xf32>
    %583 = vector.broadcast %563 : vector<1x32xf32> to vector<2x32xf32>
    %584 = arith.mulf %582, %583 : vector<2x32xf32>
    %585 = vector.broadcast %564 : vector<1x32xf32> to vector<2x32xf32>
    %586 = arith.addf %584, %585 : vector<2x32xf32>
    %c0_219 = arith.constant 0 : index
    %c0_220 = arith.constant 0 : index
    %587 = vector.load %arg38[%c0_219, %c0_220] : memref<2x32xf32, #tpu.memory_space<vmem>>, vector<2x32xf32>
    tpu.vector_store %arg38[%c0_219, %c0_220], %586 {strides = array<i32>} : memref<2x32xf32, #tpu.memory_space<vmem>>, vector<2x32xf32>,
    return
  }
}

</mosaic_0001>

<bundles_post_ra>
// kernel: vit_forward.1
= control target key start
LH: loop header
LB: loop body
LE: loop exit
PB: predicated region body
PF: predicated region fallthrough
CT: control target
= control target key end

     0   :  { %s8481_s6 = smov 1   ;;  %s8482_s10 = smov 2   ;;  %s9658_s0 = inlined_call_operand.smem [shape: u32[39], index: -1, kind: input, shape index: {}] }
   0x1   :  { %s8546_s5 = sld [smem:[%s9658_s0]]   ;;  %s8483_s14 = smov 3  }
   0x2   :  { %s8551_s9 = sld [smem:[%s9658_s0 + %s8481_s6]]   ;;  %s8484_s18 = smov 4  }
   0x3   :  { %s8556_s13 = sld [smem:[%s9658_s0 + %s8482_s10]]   ;;  %s8485_s22 = smov 5  }
   0x4   :  { %s8561_s17 = sld [smem:[%s9658_s0 + %s8483_s14]]   ;;  %s8486_s26 = smov 6  }
   0x5   :  { %s8566_s21 = sld [smem:[%s9658_s0 + %s8484_s18]]   ;;  %s8487_s30 = smov 7  }
   0x6   :  { %s8571_s25 = sld [smem:[%s9658_s0 + %s8485_s22]]   ;;  %s8488_s4 = smov 8  }
   0x7   :  { %s8576_s29 = sld [smem:[%s9658_s0 + %s8486_s26]]   ;;  %s8489_s10 = smov 9  }
   0x8   :  { %s8581_s3 = sld [smem:[%s9658_s0 + %s8487_s30]]   ;;  %s8490_s15 = smov 10  }
   0x9   :  { %s8586_s8 = sld [smem:[%s9658_s0 + %s8488_s4]]   ;;  %s8491_s20 = smov 11  }
   0xa   :  { %s8591_s14 = sld [smem:[%s9658_s0 + %s8489_s10]]   ;;  %s8492_s26 = smov 12  }
   0xb   :  { %s8596_s19 = sld [smem:[%s9658_s0 + %s8490_s15]]   ;;  %s8493_s1 = smov 13  }
   0xc   :  { %s8601_s24 = sld [smem:[%s9658_s0 + %s8491_s20]]   ;;  %s8494_s7 = smov 14  }
   0xd   :  { %s8606_s30 = sld [smem:[%s9658_s0 + %s8492_s26]]   ;;  %s8495_s15 = smov 15  }
   0xe   :  { %s8611_s6 = sld [smem:[%s9658_s0 + %s8493_s1]]   ;;  %s8496_s22 = smov 16  }
   0xf   :  { %s8616_s12 = sld [smem:[%s9658_s0 + %s8494_s7]]   ;;  %s8497_s28 = smov 17  }
  0x10   :  { %s8621_s20 = sld [smem:[%s9658_s0 + %s8495_s15]]   ;;  %s8498_s7 = smov 18  }
  0x11   :  { %s8626_s27 = sld [smem:[%s9658_s0 + %s8496_s22]]   ;;  %s8499_s15 = smov 19  }
  0x12   :  { %s8631_s4 = sld [smem:[%s9658_s0 + %s8497_s28]]   ;;  %s8500_s22 = smov 20  }
  0x13   :  { %s8501_s28 = smov 21  }
  0x15   :  { %9667 = sst [smem:[#allocation5_spill]] %s8616_s12 }
  0x16   :  { %9668 = sst [smem:[#allocation6_spill]] %s8621_s20 }
  0x17   :  { %9669 = sst [smem:[#allocation7_spill]] %s8626_s27 }
  0x18   :  { %9670 = sst [smem:[#allocation8_spill]] %s8631_s4 }
  0x19   :  { %s8636_s12 = sld [smem:[%s9658_s0 + %s8498_s7]]   ;;  %s8502_s7 = smov 22  }
  0x1a   :  { %s8641_s20 = sld [smem:[%s9658_s0 + %s8499_s15]]   ;;  %s8503_s15 = smov 23  }
  0x1b   :  { %s8646_s27 = sld [smem:[%s9658_s0 + %s8500_s22]]   ;;  %s8504_s22 = smov 24  }
  0x1c   :  { %s8651_s4 = sld [smem:[%s9658_s0 + %s8501_s28]]   ;;  %s8505_s28 = smov 25  }
  0x1f   :  { %9671 = sst [smem:[#allocation9_spill]] %s8636_s12 }
  0x20   :  { %9672 = sst [smem:[#allocation10_spill]] %s8641_s20 }
  0x21   :  { %9673 = sst [smem:[#allocation11_spill]] %s8646_s27 }
  0x22   :  { %9674 = sst [smem:[#allocation12_spill]] %s8651_s4 }
  0x23   :  { %s8656_s12 = sld [smem:[%s9658_s0 + %s8502_s7]]   ;;  %s8506_s7 = smov 26  }
  0x24   :  { %s8661_s20 = sld [smem:[%s9658_s0 + %s8503_s15]]   ;;  %s8507_s15 = smov 27  }
  0x25   :  { %s8666_s27 = sld [smem:[%s9658_s0 + %s8504_s22]]   ;;  %s8508_s22 = smov 28  }
  0x26   :  { %s8671_s4 = sld [smem:[%s9658_s0 + %s8505_s28]]   ;;  %s8509_s28 = smov 29  }
  0x29   :  { %9675 = sst [smem:[#allocation13_spill]] %s8656_s12 }
  0x2a   :  { %9676 = sst [smem:[#allocation14_spill]] %s8661_s20 }
  0x2b   :  { %9677 = sst [smem:[#allocation15_spill]] %s8666_s27 }
  0x2c   :  { %9678 = sst [smem:[#allocation16_spill]] %s8671_s4 }
  0x2d   :  { %s8676_s12 = sld [smem:[%s9658_s0 + %s8506_s7]]   ;;  %s8510_s7 = smov 30  }
  0x2e   :  { %s8681_s20 = sld [smem:[%s9658_s0 + %s8507_s15]]   ;;  %s8511_s15 = smov 31  }
  0x2f   :  { %s8686_s27 = sld [smem:[%s9658_s0 + %s8508_s22]]   ;;  %s8512_s22 = smov 32  }
  0x30   :  { %s8691_s4 = sld [smem:[%s9658_s0 + %s8509_s28]]   ;;  %s8513_s28 = smov 33  }
  0x33   :  { %9679 = sst [smem:[#allocation17_spill]] %s8676_s12 }
  0x34   :  { %9680 = sst [smem:[#allocation18_spill]] %s8681_s20 }
  0x35   :  { %9681 = sst [smem:[#allocation19_spill]] %s8686_s27 }
  0x36   :  { %9682 = sst [smem:[#allocation20_spill]] %s8691_s4 }
  0x37   :  { %s8696_s12 = sld [smem:[%s9658_s0 + %s8510_s7]]   ;;  %s8514_s7 = smov 34  }
  0x38   :  { %s8701_s20 = sld [smem:[%s9658_s0 + %s8511_s15]]   ;;  %s8515_s15 = smov 35  }
  0x39   :  { %s8706_s27 = sld [smem:[%s9658_s0 + %s8512_s22]]   ;;  %s8516_s22 = smov 36  }
  0x3a   :  { %s8711_s4 = sld [smem:[%s9658_s0 + %s8513_s28]]   ;;  %s8517_s28 = smov 37  }
  0x3d   :  { %9683 = sst [smem:[#allocation21_spill]] %s8696_s12 }
  0x3e   :  { %9684 = sst [smem:[#allocation22_spill]] %s8701_s20 }
  0x3f   :  { %9685 = sst [smem:[#allocation23_spill]] %s8706_s27 }
  0x40   :  { %9686 = sst [smem:[#allocation24_spill]] %s8711_s4 }
  0x41   :  { %s8716_s12 = sld [smem:[%s9658_s0 + %s8514_s7]]   ;;  %s8518_s7 = smov 38  }
  0x42   :  { %s8721_s20 = sld [smem:[%s9658_s0 + %s8515_s15]]  }
  0x43   :  { %s8726_s27 = sld [smem:[%s9658_s0 + %s8516_s22]]  }
  0x44   :  { %s8731_s4 = sld [smem:[%s9658_s0 + %s8517_s28]]  }
  0x47   :  { %9687 = sst [smem:[#allocation25_spill]] %s8716_s12 }
  0x48   :  { %s8736_s12 = sld [smem:[%s9658_s0 + %s8518_s7]]  }
  0x49   :  { %v163_v0 = vld [vmem:[%s8551_s9] sm:$0xff]  ;;  %v164_v1 = vld [vmem:[%s8551_s9 + $0x8] sm:$0xff]  ;;  %v165_v2 = vld [vmem:[%s8551_s9 + $0x10] sm:$0xff]  ;;  %v8519_v3 = vmov 0.0|0.0   ;;  %vm188_vm0 = vcmask 523264  }
  0x4a   :  { %7966 = vmatprep.subr.bf16.mxu1 %v8519_v3  ;;  %v7931_v4 = vpack.c.bf16 %v164_v1, %v163_v0  ;;  %7930 = vmatprep.subr.bf16.mxu0 %v8519_v3  ;;  %v166_v5 = vld [vmem:[%s8551_s9 + $0x18] sm:$0xff]  ;;  %v167_v7 = vld [vmem:[%s8551_s9 + $0x20] sm:$0xff]  ;;  %v168_v8 = vld [vmem:[%s8551_s9 + $0x28] sm:$0xff] }
  0x4b   :  { %v7934_v6 = vpack.c.bf16 %v166_v5, %v165_v2  ;;  %v7937_v9 = vpack.c.bf16 %v168_v8, %v167_v7  ;;  %v169_v10 = vld [vmem:[%s8551_s9 + $0x30] sm:$0xff]  ;;  %v170_v11 = vld [vmem:[%s8551_s9 + $0x38] sm:$0xff]  ;;  %v160_v13 = vld [vmem:[%s8546_s5 + $0x8] sm:$0x1f] }
  0x4c   :  { %7968 = vmatpush1.bf16.msra.mxu1 %v7931_v4  ;;  %7932 = vmatpush1.bf16.msra.mxu0 %v7931_v4  ;;  %v162_v12 = vld [vmem:[%s8546_s5 + $0x18] sm:$0x1f] }
  0x4d   :  { %7969 = vmatprep.subr.bf16.mxu1 %v8519_v3  ;;  %7933 = vmatprep.subr.bf16.mxu0 %v8519_v3 }
  0x4e   :  { %6856 = vmatprep.mubr.msk.f32.mxu1 %vm188_vm0, %v162_v12  ;;  %6855 = vmatprep.mubr.msk.f32.mxu0 %vm188_vm0, %v160_v13 }
  0x50   :  { %7971 = vmatpush1.bf16.msra.mxu1 %v7934_v6  ;;  %7935 = vmatpush1.bf16.msra.mxu0 %v7934_v6 }
  0x51   :  { %7972 = vmatprep.subr.bf16.mxu1 %v8519_v3  ;;  %7936 = vmatprep.subr.bf16.mxu0 %v8519_v3 }
  0x52   :  { %82 = vsyncpa [#allocation3], 0  ;;  %v7940_v14 = vpack.c.bf16 %v170_v11, %v169_v10  ;;  %v171_v15 = vld [vmem:[%s8551_s9 + $0x40] sm:$0xff]  ;;  %v172_v16 = vld [vmem:[%s8551_s9 + $0x48] sm:$0xff]  ;;  %vm370_vm1 = vcmask 258048   ;;  %vm8520_vm2 = vmmov 0  }
  0x53   :  { %v7943_v17 = vpack.c.bf16 %v172_v16, %v171_v15  ;;  %v173_v18 = vld [vmem:[%s8551_s9 + $0x50] sm:$0xff]  ;;  %v174_v19 = vld [vmem:[%s8551_s9 + $0x58] sm:$0xff]  ;;  %v175_v21 = vld [vmem:[%s8551_s9 + $0x60] sm:$0xff]  ;;  %v8521_v2 = vmov 0.0   ;;  %vm414_vm3 = vcmask 261120   ;;  %s8522_s0 = smov 96  }
  0x54   :  { %7974 = vmatpush1.bf16.msra.mxu1 %v7937_v9  ;;  %7938 = vmatpush1.bf16.msra.mxu0 %v7937_v9  ;;  %v7946_v20 = vpack.c.bf16 %v174_v19, %v173_v18  ;;  %v176_v22 = vld [vmem:[%s8551_s9 + $0x68] sm:$0xff]  ;;  %v177_v24 = vld [vmem:[%s8551_s9 + $0x70] sm:$0xff]  ;;  %v178_v25 = vld [vmem:[%s8551_s9 + $0x78] sm:$0xff]  ;;  %vm564_vm4 = vcmask 64512   ;;  %vm716_vm5 = vcmask 36864   ;;  %vm745_vm6 = vcmask 1044480  }
  0x55   :  { %7975 = vmatprep.subr.bf16.mxu1 %v8519_v3  ;;  %7939 = vmatprep.subr.bf16.mxu0 %v8519_v3  ;;  %v7949_v23 = vpack.c.bf16 %v176_v22, %v175_v21  ;;  %v7952_v26 = vpack.c.bf16 %v178_v25, %v177_v24  ;;  %v179_v27 = vld [vmem:[%s8551_s9 + $0x80] sm:$0xff]  ;;  %v180_v28 = vld [vmem:[%s8551_s9 + $0x88] sm:$0xff]  ;;  %v181_v30 = vld [vmem:[%s8551_s9 + $0x90] sm:$0xff]  ;;  %vm741_vm7 = vcmask 39936   ;;  %s8529_s15 = smov 48   ;;  %s8530_s16 = smov 72  }
  0x56   :  { %v7955_v29 = vpack.c.bf16 %v180_v28, %v179_v27  ;;  %v182_v31 = vld [vmem:[%s8551_s9 + $0x98] sm:$0xff]  ;;  %v183_v33 = vld [vmem:[%s8551_s9 + $0xa0] sm:$0xff]  ;;  %v184_v34 = vld [vmem:[%s8551_s9 + $0xa8] sm:$0xff]  ;;  %s8531_s18 = smov 104   ;;  %s8532_s22 = smov 40   ;;  %vm1917_vm8 = vcmask 130048  }
  0x57   :  { %v7958_v32 = vpack.c.bf16 %v182_v31, %v181_v30  ;;  %v7961_v35 = vpack.c.bf16 %v184_v34, %v183_v33  ;;  %v185_v36 = vld [vmem:[%s8551_s9 + $0xb0] sm:$0xff]  ;;  %v186_v37 = vld [vmem:[%s8551_s9 + $0xb8] sm:$0xff]  ;;  %v159_v40 = vld [vmem:[%s8546_s5] sm:$0x1f]  ;;  %s8524_s9 = smov 88   ;;  %s8533_s23 = smov 8  }
  0x58   :  { %7977 = vmatpush1.bf16.msra.mxu1 %v7940_v14  ;;  %7941 = vmatpush1.bf16.msra.mxu0 %v7940_v14  ;;  %v7964_v38 = vpack.c.bf16 %v186_v37, %v185_v36  ;;  %v161_v39 = vld [vmem:[%s8546_s5 + $0x10] sm:$0x1f]  ;;  %v187_v41 = vld [vmem:[%s8556_s13] sm:$0x1f]  ;;  %v338_v61 = vld [vmem:[%s8571_s25 + $0x8] sm:$0xff]  ;;  %s8523_s5 = smov 64  }
  0x59   :  { %7978 = vmatprep.subr.bf16.mxu1 %v8519_v3  ;;  %7942 = vmatprep.subr.bf16.mxu0 %v8519_v3  ;;  %v337_v60 = vld [vmem:[%s8571_s25] sm:$0xff]  ;;  %v339_v63 = vld [vmem:[%s8571_s25 + $0x10] sm:$0xff]  ;;  %v340_v0 = vld [vmem:[%s8571_s25 + $0x18] sm:$0xff]  ;;  %s8525_s13 = smov 120   ;;  %s8528_s25 = smov 112   ;;  %vm1920_vm9 = vcmask 195584  }
  0x5a   :  { %v8003_v62 = vpack.c.bf16 %v338_v61, %v337_v60  ;;  %v8006_v1 = vpack.c.bf16 %v340_v0, %v339_v63  ;;  %v6857_v11 = vld [vmem:[%s8561_s17] ss:$0 sm:$0xff]  ;;  %s8526_s17 = smov 56   ;;  %s8534_s26 = smov 16   ;;  %vm6748_vm0 = vcmask 1041409  }
  0x5b   :  { %v6858_v13 = vld [vmem:[%s8566_s21] ss:$0 sm:$0xff]  ;;  %s8527_s21 = smov 80   ;;  %s8535_s28 = smov 24  }
  0x5c   :  { %7980 = vmatpush1.bf16.msra.mxu1 %v7943_v17  ;;  %7944 = vmatpush1.bf16.msra.mxu0 %v7943_v17  ;;  %s9696_s1 = sld [smem:[#allocation14_spill]]  ;;  %s9697_s2 = sld [smem:[#allocation13_spill]] }
  0x5d   :  { %7981 = vmatprep.subr.bf16.mxu1 %v8519_v3  ;;  %7945 = vmatprep.subr.bf16.mxu0 %v8519_v3  ;;  %s9698_s7 = sld [smem:[#allocation15_spill]]  ;;  %s9699_s10 = sld [smem:[#allocation18_spill]] }
  0x5e   :  { %s9700_s11 = sld [smem:[#allocation16_spill]] }
  0x60   :  { %7983 = vmatpush1.bf16.msra.mxu1 %v7946_v20  ;;  %7947 = vmatpush1.bf16.msra.mxu0 %v7946_v20 }
  0x61   :  { %7984 = vmatprep.subr.bf16.mxu1 %v8519_v3  ;;  %7948 = vmatprep.subr.bf16.mxu0 %v8519_v3 }
  0x64   :  { %7986 = vmatpush1.bf16.msra.mxu1 %v7949_v23  ;;  %7950 = vmatpush1.bf16.msra.mxu0 %v7949_v23 }
  0x65   :  { %7987 = vmatprep.subr.bf16.mxu1 %v8519_v3  ;;  %7951 = vmatprep.subr.bf16.mxu0 %v8519_v3 }
  0x68   :  { %7989 = vmatpush1.bf16.msra.mxu1 %v7952_v26  ;;  %7953 = vmatpush1.bf16.msra.mxu0 %v7952_v26 }
  0x69   :  { %7990 = vmatprep.subr.bf16.mxu1 %v8519_v3  ;;  %7954 = vmatprep.subr.bf16.mxu0 %v8519_v3 }
  0x6c   :  { %7992 = vmatpush1.bf16.msra.mxu1 %v7955_v29  ;;  %7956 = vmatpush1.bf16.msra.mxu0 %v7955_v29 }
  0x6d   :  { %7993 = vmatprep.subr.bf16.mxu1 %v8519_v3  ;;  %7957 = vmatprep.subr.bf16.mxu0 %v8519_v3 }
  0x70   :  { %7995 = vmatpush1.bf16.msra.mxu1 %v7958_v32  ;;  %7959 = vmatpush1.bf16.msra.mxu0 %v7958_v32 }
  0x71   :  { %7996 = vmatprep.subr.bf16.mxu1 %v8519_v3  ;;  %7960 = vmatprep.subr.bf16.mxu0 %v8519_v3 }
  0x74   :  { %7998 = vmatpush1.bf16.msra.mxu1 %v7961_v35  ;;  %7962 = vmatpush1.bf16.msra.mxu0 %v7961_v35 }
  0x75   :  { %7999 = vmatprep.subr.bf16.mxu1 %v8519_v3  ;;  %7963 = vmatprep.subr.bf16.mxu0 %v8519_v3 }
  0x78   :  { %8001 = vmatpush1.bf16.msra.mxu1 %v7964_v38  ;;  %7965 = vmatpush1.bf16.msra.mxu0 %v7964_v38 }
  0x79   :  { %8008 = vmatprep.subr.bf16.mxu1 %v8519_v3  ;;  %8002 = vmatprep.subr.bf16.mxu0 %v8519_v3 }
  0x7b   :  { %330 = vmatmul.mubr.f32.vlgmr.msra.gmra.mrb[0].mxu1 %v161_v39  ;;  %257 = vmatmul.mubr.f32.vlgmr.msra.gmra.mrb[0].mxu0 %v159_v40 }
  0x7c   :  { %8010 = vmatpush3.bf16.msra.mxu1 %v8003_v62  ;;  %8004 = vmatpush3.bf16.msra.mxu0 %v8003_v62 }
  0x7d   :  { %8011 = vmatprep.subr.bf16.mxu1 %v8519_v3  ;;  %8005 = vmatprep.subr.bf16.mxu0 %v8519_v3 }
  0x7e   :  { %7301 = vmatprep.mubr.msk.f32.mxu1 %vm8520_vm2, %v8521_v2  ;;  %7290 = vmatprep.mubr.msk.f32.mxu0 %vm8520_vm2, %v8521_v2 }
  0x80   :  { %8013 = vmatpush3.bf16.msra.mxu1 %v8006_v1  ;;  %8007 = vmatpush3.bf16.msra.mxu0 %v8006_v1 }
  0x81   :  { %7309 = vmatprep.subr.mxu1 %v8521_v2  ;;  %7304 = vmatprep.subr.mxu0 %v8521_v2 }
 0x14e   :  { %v331_v42 = vpop.f32.mrb[0].mxu1  ;;  %v258_v43 = vpop.f32.mrb[0].mxu0 }
 0x14f   :  { %v8793_v44 = vadd.f32 %v331_v42, %v187_v41  ;;  %v333_v45 = vpop.f32.mrb[1].mxu1  ;;  %v8795_v46 = vadd.f32 %v258_v43, %v187_v41  ;;  %v260_v47 = vpop.f32.mrb[1].mxu0 }
 0x151   :  { %v374_v48 = vsel %vm370_vm1, %v8793_v44, 0.0  ;;  %v371_v49 = vsel %vm370_vm1, %v8795_v46, 0.0 }
 0x152   :  { %375 = vadd.xlane.f32.xlu0 %v374_v48 }
 0x156   :  { %372 = vadd.xlane.f32.xlu0 %v371_v49 }
 0x1df   :  { %v376_v50 = vpop.xlane.xlu0 %375 }
 0x1e0   :  { %v379_v51 = vmul.f32 0.03125, %v376_v50 }
 0x1e2   :  { %v381_v52 = vsub.f32 %v8793_v44, %v379_v51 }
 0x1e3   :  { %v373_v53 = vpop.xlane.xlu0 %372 }
 0x1e4   :  { %v378_v54 = vmul.f32 0.03125, %v373_v53  ;;  %v383_v55 = vmul.f32 %v381_v52, %v381_v52 }
 0x1e6   :  { %v380_v56 = vsub.f32 %v8795_v46, %v378_v54  ;;  %v387_v57 = vsel %vm370_vm1, %v383_v55, 0.0 }
 0x1e7   :  { %388 = vadd.xlane.f32.xlu1 %v387_v57 }
 0x1e8   :  { %v382_v58 = vmul.f32 %v380_v56, %v380_v56 }
 0x1ea   :  { %v384_v59 = vsel %vm370_vm1, %v382_v58, 0.0 }
 0x1eb   :  { %385 = vadd.xlane.f32.xlu1 %v384_v59 }
 0x274   :  { %v389_v4 = vpop.xlane.xlu1 %388 }
 0x275   :  { %v391_v5 = vmul.f32 0.03125, %v389_v4 }
 0x277   :  { %v393_v6 = vadd.f32 1e-05, %v391_v5 }
 0x278   :  { %v386_v7 = vpop.xlane.xlu1 %385 }
 0x279   :  { %8311 = vrsqrt.f32 %v393_v6  ;;  %v390_v8 = vmul.f32 0.03125, %v386_v7 }
 0x27b   :  { %v392_v9 = vadd.f32 1e-05, %v390_v8 }
 0x27d   :  { %8313 = vrsqrt.f32 %v392_v9 }
 0x283   :  { %v8312_v10 = vpop.eup %8311 }
 0x284   :  { %v397_v12 = vmul.f32 %v8312_v10, %v381_v52 }
 0x286   :  { %v405_v14 = vmul.f32 %v6857_v11, %v397_v12 }
 0x287   :  { %v8314_v15 = vpop.eup %8313 }
 0x288   :  { %v396_v16 = vmul.f32 %v8314_v15, %v380_v56  ;;  %v413_v17 = vadd.f32 %v6858_v13, %v405_v14 }
 0x28a   :  { %7302 = vmatmul.mubr.msk.f32.vlgmr.msra.gmra.mrb[2].mxu1 %vm414_vm3, %v413_v17  ;;  %v404_v18 = vmul.f32 %v6857_v11, %v396_v16 }
 0x28b   :  { %7311 = vmatprep.mubr.msk.f32.mxu1 %vm8520_vm2, %v8521_v2 }
 0x28c   :  { %v412_v19 = vadd.f32 %v6858_v13, %v404_v18 }
 0x28e   :  { %7291 = vmatmul.mubr.msk.f32.vlgmr.msra.gmra.mrb[2].mxu0 %vm414_vm3, %v412_v19 }
 0x28f   :  { %7306 = vmatprep.mubr.msk.f32.mxu0 %vm8520_vm2, %v8521_v2 }
 0x35d   :  { %v8825_v20 = vpop.f32.mrb[2].mxu1 }
 0x35e   :  { %v7303_v21 = vpop.f32.mrb[3].mxu1  ;;  %640 = vrot.lane.b32.xlu0 %v8825_v20, %s8522_s0 }
 0x361   :  { %v8829_v22 = vpop.f32.mrb[2].mxu0 }
 0x362   :  { %562 = vrot.lane.b32.xlu1 %v8829_v22, %s8522_s0  ;;  %v7292_v23 = vpop.f32.mrb[3].mxu0 }
 0x3d0   :  { %v641_v24 = vpop.permute.xlu0 %640 }
 0x3d1   :  { %7310 = vmatpush3.xpose.msk.msra.mxu1 %vm564_vm4, %v641_v24 }
 0x3d2   :  { %7319 = vmatprep.subr.mxu1 %v8521_v2 }
 0x3d4   :  { %v563_v25 = vpop.permute.xlu1 %562  ;;  %7312 = vmatmul.mubr.msk.f32.vlgmr.msra.gmra.mrb[4].mxu1 %vm564_vm4, %v8825_v20 }
 0x3d5   :  { %7305 = vmatpush3.xpose.msk.msra.mxu0 %vm564_vm4, %v563_v25  ;;  %7321 = vmatprep.mubr.msk.f32.mxu1 %vm8520_vm2, %v8521_v2 }
 0x3d6   :  { %7314 = vmatprep.subr.mxu0 %v8521_v2 }
 0x3d8   :  { %7307 = vmatmul.mubr.msk.f32.vlgmr.msra.gmra.mrb[4].mxu0 %vm564_vm4, %v8829_v22 }
 0x3d9   :  { %7316 = vmatprep.mubr.msk.f32.mxu0 %vm8520_vm2, %v8521_v2 }
 0x4a7   :  { %v712_v26 = vpop.f32.mrb[4].mxu1 }
 0x4a8   :  { %v7313_v27 = vpop.f32.mrb[5].mxu1  ;;  %v720_v28 = vsel %vm716_vm5, %v712_v26, -inf }
 0x4a9   :  { %721 = vmax.xlane.f32.xlu1 %v720_v28 }
 0x4ab   :  { %v635_v29 = vpop.f32.mrb[4].mxu0 }
 0x4ac   :  { %v7308_v30 = vpop.f32.mrb[5].mxu0  ;;  %v717_v31 = vsel %vm716_vm5, %v635_v29, -inf }
 0x4ad   :  { %718 = vmax.xlane.f32.xlu0 %v717_v31 }
 0x4ba   :  { %739 = vrot.lane.b32.xlu1 %v8829_v22, %s8523_s5 }
 0x4be   :  { %975 = vrot.lane.b32.xlu1 %v8825_v20, %s8524_s9 }
 0x4c2   :  { %897 = vrot.lane.b32.xlu1 %v8829_v22, %s8524_s9 }
 0x4c3   :  { %818 = vrot.lane.b32.xlu0 %v8825_v20, %s8523_s5 }
 0x536   :  { %v722_v32 = vpop.xlane.xlu1 %721 }
 0x537   :  { %v724_v33 = vsub.f32 %v712_v26, %v722_v32 }
 0x539   :  { %v727_v34 = vmul.f32 1.442695, %v724_v33 }
 0x53a   :  { %v740_v35 = vpop.permute.xlu1 %739  ;;  %v719_v36 = vpop.xlane.xlu0 %718 }
 0x53b   :  { %8315 = vpow2.f32 %v727_v34  ;;  %v723_v37 = vsub.f32 %v635_v29, %v719_v36  ;;  %7315 = vmatpush3.msk.msra.mxu0 %vm745_vm6, %v740_v35 }
 0x53c   :  { %7324 = vmatprep.subr.mxu0 %v8521_v2 }
 0x53d   :  { %v725_v38 = vmul.f32 1.442695, %v723_v37 }
 0x53e   :  { %v819_v39 = vpop.permute.xlu0 %818  ;;  %v976_v45 = vpop.permute.xlu1 %975 }
 0x53f   :  { %8317 = vpow2.f32 %v725_v38  ;;  %7320 = vmatpush3.msk.msra.mxu1 %vm745_vm6, %v819_v39 }
 0x540   :  { %7329 = vmatprep.subr.mxu1 %v8521_v2 }
 0x542   :  { %v898_v47 = vpop.permute.xlu1 %897 }
 0x545   :  { %v8316_v40 = vpop.eup %8315 }
 0x546   :  { %v732_v41 = vsel %vm716_vm5, %v8316_v40, 0.0 }
 0x547   :  { %733 = vadd.xlane.f32.xlu0 %v732_v41 }
 0x549   :  { %v8318_v42 = vpop.eup %8317 }
 0x54a   :  { %v729_v43 = vsel %vm716_vm5, %v8318_v42, 0.0 }
 0x54b   :  { %730 = vadd.xlane.f32.xlu1 %v729_v43 }
 0x55c   :  { %895 = vrot.lane.b32.xlu1 %v8829_v22, %s8525_s13 }
 0x55d   :  { %973 = vrot.lane.b32.xlu0 %v8825_v20, %s8525_s13 }
 0x5d4   :  { %v734_v48 = vpop.xlane.xlu0 %733 }
 0x5d5   :  { %8319 = vrcp.f32 %v734_v48 }
 0x5d8   :  { %v731_v49 = vpop.xlane.xlu1 %730  ;;  %v974_v54 = vpop.permute.xlu0 %973 }
 0x5d9   :  { %8321 = vrcp.f32 %v731_v49 }
 0x5dc   :  { %v896_v55 = vpop.permute.xlu1 %895 }
 0x5df   :  { %v8320_v50 = vpop.eup %8319 }
 0x5e0   :  { %v738_v51 = vmul.f32 %v8320_v50, %v8316_v40 }
 0x5e2   :  { %7322 = vmatmul.mubr.msk.f32.vlgmr.msra.gmra.mrb[6].mxu1 %vm741_vm7, %v738_v51 }
 0x5e3   :  { %v8322_v52 = vpop.eup %8321  ;;  %7330 = vmatpush3.xpose.msk.msra.mxu1 %vm564_vm4, %v976_v45  ;;  %7331 = vmatprep.mubr.msk.f32.mxu1 %vm8520_vm2, %v8521_v2 }
 0x5e4   :  { %v737_v53 = vmul.f32 %v8322_v52, %v8318_v42  ;;  %7339 = vmatprep.subr.mxu1 %v8521_v2 }
 0x5e6   :  { %7317 = vmatmul.mubr.msk.f32.vlgmr.msra.gmra.mrb[6].mxu0 %vm741_vm7, %v737_v53  ;;  %7332 = vmatmul.mubr.msk.f32.vlgmr.msra.gmra.mrb[8].mxu1 %vm564_vm4, %v974_v54 }
 0x5e7   :  { %7325 = vmatpush3.xpose.msk.msra.mxu0 %vm564_vm4, %v898_v47  ;;  %7326 = vmatprep.mubr.msk.f32.mxu0 %vm8520_vm2, %v8521_v2 }
 0x5e8   :  { %7334 = vmatprep.subr.mxu0 %v8521_v2  ;;  %7341 = vmatprep.mubr.msk.f32.mxu1 %vm8520_vm2, %v8521_v2 }
 0x5ea   :  { %7327 = vmatmul.mubr.msk.f32.vlgmr.msra.gmra.mrb[8].mxu0 %vm564_vm4, %v896_v55 }
 0x5eb   :  { %7336 = vmatprep.mubr.msk.f32.mxu0 %vm8520_vm2, %v8521_v2 }
 0x6b5   :  { %v8881_v56 = vpop.f32.mrb[6].mxu1 }
 0x6b6   :  { %v7323_v57 = vpop.f32.mrb[7].mxu1 }
 0x6b9   :  { %v8883_v58 = vpop.f32.mrb[6].mxu0  ;;  %v1047_v59 = vpop.f32.mrb[8].mxu1 }
 0x6ba   :  { %v7318_v60 = vpop.f32.mrb[7].mxu0  ;;  %v7333_v61 = vpop.f32.mrb[9].mxu1  ;;  %v1054_v62 = vsel %vm716_vm5, %v1047_v59, -inf }
 0x6bb   :  { %1055 = vmax.xlane.f32.xlu0 %v1054_v62 }
 0x6bd   :  { %v969_v63 = vpop.f32.mrb[8].mxu0 }
 0x6be   :  { %v7328_v0 = vpop.f32.mrb[9].mxu0  ;;  %v1051_v1 = vsel %vm716_vm5, %v969_v63, -inf }
 0x6bf   :  { %1052 = vmax.xlane.f32.xlu1 %v1051_v1 }
 0x6d0   :  { %1073 = vrot.lane.b32.xlu1 %v8829_v22, %s8526_s17 }
 0x6d1   :  { %1150 = vrot.lane.b32.xlu0 %v8825_v20, %s8526_s17 }
 0x6d4   :  { %1307 = vrot.lane.b32.xlu1 %v8825_v20, %s8527_s21 }
 0x6d8   :  { %1229 = vrot.lane.b32.xlu1 %v8829_v22, %s8527_s21 }
 0x6dc   :  { %1227 = vrot.lane.b32.xlu1 %v8829_v22, %s8528_s25 }
 0x748   :  { %v1056_v4 = vpop.xlane.xlu0 %1055 }
 0x749   :  { %v1058_v5 = vsub.f32 %v1047_v59, %v1056_v4 }
 0x74b   :  { %v1061_v6 = vmul.f32 1.442695, %v1058_v5 }
 0x74c   :  { %v1053_v7 = vpop.xlane.xlu1 %1052  ;;  %v1151_v8 = vpop.permute.xlu0 %1150 }
 0x74d   :  { %8323 = vpow2.f32 %v1061_v6  ;;  %v1057_v9 = vsub.f32 %v969_v63, %v1053_v7  ;;  %7340 = vmatpush3.msk.msra.mxu1 %vm745_vm6, %v1151_v8 }
 0x74e   :  { %7349 = vmatprep.subr.mxu1 %v8521_v2 }
 0x74f   :  { %v1059_v10 = vmul.f32 1.442695, %v1057_v9 }
 0x750   :  { %v1074_v11 = vpop.permute.xlu1 %1073 }
 0x751   :  { %8325 = vpow2.f32 %v1059_v10  ;;  %7335 = vmatpush3.msk.msra.mxu0 %vm745_vm6, %v1074_v11 }
 0x752   :  { %7344 = vmatprep.subr.mxu0 %v8521_v2 }
 0x754   :  { %v1308_v18 = vpop.permute.xlu1 %1307 }
 0x757   :  { %v8324_v12 = vpop.eup %8323 }
 0x758   :  { %v1066_v13 = vsel %vm716_vm5, %v8324_v12, 0.0  ;;  %v1230_v24 = vpop.permute.xlu1 %1229 }
 0x759   :  { %1067 = vadd.xlane.f32.xlu0 %v1066_v13 }
 0x75b   :  { %v8326_v14 = vpop.eup %8325 }
 0x75c   :  { %v1063_v15 = vsel %vm716_vm5, %v8326_v14, 0.0  ;;  %v1228_v27 = vpop.permute.xlu1 %1227 }
 0x75d   :  { %1064 = vadd.xlane.f32.xlu0 %v1063_v15 }
 0x773   :  { %1305 = vrot.lane.b32.xlu0 %v8825_v20, %s8528_s25 }
 0x7e6   :  { %v1068_v16 = vpop.xlane.xlu0 %1067 }
 0x7e7   :  { %8327 = vrcp.f32 %v1068_v16 }
 0x7ea   :  { %v1065_v17 = vpop.xlane.xlu0 %1064 }
 0x7eb   :  { %8329 = vrcp.f32 %v1065_v17 }
 0x7ee   :  { %v1306_v26 = vpop.permute.xlu0 %1305 }
 0x7f1   :  { %v8328_v19 = vpop.eup %8327 }
 0x7f2   :  { %v1072_v21 = vmul.f32 %v8328_v19, %v8324_v12 }
 0x7f4   :  { %7342 = vmatmul.mubr.msk.f32.vlgmr.msra.gmra.mrb[10].mxu1 %vm741_vm7, %v1072_v21 }
 0x7f5   :  { %v8330_v23 = vpop.eup %8329  ;;  %7350 = vmatpush3.xpose.msk.msra.mxu1 %vm564_vm4, %v1308_v18  ;;  %7351 = vmatprep.mubr.msk.f32.mxu1 %vm8520_vm2, %v8521_v2 }
 0x7f6   :  { %v1071_v25 = vmul.f32 %v8330_v23, %v8326_v14  ;;  %7359 = vmatprep.subr.mxu1 %v8521_v2 }
 0x7f8   :  { %7337 = vmatmul.mubr.msk.f32.vlgmr.msra.gmra.mrb[10].mxu0 %vm741_vm7, %v1071_v25  ;;  %7352 = vmatmul.mubr.msk.f32.vlgmr.msra.gmra.mrb[12].mxu1 %vm564_vm4, %v1306_v26 }
 0x7f9   :  { %7345 = vmatpush3.xpose.msk.msra.mxu0 %vm564_vm4, %v1230_v24  ;;  %7346 = vmatprep.mubr.msk.f32.mxu0 %vm8520_vm2, %v8521_v2 }
 0x7fa   :  { %7354 = vmatprep.subr.mxu0 %v8521_v2  ;;  %7361 = vmatprep.mubr.msk.f32.mxu1 %vm8520_vm2, %v8521_v2 }
 0x7fc   :  { %7347 = vmatmul.mubr.msk.f32.vlgmr.msra.gmra.mrb[12].mxu0 %vm564_vm4, %v1228_v27 }
 0x7fd   :  { %7356 = vmatprep.mubr.msk.f32.mxu0 %vm8520_vm2, %v8521_v2 }
 0x8c7   :  { %v8921_v28 = vpop.f32.mrb[10].mxu1 }
 0x8c8   :  { %v7343_v29 = vpop.f32.mrb[11].mxu1 }
 0x8cb   :  { %v8923_v30 = vpop.f32.mrb[10].mxu0  ;;  %v1379_v31 = vpop.f32.mrb[12].mxu1 }
 0x8cc   :  { %v7338_v32 = vpop.f32.mrb[11].mxu0  ;;  %v7353_v33 = vpop.f32.mrb[13].mxu1  ;;  %v1386_v34 = vsel %vm716_vm5, %v1379_v31, -inf }
 0x8cd   :  { %1387 = vmax.xlane.f32.xlu0 %v1386_v34  ;;  %v343_v32 = vld [vmem:[%s8576_s29 + $0x10] sm:$0xff]  ;;  %v344_v34 = vld [vmem:[%s8576_s29 + $0x18] sm:$0xff] }
 0x8cf   :  { %v1301_v35 = vpop.f32.mrb[12].mxu0 }
 0x8d0   :  { %v7348_v36 = vpop.f32.mrb[13].mxu0  ;;  %v1383_v37 = vsel %vm716_vm5, %v1301_v35, -inf }
 0x8d1   :  { %1384 = vmax.xlane.f32.xlu1 %v1383_v37 }
 0x8e2   :  { %1405 = vrot.lane.b32.xlu1 %v8829_v22, %s8529_s15 }
 0x8e3   :  { %1482 = vrot.lane.b32.xlu0 %v8825_v20, %s8529_s15 }
 0x8e6   :  { %1639 = vrot.lane.b32.xlu1 %v8825_v20, %s8530_s16 }
 0x8ea   :  { %1561 = vrot.lane.b32.xlu1 %v8829_v22, %s8530_s16 }
 0x8ee   :  { %1559 = vrot.lane.b32.xlu1 %v8829_v22, %s8531_s18 }
 0x95a   :  { %v1388_v38 = vpop.xlane.xlu0 %1387 }
 0x95b   :  { %v1390_v39 = vsub.f32 %v1379_v31, %v1388_v38  ;;  %v342_v31 = vld [vmem:[%s8576_s29 + $0x8] sm:$0xff] }
 0x95d   :  { %v1393_v40 = vmul.f32 1.442695, %v1390_v39 }
 0x95e   :  { %v1385_v41 = vpop.xlane.xlu1 %1384  ;;  %v1483_v42 = vpop.permute.xlu0 %1482 }
 0x95f   :  { %8331 = vpow2.f32 %v1393_v40  ;;  %v1389_v43 = vsub.f32 %v1301_v35, %v1385_v41  ;;  %7360 = vmatpush3.msk.msra.mxu1 %vm745_vm6, %v1483_v42  ;;  %v8018_v35 = vpack.c.bf16 %v344_v34, %v343_v32  ;;  %v354_v34 = vld [vmem:[%s8606_s30 + $0x8] sm:$0xff] }
 0x960   :  { %7369 = vmatprep.subr.mxu1 %v8521_v2 }
 0x961   :  { %v1391_v45 = vmul.f32 1.442695, %v1389_v43 }
 0x962   :  { %v1406_v47 = vpop.permute.xlu1 %1405 }
 0x963   :  { %8333 = vpow2.f32 %v1391_v45  ;;  %7355 = vmatpush3.msk.msra.mxu0 %vm745_vm6, %v1406_v47 }
 0x964   :  { %7364 = vmatprep.subr.mxu0 %v8521_v2 }
 0x966   :  { %v1640_v54 = vpop.permute.xlu1 %1639 }
 0x969   :  { %v8332_v48 = vpop.eup %8331 }
 0x96a   :  { %v1398_v49 = vsel %vm716_vm5, %v8332_v48, 0.0  ;;  %v1562_v60 = vpop.permute.xlu1 %1561 }
 0x96b   :  { %1399 = vadd.xlane.f32.xlu0 %v1398_v49 }
 0x96d   :  { %v8334_v50 = vpop.eup %8333 }
 0x96e   :  { %v1395_v51 = vsel %vm716_vm5, %v8334_v50, 0.0  ;;  %v1560_v63 = vpop.permute.xlu1 %1559 }
 0x96f   :  { %1396 = vadd.xlane.f32.xlu0 %v1395_v51 }
 0x985   :  { %1637 = vrot.lane.b32.xlu0 %v8825_v20, %s8531_s18 }
 0x9f8   :  { %v1400_v52 = vpop.xlane.xlu0 %1399 }
 0x9f9   :  { %8335 = vrcp.f32 %v1400_v52 }
 0x9fc   :  { %v1397_v53 = vpop.xlane.xlu0 %1396 }
 0x9fd   :  { %8337 = vrcp.f32 %v1397_v53 }
 0xa00   :  { %v1638_v62 = vpop.permute.xlu0 %1637 }
 0xa03   :  { %v8336_v55 = vpop.eup %8335 }
 0xa04   :  { %v1404_v57 = vmul.f32 %v8336_v55, %v8332_v48 }
 0xa06   :  { %7362 = vmatmul.mubr.msk.f32.vlgmr.msra.gmra.mrb[14].mxu1 %vm741_vm7, %v1404_v57 }
 0xa07   :  { %v8338_v59 = vpop.eup %8337  ;;  %7370 = vmatpush3.xpose.msk.msra.mxu1 %vm564_vm4, %v1640_v54  ;;  %7371 = vmatprep.mubr.msk.f32.mxu1 %vm8520_vm2, %v8521_v2 }
 0xa08   :  { %v1403_v61 = vmul.f32 %v8338_v59, %v8334_v50  ;;  %7379 = vmatprep.subr.mxu1 %v8521_v2 }
 0xa0a   :  { %7357 = vmatmul.mubr.msk.f32.vlgmr.msra.gmra.mrb[14].mxu0 %vm741_vm7, %v1403_v61  ;;  %7372 = vmatmul.mubr.msk.f32.vlgmr.msra.gmra.mrb[16].mxu1 %vm564_vm4, %v1638_v62 }
 0xa0b   :  { %7365 = vmatpush3.xpose.msk.msra.mxu0 %vm564_vm4, %v1562_v60  ;;  %7366 = vmatprep.mubr.msk.f32.mxu0 %vm8520_vm2, %v8521_v2 }
 0xa0c   :  { %7374 = vmatprep.subr.mxu0 %v8521_v2  ;;  %7381 = vmatprep.mubr.msk.f32.mxu1 %vm8520_vm2, %v8521_v2 }
 0xa0e   :  { %7367 = vmatmul.mubr.msk.f32.vlgmr.msra.gmra.mrb[16].mxu0 %vm564_vm4, %v1560_v63 }
 0xa0f   :  { %7376 = vmatprep.mubr.msk.f32.mxu0 %vm8520_vm2, %v8521_v2 }
 0xad9   :  { %v1555_v0 = vpop.f32.mrb[14].mxu1 }
 0xada   :  { %v7363_v1 = vpop.f32.mrb[15].mxu1 }
 0xadd   :  { %v1478_v4 = vpop.f32.mrb[14].mxu0  ;;  %v1711_v5 = vpop.f32.mrb[16].mxu1 }
 0xade   :  { %v7358_v6 = vpop.f32.mrb[15].mxu0  ;;  %v7373_v7 = vpop.f32.mrb[17].mxu1  ;;  %v1718_v8 = vsel %vm716_vm5, %v1711_v5, -inf }
 0xadf   :  { %1719 = vmax.xlane.f32.xlu0 %v1718_v8 }
 0xae1   :  { %v1633_v9 = vpop.f32.mrb[16].mxu0 }
 0xae2   :  { %v7368_v10 = vpop.f32.mrb[17].mxu0  ;;  %v1715_v11 = vsel %vm716_vm5, %v1633_v9, -inf }
 0xae3   :  { %1716 = vmax.xlane.f32.xlu1 %v1715_v11  ;;  %v348_v11 = vld [vmem:[%s8596_s19] sm:$0xff] }
 0xaf4   :  { %1737 = vrot.lane.b32.xlu1 %v8829_v22, %s8532_s22 }
 0xaf8   :  { %1895 = vrot.lane.b32.xlu1 %v8921_v28, %s8533_s23 }
 0xafc   :  { %1903 = vrot.lane.b32.xlu1 %v1555_v0, %s8534_s26 }
 0xb6c   :  { %v1720_v12 = vpop.xlane.xlu0 %1719 }
 0xb6d   :  { %v1722_v13 = vsub.f32 %v1711_v5, %v1720_v12  ;;  %v349_v12 = vld [vmem:[%s8596_s19 + $0x8] sm:$0xff] }
 0xb6f   :  { %v1725_v14 = vmul.f32 1.442695, %v1722_v13  ;;  %v8027_v13 = vpack.c.bf16 %v349_v12, %v348_v11 }
 0xb70   :  { %v1717_v15 = vpop.xlane.xlu1 %1716 }
 0xb71   :  { %8339 = vpow2.f32 %v1725_v14  ;;  %v1721_v16 = vsub.f32 %v1633_v9, %v1717_v15  ;;  %v350_v14 = vld [vmem:[%s8596_s19 + $0x10] sm:$0xff]  ;;  %v351_v15 = vld [vmem:[%s8596_s19 + $0x18] sm:$0xff]  ;;  %s9692_s19 = sld [smem:[#allocation9_spill]] }
 0xb73   :  { %v1723_v17 = vmul.f32 1.442695, %v1721_v16  ;;  %v8030_v16 = vpack.c.bf16 %v351_v15, %v350_v14 }
 0xb74   :  { %v1738_v18 = vpop.permute.xlu1 %1737 }
 0xb75   :  { %8341 = vpow2.f32 %v1723_v17  ;;  %7375 = vmatpush3.msk.msra.mxu0 %vm745_vm6, %v1738_v18 }
 0xb76   :  { %8014 = vmatprep.subr.bf16.mxu0 %v8519_v3 }
 0xb78   :  { %v1896_v40 = vpop.permute.xlu1 %1895 }
 0xb79   :  { %v1916_v43 = vsel %vm564_vm4, %v8881_v56, %v1896_v40  ;;  %v6895_v56 = vld [vmem:[%s8581_s3] ss:$0 sm:$0xff]  ;;  %v358_v40 = vld [vmem:[%s8606_s30 + $0x28] sm:$0xff]  ;;  %s9689_s3 = sld [smem:[#allocation5_spill]] }
 0xb7b   :  { %v8340_v22 = vpop.eup %8339 }
 0xb7c   :  { %v1730_v19 = vsel %vm716_vm5, %v8340_v22, 0.0  ;;  %v1904_v42 = vpop.permute.xlu1 %1903 }
 0xb7d   :  { %1731 = vadd.xlane.f32.xlu0 %v1730_v19  ;;  %v1919_v45 = vsel %vm1917_vm8, %v1916_v43, %v1904_v42  ;;  %v359_v42 = vld [vmem:[%s8606_s30 + $0x30] sm:$0xff]  ;;  %v360_v43 = vld [vmem:[%s8606_s30 + $0x38] sm:$0xff] }
 0xb7f   :  { %v8342_v21 = vpop.eup %8341 }
 0xb80   :  { %v1727_v23 = vsel %vm716_vm5, %v8342_v21, 0.0 }
 0xb81   :  { %1728 = vadd.xlane.f32.xlu0 %v1727_v23 }
 0xb97   :  { %1814 = vrot.lane.b32.xlu0 %v8825_v20, %s8532_s22 }
 0xb9b   :  { %1893 = vrot.lane.b32.xlu0 %v8923_v30, %s8533_s23  ;;  %v341_v30 = vld [vmem:[%s8576_s29] sm:$0xff]  ;;  %s9688_s29 = sld [smem:[#allocation7_spill]] }
 0xb9c   :  { %v8015_v33 = vpack.c.bf16 %v342_v31, %v341_v30 }
 0xb9f   :  { %1901 = vrot.lane.b32.xlu0 %v1478_v4, %s8534_s26 }
 0xc0a   :  { %v1732_v24 = vpop.xlane.xlu0 %1731 }
 0xc0b   :  { %8343 = vrcp.f32 %v1732_v24 }
 0xc0e   :  { %v1729_v25 = vpop.xlane.xlu0 %1728 }
 0xc0f   :  { %8345 = vrcp.f32 %v1729_v25  ;;  %v6896_v25 = vld [vmem:[%s8586_s8] ss:$0 sm:$0xff]  ;;  %s9690_s8 = sld [smem:[#allocation6_spill]] }
 0xc12   :  { %v1815_v26 = vpop.permute.xlu0 %1814 }
 0xc13   :  { %7380 = vmatpush3.msk.msra.mxu1 %vm745_vm6, %v1815_v26 }
 0xc14   :  { %8020 = vmatprep.subr.bf16.mxu1 %v8519_v3 }
 0xc15   :  { %v8344_v27 = vpop.eup %8343 }
 0xc16   :  { %v1736_v20 = vmul.f32 %v8344_v27, %v8340_v22  ;;  %v1894_v41 = vpop.permute.xlu0 %1893  ;;  %v6897_v27 = vld [vmem:[%s8591_s14] ss:$0 sm:$0xff]  ;;  %s9691_s14 = sld [smem:[#allocation8_spill]] }
 0xc17   :  { %v1915_v50 = vsel %vm564_vm4, %v8883_v58, %v1894_v41 }
 0xc18   :  { %7382 = vmatmul.mubr.msk.f32.vlgmr.msra.gmra.mrb[18].mxu1 %vm741_vm7, %v1736_v20 }
 0xc19   :  { %v8346_v28 = vpop.eup %8345  ;;  %7403 = vmatprep.mubr.msk.f32.mxu1 %vm8520_vm2, %v8521_v2  ;;  %8022 = vmatpush3.bf16.msra.mxu1 %v8015_v33 }
 0xc1a   :  { %v1735_v29 = vmul.f32 %v8346_v28, %v8342_v21  ;;  %8023 = vmatprep.subr.bf16.mxu1 %v8519_v3  ;;  %v1902_v48 = vpop.permute.xlu0 %1901 }
 0xc1b   :  { %v1918_v51 = vsel %vm1917_vm8, %v1915_v50, %v1902_v48  ;;  %v362_v48 = vld [vmem:[%s8606_s30 + $0x48] sm:$0xff]  ;;  %v363_v50 = vld [vmem:[%s8606_s30 + $0x50] sm:$0xff] }
 0xc1c   :  { %7377 = vmatmul.mubr.msk.f32.vlgmr.msra.gmra.mrb[18].mxu0 %vm741_vm7, %v1735_v29 }
 0xc1d   :  { %7392 = vmatprep.mubr.msk.f32.mxu0 %vm8520_vm2, %v8521_v2  ;;  %8016 = vmatpush3.bf16.msra.mxu0 %v8015_v33  ;;  %v353_v33 = vld [vmem:[%s8606_s30] sm:$0xff] }
 0xc1e   :  { %8017 = vmatprep.subr.bf16.mxu0 %v8519_v3  ;;  %8025 = vmatpush3.bf16.msra.mxu1 %v8018_v35 }
 0xc1f   :  { %8032 = vmatprep.subr.bf16.mxu1 %v8519_v3 }
 0xc21   :  { %8019 = vmatpush3.bf16.msra.mxu0 %v8018_v35  ;;  %v8039_v35 = vpack.c.bf16 %v354_v34, %v353_v33 }
 0xc22   :  { %8026 = vmatprep.subr.bf16.mxu0 %v8519_v3 }
 0xceb   :  { %v1887_v36 = vpop.f32.mrb[18].mxu1 }
 0xcec   :  { %1911 = vrot.lane.b32.xlu1 %v1887_v36, %s8535_s28  ;;  %v7383_v37 = vpop.f32.mrb[19].mxu1  ;;  %v355_v36 = vld [vmem:[%s8606_s30 + $0x10] sm:$0xff] }
 0xced   :  { %v356_v37 = vld [vmem:[%s8606_s30 + $0x18] sm:$0xff] }
 0xcef   :  { %v1810_v38 = vpop.f32.mrb[18].mxu0 }
 0xcf0   :  { %v7378_v39 = vpop.f32.mrb[19].mxu0  ;;  %1909 = vrot.lane.b32.xlu1 %v1810_v38, %s8535_s28  ;;  %v8042_v38 = vpack.c.bf16 %v356_v37, %v355_v36 }
 0xcf1   :  { %v357_v39 = vld [vmem:[%s8606_s30 + $0x20] sm:$0xff] }
 0xcf2   :  { %v8045_v41 = vpack.c.bf16 %v358_v40, %v357_v39 }
 0xd5e   :  { %v1912_v47 = vpop.permute.xlu1 %1911 }
 0xd5f   :  { %v1922_v49 = vsel %vm1920_vm9, %v1919_v45, %v1912_v47  ;;  %v8048_v45 = vpack.c.bf16 %v360_v43, %v359_v42  ;;  %v361_v47 = vld [vmem:[%s8606_s30 + $0x40] sm:$0xff]  ;;  %v8536_v42 = vmov -1.0  }
 0xd60   :  { %7404 = vmatmul.mubr.msk.f32.vlgmr.msra.gmra.mrb[20].mxu1 %vm414_vm3, %v1922_v49  ;;  %v8051_v49 = vpack.c.bf16 %v362_v48, %v361_v47 }
 0xd61   :  { %7425 = vmatprep.mubr.msk.f32.mxu1 %vm8520_vm2, %v8521_v2  ;;  %8034 = vmatpush3.bf16.msra.mxu1 %v8027_v13 }
 0xd62   :  { %v1910_v52 = vpop.permute.xlu1 %1909  ;;  %8035 = vmatprep.subr.bf16.mxu1 %v8519_v3 }
 0xd63   :  { %v1921_v53 = vsel %vm1920_vm9, %v1918_v51, %v1910_v52  ;;  %v364_v51 = vld [vmem:[%s8606_s30 + $0x58] sm:$0xff] }
 0xd64   :  { %7393 = vmatmul.mubr.msk.f32.vlgmr.msra.gmra.mrb[20].mxu0 %vm414_vm3, %v1921_v53  ;;  %v8054_v52 = vpack.c.bf16 %v364_v51, %v363_v50  ;;  %v365_v53 = vld [vmem:[%s8606_s30 + $0x60] sm:$0xff] }
 0xd65   :  { %7414 = vmatprep.mubr.msk.f32.mxu0 %vm8520_vm2, %v8521_v2  ;;  %8028 = vmatpush3.bf16.msra.mxu0 %v8027_v13 }
 0xd66   :  { %8029 = vmatprep.subr.bf16.mxu0 %v8519_v3  ;;  %8037 = vmatpush3.bf16.msra.mxu1 %v8030_v16 }
 0xd67   :  { %8062 = vmatprep.subr.bf16.mxu1 %v8519_v3 }
 0xd69   :  { %8031 = vmatpush3.bf16.msra.mxu0 %v8030_v16 }
 0xd6a   :  { %8038 = vmatprep.subr.bf16.mxu0 %v8519_v3 }
 0xe33   :  { %v2065_v54 = vpop.f32.mrb[20].mxu1 }
 0xe34   :  { %v2070_v55 = vadd.f32 %v2065_v54, %v8793_v44  ;;  %v7405_v57 = vpop.f32.mrb[21].mxu1 }
 0xe35   :  { %v368_v57 = vld [vmem:[%s8606_s30 + $0x78] sm:$0xff] }
 0xe36   :  { %v9011_v59 = vadd.f32 %v6895_v56, %v2070_v55  ;;  %v367_v55 = vld [vmem:[%s8606_s30 + $0x70] sm:$0xff] }
 0xe37   :  { %v1992_v58 = vpop.f32.mrb[20].mxu0 }
 0xe38   :  { %v2069_v60 = vadd.f32 %v1992_v58, %v8795_v46  ;;  %v7394_v61 = vpop.f32.mrb[21].mxu0  ;;  %v2082_v62 = vsel %vm370_vm1, %v9011_v59, 0.0  ;;  %v8060_v58 = vpack.c.bf16 %v368_v57, %v367_v55  ;;  %v6901_v57 = vld [vmem:[%s8611_s6] ss:$0 sm:$0xff]  ;;  %s9695_s6 = sld [smem:[#allocation11_spill]] }
 0xe39   :  { %2083 = vadd.xlane.f32.xlu0 %v2082_v62 }
 0xe3a   :  { %v9016_v63 = vadd.f32 %v6895_v56, %v2069_v60  ;;  %v366_v56 = vld [vmem:[%s8606_s30 + $0x68] sm:$0xff]  ;;  %v6898_v60 = vld [vmem:[%s8601_s24] ss:$0 sm:$0xff]  ;;  %s9693_s24 = sld [smem:[#allocation12_spill]]  ;;  %s9694_s30 = sld [smem:[#allocation10_spill]] }
 0xe3b   :  { %v8057_v54 = vpack.c.bf16 %v366_v56, %v365_v53 }
 0xe3c   :  { %v2079_v0 = vsel %vm370_vm1, %v9016_v63, 0.0 }
 0xe3d   :  { %2080 = vadd.xlane.f32.xlu1 %v2079_v0 }
 0xec6   :  { %v2084_v44 = vpop.xlane.xlu0 %2083 }
 0xec7   :  { %v2086_v1 = vmul.f32 0.03125, %v2084_v44 }
 0xec9   :  { %v2088_v4 = vsub.f32 %v9011_v59, %v2086_v1 }
 0xeca   :  { %v2081_v5 = vpop.xlane.xlu1 %2080 }
 0xecb   :  { %v2085_v46 = vmul.f32 0.03125, %v2081_v5  ;;  %v2090_v6 = vmul.f32 %v2088_v4, %v2088_v4 }
 0xecd   :  { %v2087_v7 = vsub.f32 %v9016_v63, %v2085_v46  ;;  %v2094_v8 = vsel %vm370_vm1, %v2090_v6, 0.0 }
 0xece   :  { %2095 = vadd.xlane.f32.xlu0 %v2094_v8 }
 0xecf   :  { %v2089_v9 = vmul.f32 %v2087_v7, %v2087_v7 }
 0xed1   :  { %v2091_v10 = vsel %vm370_vm1, %v2089_v9, 0.0 }
 0xed2   :  { %2092 = vadd.xlane.f32.xlu0 %v2091_v10 }
 0xf5b   :  { %v2096_v17 = vpop.xlane.xlu0 %2095 }
 0xf5c   :  { %v2098_v18 = vmul.f32 0.03125, %v2096_v17 }
 0xf5e   :  { %v2100_v22 = vadd.f32 1e-05, %v2098_v18 }
 0xf5f   :  { %v2093_v19 = vpop.xlane.xlu0 %2092 }
 0xf60   :  { %8347 = vrsqrt.f32 %v2100_v22  ;;  %v2097_v21 = vmul.f32 0.03125, %v2093_v19 }
 0xf62   :  { %v2099_v23 = vadd.f32 1e-05, %v2097_v21 }
 0xf64   :  { %8349 = vrsqrt.f32 %v2099_v23 }
 0xf6a   :  { %v8348_v24 = vpop.eup %8347 }
 0xf6b   :  { %v2104_v26 = vmul.f32 %v8348_v24, %v2088_v4 }
 0xf6d   :  { %v2112_v20 = vmul.f32 %v6896_v25, %v2104_v26 }
 0xf6e   :  { %v8350_v28 = vpop.eup %8349 }
 0xf6f   :  { %v2103_v29 = vmul.f32 %v8350_v28, %v2087_v7  ;;  %v2120_v30 = vadd.f32 %v6897_v27, %v2112_v20 }
 0xf71   :  { %7426 = vmatmul.mubr.msk.f32.vlgmr.msra.gmra.mrb[22].mxu1 %vm414_vm3, %v2120_v30  ;;  %v2111_v31 = vmul.f32 %v6896_v25, %v2103_v29 }
 0xf72   :  { %7495 = vmatprep.mubr.msk.f32.mxu1 %vm8520_vm2, %v8521_v2  ;;  %8064 = vmatpush3.bf16.msra.mxu1 %v8039_v35 }
 0xf73   :  { %v2119_v32 = vadd.f32 %v6897_v27, %v2111_v31  ;;  %8065 = vmatprep.subr.bf16.mxu1 %v8519_v3 }
 0xf75   :  { %7415 = vmatmul.mubr.msk.f32.vlgmr.msra.gmra.mrb[22].mxu0 %vm414_vm3, %v2119_v32 }
 0xf76   :  { %7460 = vmatprep.mubr.msk.f32.mxu0 %vm8520_vm2, %v8521_v2  ;;  %8040 = vmatpush3.bf16.msra.mxu0 %v8039_v35 }
 0xf77   :  { %8041 = vmatprep.subr.bf16.mxu0 %v8519_v3  ;;  %8067 = vmatpush3.bf16.msra.mxu1 %v8042_v38 }
 0xf78   :  { %8068 = vmatprep.subr.bf16.mxu1 %v8519_v3 }
 0xf7a   :  { %8043 = vmatpush3.bf16.msra.mxu0 %v8042_v38 }
 0xf7b   :  { %8044 = vmatprep.subr.bf16.mxu0 %v8519_v3  ;;  %8070 = vmatpush3.bf16.msra.mxu1 %v8045_v41 }
 0xf7c   :  { %8071 = vmatprep.subr.bf16.mxu1 %v8519_v3 }
 0xf7e   :  { %8046 = vmatpush3.bf16.msra.mxu0 %v8045_v41 }
 0xf7f   :  { %8047 = vmatprep.subr.bf16.mxu0 %v8519_v3  ;;  %8073 = vmatpush3.bf16.msra.mxu1 %v8048_v45 }
 0xf80   :  { %8074 = vmatprep.subr.bf16.mxu1 %v8519_v3 }
 0xf82   :  { %8049 = vmatpush3.bf16.msra.mxu0 %v8048_v45 }
 0xf83   :  { %8050 = vmatprep.subr.bf16.mxu0 %v8519_v3  ;;  %8076 = vmatpush3.bf16.msra.mxu1 %v8051_v49 }
 0xf84   :  { %8077 = vmatprep.subr.bf16.mxu1 %v8519_v3 }
 0xf86   :  { %8052 = vmatpush3.bf16.msra.mxu0 %v8051_v49 }
 0xf87   :  { %8053 = vmatprep.subr.bf16.mxu0 %v8519_v3  ;;  %8079 = vmatpush3.bf16.msra.mxu1 %v8054_v52 }
 0xf88   :  { %8080 = vmatprep.subr.bf16.mxu1 %v8519_v3 }
 0xf8a   :  { %8055 = vmatpush3.bf16.msra.mxu0 %v8054_v52 }
 0xf8b   :  { %8056 = vmatprep.subr.bf16.mxu0 %v8519_v3  ;;  %8082 = vmatpush3.bf16.msra.mxu1 %v8057_v54 }
 0xf8c   :  { %8083 = vmatprep.subr.bf16.mxu1 %v8519_v3 }
 0xf8e   :  { %8058 = vmatpush3.bf16.msra.mxu0 %v8057_v54 }
 0xf8f   :  { %8059 = vmatprep.subr.bf16.mxu0 %v8519_v3  ;;  %8085 = vmatpush3.bf16.msra.mxu1 %v8060_v58 }
 0xf90   :  { %8092 = vmatprep.subr.bf16.mxu1 %v8519_v3 }
 0xf92   :  { %8061 = vmatpush3.bf16.msra.mxu0 %v8060_v58 }
 0xf93   :  { %8086 = vmatprep.subr.bf16.mxu0 %v8519_v3 }
0x1044   :  { %v2269_v61 = vpop.f32.mrb[22].mxu1 }
0x1045   :  { %v2270_v62 = vadd.f32 %v6898_v60, %v2269_v61  ;;  %v7427_v0 = vpop.f32.mrb[23].mxu1 }
0x1047   :  { %v2276_v44 = vmul.f32 0.70710677, %v2270_v62  ;;  %v2274_v48 = vmul.f32 0.5, %v2270_v62 }
0x1048   :  { %v2196_v1 = vpop.f32.mrb[22].mxu0 }
0x1049   :  { %v2282_v4 = vand.u32 2147483647, %v2276_v44  ;;  %v2197_v5 = vadd.f32 %v6898_v60, %v2196_v1  ;;  %v7416_v46 = vpop.f32.mrb[23].mxu0  ;;  %vm2278_vm10 = vcmp.ge.f32.partialorder %v2276_v44, 0.0 }
0x104a   :  { %v2280_v43 = vsel %vm2278_vm10, 1.0, %v8536_v42 }
0x104b   :  { %v2284_v6 = vmul.f32 0.3275911, %v2282_v4  ;;  %v2275_v7 = vmul.f32 0.70710677, %v2197_v5  ;;  %v2310_v12 = vmul.f32 %v2282_v4, %v2282_v4  ;;  %v2273_v56 = vmul.f32 0.5, %v2197_v5 }
0x104d   :  { %v2286_v8 = vadd.f32 1.0, %v2284_v6  ;;  %v2281_v9 = vand.u32 2147483647, %v2275_v7  ;;  %v2312_v14 = vsub.f32 0.0, %v2310_v12  ;;  %vm2277_vm11 = vcmp.ge.f32.partialorder %v2275_v7, 0.0 }
0x104e   :  { %v2279_v51 = vsel %vm2277_vm11, 1.0, %v8536_v42 }
0x104f   :  { %8351 = vrcp.f32 %v2286_v8  ;;  %v2283_v10 = vmul.f32 0.3275911, %v2281_v9  ;;  %v2309_v15 = vmul.f32 %v2281_v9, %v2281_v9  ;;  %v2315_v22 = vmul.f32 1.442695, %v2312_v14  ;;  %v2479_v14 = vld [vmem:[%s9688_s29] sm:$0xff] }
0x1051   :  { %v2285_v11 = vadd.f32 1.0, %v2283_v10  ;;  %v2311_v19 = vsub.f32 0.0, %v2309_v15  ;;  %v2480_v15 = vld [vmem:[%s9688_s29 + $0x8] sm:$0xff] }
0x1053   :  { %8353 = vrcp.f32 %v2285_v11  ;;  %v2313_v26 = vmul.f32 1.442695, %v2311_v19 }
0x1054   :  { %8355 = vpow2.f32 %v2315_v22 }
0x1055   :  { %8357 = vpow2.f32 %v2313_v26 }
0x1059   :  { %v8352_v13 = vpop.eup %8351 }
0x105a   :  { %v2292_v16 = vmul.f32 1.0614054, %v8352_v13 }
0x105c   :  { %v2294_v17 = vadd.f32 -1.4531521, %v2292_v16  ;;  %v8087_v16 = vpack.c.bf16 %v2480_v15, %v2479_v14 }
0x105d   :  { %v8354_v18 = vpop.eup %8353 }
0x105e   :  { %v2296_v21 = vmul.f32 %v8352_v13, %v2294_v17  ;;  %v2291_v23 = vmul.f32 1.0614054, %v8354_v18  ;;  %v8356_v36 = vpop.eup %8355  ;;  %v2481_v17 = vld [vmem:[%s9688_s29 + $0x10] sm:$0xff] }
0x105f   :  { %v8358_v41 = vpop.eup %8357 }
0x1060   :  { %v2298_v24 = vadd.f32 1.4214138, %v2296_v21  ;;  %v2293_v25 = vadd.f32 -1.4531521, %v2291_v23 }
0x1062   :  { %v2300_v27 = vmul.f32 %v8352_v13, %v2298_v24  ;;  %v2295_v20 = vmul.f32 %v8354_v18, %v2293_v25 }
0x1064   :  { %v2302_v28 = vadd.f32 -0.28449672, %v2300_v27  ;;  %v2297_v29 = vadd.f32 1.4214138, %v2295_v20  ;;  %v6902_v20 = vld [vmem:[%s9689_s3] ss:$0 sm:$0xff] }
0x1066   :  { %v2304_v30 = vmul.f32 %v8352_v13, %v2302_v28  ;;  %v2299_v31 = vmul.f32 %v8354_v18, %v2297_v29  ;;  %v6903_v29 = vld [vmem:[%s9690_s8] ss:$0 sm:$0xff] }
0x1068   :  { %v2306_v32 = vadd.f32 0.2548296, %v2304_v30  ;;  %v2301_v33 = vadd.f32 -0.28449672, %v2299_v31 }
0x106a   :  { %v2308_v34 = vmul.f32 %v8352_v13, %v2306_v32  ;;  %v2303_v35 = vmul.f32 %v8354_v18, %v2301_v33 }
0x106c   :  { %v2318_v37 = vmul.f32 %v8356_v36, %v2308_v34  ;;  %v2305_v38 = vadd.f32 0.2548296, %v2303_v35 }
0x106e   :  { %v2320_v39 = vsub.f32 1.0, %v2318_v37  ;;  %v2307_v40 = vmul.f32 %v8354_v18, %v2305_v38  ;;  %v2482_v18 = vld [vmem:[%s9688_s29 + $0x18] sm:$0xff]  ;;  %s9701_s29 = sld [smem:[#allocation17_spill]] }
0x106f   :  { %v8090_v22 = vpack.c.bf16 %v2482_v18, %v2481_v17 }
0x1070   :  { %v2322_v45 = vmul.f32 %v2320_v39, %v2280_v43  ;;  %v2317_v47 = vmul.f32 %v8358_v41, %v2307_v40 }
0x1072   :  { %v2324_v49 = vadd.f32 1.0, %v2322_v45  ;;  %v2319_v50 = vsub.f32 1.0, %v2317_v47 }
0x1074   :  { %v2326_v52 = vmul.f32 %v2324_v49, %v2274_v48  ;;  %v2321_v53 = vmul.f32 %v2319_v50, %v2279_v51 }
0x1076   :  { %v2323_v54 = vadd.f32 1.0, %v2321_v53  ;;  %7496 = vmatmul.mubr.f32.vlgmr.msra.gmra.mrb[24].mxu1 %v2326_v52 }
0x1077   :  { %7517 = vmatprep.mubr.msk.f32.mxu1 %vm8520_vm2, %v8521_v2  ;;  %8094 = vmatpush3.bf16.msra.mxu1 %v8087_v16 }
0x1078   :  { %v2325_v55 = vmul.f32 %v2323_v54, %v2273_v56  ;;  %8095 = vmatprep.subr.bf16.mxu1 %v8519_v3 }
0x107a   :  { %7461 = vmatmul.mubr.f32.vlgmr.msra.gmra.mrb[24].mxu0 %v2325_v55 }
0x107b   :  { %7506 = vmatprep.mubr.msk.f32.mxu0 %vm8520_vm2, %v8521_v2  ;;  %8088 = vmatpush3.bf16.msra.mxu0 %v8087_v16 }
0x107c   :  { %8089 = vmatprep.subr.bf16.mxu0 %v8519_v3  ;;  %8097 = vmatpush3.bf16.msra.mxu1 %v8090_v22 }
0x107d   :  { %7525 = vmatprep.subr.mxu1 %v8521_v2 }
0x107f   :  { %8091 = vmatpush3.bf16.msra.mxu0 %v8090_v22 }
0x1080   :  { %7520 = vmatprep.subr.mxu0 %v8521_v2 }
0x1149   :  { %v2463_v58 = vpop.f32.mrb[24].mxu1 }
0x114a   :  { %v2468_v60 = vadd.f32 %v2463_v58, %v9011_v59  ;;  %v7497_v61 = vpop.f32.mrb[25].mxu1 }
0x114c   :  { %v9081_v62 = vadd.f32 %v6901_v57, %v2468_v60 }
0x114d   :  { %v2393_v0 = vpop.f32.mrb[24].mxu0 }
0x114e   :  { %v2467_v44 = vadd.f32 %v2393_v0, %v9016_v63  ;;  %v7462_v1 = vpop.f32.mrb[25].mxu0  ;;  %v2515_v4 = vsel %vm370_vm1, %v9081_v62, 0.0 }
0x114f   :  { %2516 = vadd.xlane.f32.xlu0 %v2515_v4 }
0x1150   :  { %v9086_v5 = vadd.f32 %v6901_v57, %v2467_v44 }
0x1152   :  { %v2512_v46 = vsel %vm370_vm1, %v9086_v5, 0.0 }
0x1153   :  { %2513 = vadd.xlane.f32.xlu1 %v2512_v46 }
0x11dc   :  { %v2517_v59 = vpop.xlane.xlu0 %2516 }
0x11dd   :  { %v2519_v6 = vmul.f32 0.03125, %v2517_v59 }
0x11df   :  { %v2521_v7 = vsub.f32 %v9081_v62, %v2519_v6 }
0x11e0   :  { %v2514_v8 = vpop.xlane.xlu1 %2513 }
0x11e1   :  { %v2518_v63 = vmul.f32 0.03125, %v2514_v8  ;;  %v2523_v9 = vmul.f32 %v2521_v7, %v2521_v7 }
0x11e3   :  { %v2520_v10 = vsub.f32 %v9086_v5, %v2518_v63  ;;  %v2527_v11 = vsel %vm370_vm1, %v2523_v9, 0.0 }
0x11e4   :  { %2528 = vadd.xlane.f32.xlu0 %v2527_v11 }
0x11e5   :  { %v2522_v12 = vmul.f32 %v2520_v10, %v2520_v10 }
0x11e7   :  { %v2524_v13 = vsel %vm370_vm1, %v2522_v12, 0.0 }
0x11e8   :  { %2525 = vadd.xlane.f32.xlu1 %v2524_v13 }
0x1271   :  { %v2529_v19 = vpop.xlane.xlu0 %2528 }
0x1272   :  { %v2531_v21 = vmul.f32 0.03125, %v2529_v19 }
0x1274   :  { %v2533_v23 = vadd.f32 1e-05, %v2531_v21 }
0x1275   :  { %v2526_v24 = vpop.xlane.xlu1 %2525 }
0x1276   :  { %8359 = vrsqrt.f32 %v2533_v23  ;;  %v2530_v25 = vmul.f32 0.03125, %v2526_v24 }
0x1278   :  { %v2532_v26 = vadd.f32 1e-05, %v2530_v25 }
0x127a   :  { %8361 = vrsqrt.f32 %v2532_v26 }
0x1280   :  { %v8360_v27 = vpop.eup %8359 }
0x1281   :  { %v2537_v28 = vmul.f32 %v8360_v27, %v2521_v7 }
0x1283   :  { %v2545_v30 = vmul.f32 %v6902_v20, %v2537_v28 }
0x1284   :  { %v8362_v31 = vpop.eup %8361 }
0x1285   :  { %v2536_v32 = vmul.f32 %v8362_v31, %v2520_v10  ;;  %v2553_v33 = vadd.f32 %v6903_v29, %v2545_v30 }
0x1287   :  { %7518 = vmatmul.mubr.msk.f32.vlgmr.msra.gmra.mrb[26].mxu1 %vm414_vm3, %v2553_v33  ;;  %v2544_v34 = vmul.f32 %v6902_v20, %v2536_v32 }
0x1288   :  { %7527 = vmatprep.mubr.msk.f32.mxu1 %vm8520_vm2, %v8521_v2 }
0x1289   :  { %v2552_v35 = vadd.f32 %v6903_v29, %v2544_v34 }
0x128b   :  { %7507 = vmatmul.mubr.msk.f32.vlgmr.msra.gmra.mrb[26].mxu0 %vm414_vm3, %v2552_v35 }
0x128c   :  { %7522 = vmatprep.mubr.msk.f32.mxu0 %vm8520_vm2, %v8521_v2 }
0x135a   :  { %v9110_v36 = vpop.f32.mrb[26].mxu1 }
0x135b   :  { %2778 = vrot.lane.b32.xlu0 %v9110_v36, %s8522_s0  ;;  %v7519_v37 = vpop.f32.mrb[27].mxu1 }
0x135e   :  { %v9114_v38 = vpop.f32.mrb[26].mxu0 }
0x135f   :  { %2701 = vrot.lane.b32.xlu1 %v9114_v38, %s8522_s0  ;;  %v7508_v39 = vpop.f32.mrb[27].mxu0 }
0x13cd   :  { %v2779_v40 = vpop.permute.xlu0 %2778 }
0x13ce   :  { %7526 = vmatpush3.xpose.msk.msra.mxu1 %vm564_vm4, %v2779_v40 }
0x13cf   :  { %7535 = vmatprep.subr.mxu1 %v8521_v2 }
0x13d1   :  { %v2702_v41 = vpop.permute.xlu1 %2701  ;;  %7528 = vmatmul.mubr.msk.f32.vlgmr.msra.gmra.mrb[28].mxu1 %vm564_vm4, %v9110_v36 }
0x13d2   :  { %7521 = vmatpush3.xpose.msk.msra.mxu0 %vm564_vm4, %v2702_v41  ;;  %7537 = vmatprep.mubr.msk.f32.mxu1 %vm8520_vm2, %v8521_v2 }
0x13d3   :  { %7530 = vmatprep.subr.mxu0 %v8521_v2 }
0x13d5   :  { %7523 = vmatmul.mubr.msk.f32.vlgmr.msra.gmra.mrb[28].mxu0 %vm564_vm4, %v9114_v38 }
0x13d6   :  { %7532 = vmatprep.mubr.msk.f32.mxu0 %vm8520_vm2, %v8521_v2 }
0x14a4   :  { %v2850_v43 = vpop.f32.mrb[28].mxu1 }
0x14a5   :  { %v7529_v45 = vpop.f32.mrb[29].mxu1  ;;  %v2857_v47 = vsel %vm716_vm5, %v2850_v43, -inf }
0x14a6   :  { %2858 = vmax.xlane.f32.xlu1 %v2857_v47 }
0x14a8   :  { %v2773_v48 = vpop.f32.mrb[28].mxu0 }
0x14a9   :  { %v7524_v49 = vpop.f32.mrb[29].mxu0  ;;  %v2854_v50 = vsel %vm716_vm5, %v2773_v48, -inf }
0x14aa   :  { %2855 = vmax.xlane.f32.xlu0 %v2854_v50 }
0x14b7   :  { %2876 = vrot.lane.b32.xlu1 %v9114_v38, %s8523_s5 }
0x14bb   :  { %3110 = vrot.lane.b32.xlu1 %v9110_v36, %s8524_s9 }
0x14bf   :  { %3032 = vrot.lane.b32.xlu1 %v9114_v38, %s8524_s9 }
0x14c0   :  { %2953 = vrot.lane.b32.xlu0 %v9110_v36, %s8523_s5 }
0x1533   :  { %v2859_v51 = vpop.xlane.xlu1 %2858 }
0x1534   :  { %v2861_v52 = vsub.f32 %v2850_v43, %v2859_v51 }
0x1536   :  { %v2864_v53 = vmul.f32 1.442695, %v2861_v52 }
0x1537   :  { %v2856_v56 = vpop.xlane.xlu0 %2855  ;;  %v2877_v54 = vpop.permute.xlu1 %2876 }
0x1538   :  { %8363 = vpow2.f32 %v2864_v53  ;;  %v2860_v55 = vsub.f32 %v2773_v48, %v2856_v56  ;;  %7531 = vmatpush3.msk.msra.mxu0 %vm745_vm6, %v2877_v54 }
0x1539   :  { %7540 = vmatprep.subr.mxu0 %v8521_v2 }
0x153a   :  { %v2862_v57 = vmul.f32 1.442695, %v2860_v55 }
0x153b   :  { %v2954_v58 = vpop.permute.xlu0 %2953  ;;  %v3111_v1 = vpop.permute.xlu1 %3110 }
0x153c   :  { %8365 = vpow2.f32 %v2862_v57  ;;  %7536 = vmatpush3.msk.msra.mxu1 %vm745_vm6, %v2954_v58 }
0x153d   :  { %7545 = vmatprep.subr.mxu1 %v8521_v2 }
0x153f   :  { %v3033_v4 = vpop.permute.xlu1 %3032 }
0x1542   :  { %v8364_v60 = vpop.eup %8363 }
0x1543   :  { %v2869_v61 = vsel %vm716_vm5, %v8364_v60, 0.0 }
0x1544   :  { %2870 = vadd.xlane.f32.xlu0 %v2869_v61 }
0x1546   :  { %v8366_v0 = vpop.eup %8365 }
0x1547   :  { %v2866_v44 = vsel %vm716_vm5, %v8366_v0, 0.0 }
0x1548   :  { %2867 = vadd.xlane.f32.xlu1 %v2866_v44 }
0x1559   :  { %3030 = vrot.lane.b32.xlu1 %v9114_v38, %s8525_s13 }
0x155a   :  { %3108 = vrot.lane.b32.xlu0 %v9110_v36, %s8525_s13 }
0x15d1   :  { %v2871_v46 = vpop.xlane.xlu0 %2870 }
0x15d2   :  { %8367 = vrcp.f32 %v2871_v46 }
0x15d5   :  { %v2868_v59 = vpop.xlane.xlu1 %2867  ;;  %v3109_v9 = vpop.permute.xlu0 %3108 }
0x15d6   :  { %8369 = vrcp.f32 %v2868_v59 }
0x15d9   :  { %v3031_v10 = vpop.permute.xlu1 %3030 }
0x15dc   :  { %v8368_v6 = vpop.eup %8367 }
0x15dd   :  { %v2875_v7 = vmul.f32 %v8368_v6, %v8364_v60 }
0x15df   :  { %7538 = vmatmul.mubr.msk.f32.vlgmr.msra.gmra.mrb[30].mxu1 %vm741_vm7, %v2875_v7 }
0x15e0   :  { %v8370_v8 = vpop.eup %8369  ;;  %7546 = vmatpush3.xpose.msk.msra.mxu1 %vm564_vm4, %v3111_v1  ;;  %7547 = vmatprep.mubr.msk.f32.mxu1 %vm8520_vm2, %v8521_v2 }
0x15e1   :  { %v2874_v63 = vmul.f32 %v8370_v8, %v8366_v0  ;;  %7555 = vmatprep.subr.mxu1 %v8521_v2 }
0x15e3   :  { %7533 = vmatmul.mubr.msk.f32.vlgmr.msra.gmra.mrb[30].mxu0 %vm741_vm7, %v2874_v63  ;;  %7548 = vmatmul.mubr.msk.f32.vlgmr.msra.gmra.mrb[32].mxu1 %vm564_vm4, %v3109_v9 }
0x15e4   :  { %7541 = vmatpush3.xpose.msk.msra.mxu0 %vm564_vm4, %v3033_v4  ;;  %7542 = vmatprep.mubr.msk.f32.mxu0 %vm8520_vm2, %v8521_v2 }
0x15e5   :  { %7550 = vmatprep.subr.mxu0 %v8521_v2  ;;  %7557 = vmatprep.mubr.msk.f32.mxu1 %vm8520_vm2, %v8521_v2 }
0x15e7   :  { %7543 = vmatmul.mubr.msk.f32.vlgmr.msra.gmra.mrb[32].mxu0 %vm564_vm4, %v3031_v10 }
0x15e8   :  { %7552 = vmatprep.mubr.msk.f32.mxu0 %vm8520_vm2, %v8521_v2 }
0x16b2   :  { %v9166_v11 = vpop.f32.mrb[30].mxu1 }
0x16b3   :  { %v7539_v12 = vpop.f32.mrb[31].mxu1 }
0x16b6   :  { %v9168_v13 = vpop.f32.mrb[30].mxu0  ;;  %v3182_v14 = vpop.f32.mrb[32].mxu1 }
0x16b7   :  { %v7534_v15 = vpop.f32.mrb[31].mxu0  ;;  %v7549_v16 = vpop.f32.mrb[33].mxu1  ;;  %v3189_v17 = vsel %vm716_vm5, %v3182_v14, -inf }
0x16b8   :  { %3190 = vmax.xlane.f32.xlu0 %v3189_v17 }
0x16ba   :  { %v3104_v18 = vpop.f32.mrb[32].mxu0 }
0x16bb   :  { %v7544_v22 = vpop.f32.mrb[33].mxu0  ;;  %v3186_v19 = vsel %vm716_vm5, %v3104_v18, -inf }
0x16bc   :  { %3187 = vmax.xlane.f32.xlu1 %v3186_v19 }
0x16cd   :  { %3208 = vrot.lane.b32.xlu1 %v9114_v38, %s8526_s17 }
0x16ce   :  { %3285 = vrot.lane.b32.xlu0 %v9110_v36, %s8526_s17 }
0x16d1   :  { %3442 = vrot.lane.b32.xlu1 %v9110_v36, %s8527_s21 }
0x16d5   :  { %3364 = vrot.lane.b32.xlu1 %v9114_v38, %s8527_s21 }
0x16d9   :  { %3362 = vrot.lane.b32.xlu1 %v9114_v38, %s8528_s25 }
0x1745   :  { %v3191_v21 = vpop.xlane.xlu0 %3190 }
0x1746   :  { %v3193_v23 = vsub.f32 %v3182_v14, %v3191_v21 }
0x1748   :  { %v3196_v24 = vmul.f32 1.442695, %v3193_v23 }
0x1749   :  { %v3188_v25 = vpop.xlane.xlu1 %3187  ;;  %v3286_v26 = vpop.permute.xlu0 %3285 }
0x174a   :  { %8371 = vpow2.f32 %v3196_v24  ;;  %v3192_v27 = vsub.f32 %v3104_v18, %v3188_v25  ;;  %7556 = vmatpush3.msk.msra.mxu1 %vm745_vm6, %v3286_v26 }
0x174b   :  { %7565 = vmatprep.subr.mxu1 %v8521_v2 }
0x174c   :  { %v3194_v20 = vmul.f32 1.442695, %v3192_v27 }
0x174d   :  { %v3209_v28 = vpop.permute.xlu1 %3208 }
0x174e   :  { %8373 = vpow2.f32 %v3194_v20  ;;  %7551 = vmatpush3.msk.msra.mxu0 %vm745_vm6, %v3209_v28 }
0x174f   :  { %7560 = vmatprep.subr.mxu0 %v8521_v2 }
0x1751   :  { %v3443_v35 = vpop.permute.xlu1 %3442 }
0x1754   :  { %v8372_v29 = vpop.eup %8371 }
0x1755   :  { %v3201_v30 = vsel %vm716_vm5, %v8372_v29, 0.0  ;;  %v3365_v41 = vpop.permute.xlu1 %3364 }
0x1756   :  { %3202 = vadd.xlane.f32.xlu0 %v3201_v30 }
0x1758   :  { %v8374_v31 = vpop.eup %8373 }
0x1759   :  { %v3198_v32 = vsel %vm716_vm5, %v8374_v31, 0.0  ;;  %v3363_v47 = vpop.permute.xlu1 %3362 }
0x175a   :  { %3199 = vadd.xlane.f32.xlu0 %v3198_v32 }
0x1770   :  { %3440 = vrot.lane.b32.xlu0 %v9110_v36, %s8528_s25 }
0x17e3   :  { %v3203_v33 = vpop.xlane.xlu0 %3202 }
0x17e4   :  { %8375 = vrcp.f32 %v3203_v33 }
0x17e7   :  { %v3200_v34 = vpop.xlane.xlu0 %3199 }
0x17e8   :  { %8377 = vrcp.f32 %v3200_v34 }
0x17eb   :  { %v3441_v45 = vpop.permute.xlu0 %3440 }
0x17ee   :  { %v8376_v37 = vpop.eup %8375 }
0x17ef   :  { %v3207_v39 = vmul.f32 %v8376_v37, %v8372_v29 }
0x17f1   :  { %7558 = vmatmul.mubr.msk.f32.vlgmr.msra.gmra.mrb[34].mxu1 %vm741_vm7, %v3207_v39 }
0x17f2   :  { %v8378_v40 = vpop.eup %8377  ;;  %7566 = vmatpush3.xpose.msk.msra.mxu1 %vm564_vm4, %v3443_v35  ;;  %7567 = vmatprep.mubr.msk.f32.mxu1 %vm8520_vm2, %v8521_v2 }
0x17f3   :  { %v3206_v43 = vmul.f32 %v8378_v40, %v8374_v31  ;;  %7575 = vmatprep.subr.mxu1 %v8521_v2 }
0x17f5   :  { %7553 = vmatmul.mubr.msk.f32.vlgmr.msra.gmra.mrb[34].mxu0 %vm741_vm7, %v3206_v43  ;;  %7568 = vmatmul.mubr.msk.f32.vlgmr.msra.gmra.mrb[36].mxu1 %vm564_vm4, %v3441_v45 }
0x17f6   :  { %7561 = vmatpush3.xpose.msk.msra.mxu0 %vm564_vm4, %v3365_v41  ;;  %7562 = vmatprep.mubr.msk.f32.mxu0 %vm8520_vm2, %v8521_v2 }
0x17f7   :  { %7570 = vmatprep.subr.mxu0 %v8521_v2  ;;  %7577 = vmatprep.mubr.msk.f32.mxu1 %vm8520_vm2, %v8521_v2 }
0x17f9   :  { %7563 = vmatmul.mubr.msk.f32.vlgmr.msra.gmra.mrb[36].mxu0 %vm564_vm4, %v3363_v47 }
0x17fa   :  { %7572 = vmatprep.mubr.msk.f32.mxu0 %vm8520_vm2, %v8521_v2 }
0x18c4   :  { %v9206_v48 = vpop.f32.mrb[34].mxu1 }
0x18c5   :  { %v7559_v49 = vpop.f32.mrb[35].mxu1 }
0x18c8   :  { %v9208_v50 = vpop.f32.mrb[34].mxu0  ;;  %v3514_v51 = vpop.f32.mrb[36].mxu1 }
0x18c9   :  { %v7554_v52 = vpop.f32.mrb[35].mxu0  ;;  %v7569_v53 = vpop.f32.mrb[37].mxu1  ;;  %v3521_v56 = vsel %vm716_vm5, %v3514_v51, -inf }
0x18ca   :  { %3522 = vmax.xlane.f32.xlu0 %v3521_v56  ;;  %v2484_v52 = vld [vmem:[%s9691_s14 + $0x8] sm:$0xff]  ;;  %v2485_v53 = vld [vmem:[%s9691_s14 + $0x10] sm:$0xff] }
0x18cc   :  { %v3436_v54 = vpop.f32.mrb[36].mxu0 }
0x18cd   :  { %v7564_v55 = vpop.f32.mrb[37].mxu0  ;;  %v3518_v57 = vsel %vm716_vm5, %v3436_v54, -inf }
0x18ce   :  { %3519 = vmax.xlane.f32.xlu1 %v3518_v57 }
0x18df   :  { %3540 = vrot.lane.b32.xlu1 %v9114_v38, %s8529_s15 }
0x18e0   :  { %3617 = vrot.lane.b32.xlu0 %v9110_v36, %s8529_s15 }
0x18e3   :  { %3774 = vrot.lane.b32.xlu1 %v9110_v36, %s8530_s16 }
0x18e7   :  { %3696 = vrot.lane.b32.xlu1 %v9114_v38, %s8530_s16 }
0x18eb   :  { %3694 = vrot.lane.b32.xlu1 %v9114_v38, %s8531_s18 }
0x1957   :  { %v3523_v58 = vpop.xlane.xlu0 %3522 }
0x1958   :  { %v3525_v60 = vsub.f32 %v3514_v51, %v3523_v58  ;;  %v2483_v51 = vld [vmem:[%s9691_s14] sm:$0xff] }
0x1959   :  { %v8099_v56 = vpack.c.bf16 %v2484_v52, %v2483_v51 }
0x195a   :  { %v3528_v61 = vmul.f32 1.442695, %v3525_v60 }
0x195b   :  { %v3520_v0 = vpop.xlane.xlu1 %3519  ;;  %v3618_v44 = vpop.permute.xlu0 %3617 }
0x195c   :  { %8379 = vpow2.f32 %v3528_v61  ;;  %v3524_v1 = vsub.f32 %v3436_v54, %v3520_v0  ;;  %7576 = vmatpush3.msk.msra.mxu1 %vm745_vm6, %v3618_v44  ;;  %v2486_v54 = vld [vmem:[%s9691_s14 + $0x18] sm:$0xff] }
0x195d   :  { %7585 = vmatprep.subr.mxu1 %v8521_v2  ;;  %v8102_v55 = vpack.c.bf16 %v2486_v54, %v2485_v53  ;;  %v2495_v54 = vld [vmem:[%s9696_s1] sm:$0xff] }
0x195e   :  { %v3526_v4 = vmul.f32 1.442695, %v3524_v1 }
0x195f   :  { %v3541_v46 = vpop.permute.xlu1 %3540 }
0x1960   :  { %8381 = vpow2.f32 %v3526_v4  ;;  %7571 = vmatpush3.msk.msra.mxu0 %vm745_vm6, %v3541_v46 }
0x1961   :  { %7580 = vmatprep.subr.mxu0 %v8521_v2 }
0x1963   :  { %v3775_v10 = vpop.permute.xlu1 %3774 }
0x1966   :  { %v8380_v59 = vpop.eup %8379 }
0x1967   :  { %v3533_v6 = vsel %vm716_vm5, %v8380_v59, 0.0  ;;  %v3697_v16 = vpop.permute.xlu1 %3696 }
0x1968   :  { %3534 = vadd.xlane.f32.xlu0 %v3533_v6 }
0x196a   :  { %v8382_v7 = vpop.eup %8381 }
0x196b   :  { %v3530_v8 = vsel %vm716_vm5, %v8382_v7, 0.0  ;;  %v3695_v22 = vpop.permute.xlu1 %3694 }
0x196c   :  { %3531 = vadd.xlane.f32.xlu0 %v3530_v8 }
0x1982   :  { %3772 = vrot.lane.b32.xlu0 %v9110_v36, %s8531_s18 }
0x19f5   :  { %v3535_v63 = vpop.xlane.xlu0 %3534 }
0x19f6   :  { %8383 = vrcp.f32 %v3535_v63 }
0x19f9   :  { %v3532_v9 = vpop.xlane.xlu0 %3531 }
0x19fa   :  { %8385 = vrcp.f32 %v3532_v9 }
0x19fd   :  { %v3773_v18 = vpop.permute.xlu0 %3772 }
0x1a00   :  { %v8384_v12 = vpop.eup %8383 }
0x1a01   :  { %v3539_v14 = vmul.f32 %v8384_v12, %v8380_v59 }
0x1a03   :  { %7578 = vmatmul.mubr.msk.f32.vlgmr.msra.gmra.mrb[38].mxu1 %vm741_vm7, %v3539_v14 }
0x1a04   :  { %v8386_v15 = vpop.eup %8385  ;;  %7586 = vmatpush3.xpose.msk.msra.mxu1 %vm564_vm4, %v3775_v10  ;;  %7587 = vmatprep.mubr.msk.f32.mxu1 %vm8520_vm2, %v8521_v2 }
0x1a05   :  { %v3538_v17 = vmul.f32 %v8386_v15, %v8382_v7  ;;  %7595 = vmatprep.subr.mxu1 %v8521_v2 }
0x1a07   :  { %7573 = vmatmul.mubr.msk.f32.vlgmr.msra.gmra.mrb[38].mxu0 %vm741_vm7, %v3538_v17  ;;  %7588 = vmatmul.mubr.msk.f32.vlgmr.msra.gmra.mrb[40].mxu1 %vm564_vm4, %v3773_v18 }
0x1a08   :  { %7581 = vmatpush3.xpose.msk.msra.mxu0 %vm564_vm4, %v3697_v16  ;;  %7582 = vmatprep.mubr.msk.f32.mxu0 %vm8520_vm2, %v8521_v2 }
0x1a09   :  { %7590 = vmatprep.subr.mxu0 %v8521_v2  ;;  %7597 = vmatprep.mubr.msk.f32.mxu1 %vm8520_vm2, %v8521_v2 }
0x1a0b   :  { %7583 = vmatmul.mubr.msk.f32.vlgmr.msra.gmra.mrb[40].mxu0 %vm564_vm4, %v3695_v22 }
0x1a0c   :  { %7592 = vmatprep.mubr.msk.f32.mxu0 %vm8520_vm2, %v8521_v2 }
0x1ad6   :  { %v3690_v19 = vpop.f32.mrb[38].mxu1 }
0x1ad7   :  { %v7579_v21 = vpop.f32.mrb[39].mxu1 }
0x1ada   :  { %v3613_v23 = vpop.f32.mrb[38].mxu0  ;;  %v3846_v24 = vpop.f32.mrb[40].mxu1 }
0x1adb   :  { %v7574_v25 = vpop.f32.mrb[39].mxu0  ;;  %v7589_v26 = vpop.f32.mrb[41].mxu1  ;;  %v3853_v27 = vsel %vm716_vm5, %v3846_v24, -inf }
0x1adc   :  { %3854 = vmax.xlane.f32.xlu0 %v3853_v27 }
0x1ade   :  { %v3768_v20 = vpop.f32.mrb[40].mxu0 }
0x1adf   :  { %v7584_v28 = vpop.f32.mrb[41].mxu0  ;;  %v3850_v29 = vsel %vm716_vm5, %v3768_v20, -inf }
0x1ae0   :  { %3851 = vmax.xlane.f32.xlu1 %v3850_v29 }
0x1af1   :  { %3872 = vrot.lane.b32.xlu1 %v9114_v38, %s8532_s22 }
0x1af5   :  { %4030 = vrot.lane.b32.xlu1 %v9206_v48, %s8533_s23 }
0x1af9   :  { %4038 = vrot.lane.b32.xlu1 %v3690_v19, %s8534_s26 }
0x1b69   :  { %v3855_v30 = vpop.xlane.xlu0 %3854 }
0x1b6a   :  { %v3857_v31 = vsub.f32 %v3846_v24, %v3855_v30  ;;  %v2490_v30 = vld [vmem:[%s9693_s24] sm:$0xff] }
0x1b6c   :  { %v3860_v32 = vmul.f32 1.442695, %v3857_v31  ;;  %v2491_v31 = vld [vmem:[%s9693_s24 + $0x8] sm:$0xff] }
0x1b6d   :  { %v3852_v33 = vpop.xlane.xlu1 %3851 }
0x1b6e   :  { %8387 = vpow2.f32 %v3860_v32  ;;  %v3856_v34 = vsub.f32 %v3768_v20, %v3852_v33  ;;  %v8111_v32 = vpack.c.bf16 %v2491_v31, %v2490_v30  ;;  %v2492_v33 = vld [vmem:[%s9693_s24 + $0x10] sm:$0xff] }
0x1b70   :  { %v3858_v35 = vmul.f32 1.442695, %v3856_v34  ;;  %v2493_v34 = vld [vmem:[%s9693_s24 + $0x18] sm:$0xff] }
0x1b71   :  { %v3873_v37 = vpop.permute.xlu1 %3872 }
0x1b72   :  { %8389 = vpow2.f32 %v3858_v35  ;;  %7591 = vmatpush3.msk.msra.mxu0 %vm745_vm6, %v3873_v37  ;;  %v8114_v35 = vpack.c.bf16 %v2493_v34, %v2492_v33 }
0x1b73   :  { %8098 = vmatprep.subr.bf16.mxu0 %v8519_v3 }
0x1b75   :  { %v4031_v0 = vpop.permute.xlu1 %4030 }
0x1b76   :  { %v4051_v4 = vsel %vm564_vm4, %v9166_v11, %v4031_v0  ;;  %v6940_v11 = vld [vmem:[%s9692_s19] ss:$0 sm:$0xff] }
0x1b77   :  { %v2499_v0 = vld [vmem:[%s9696_s1 + $0x20] sm:$0xff] }
0x1b78   :  { %v8388_v39 = vpop.eup %8387 }
0x1b79   :  { %v3865_v38 = vsel %vm716_vm5, %v8388_v39, 0.0  ;;  %v4039_v1 = vpop.permute.xlu1 %4038 }
0x1b7a   :  { %3866 = vadd.xlane.f32.xlu0 %v3865_v38  ;;  %v4053_v46 = vsel %vm1917_vm8, %v4051_v4, %v4039_v1  ;;  %v2501_v4 = vld [vmem:[%s9696_s1 + $0x30] sm:$0xff] }
0x1b7c   :  { %v8390_v40 = vpop.eup %8389 }
0x1b7d   :  { %v3862_v41 = vsel %vm716_vm5, %v8390_v40, 0.0 }
0x1b7e   :  { %3863 = vadd.xlane.f32.xlu0 %v3862_v41 }
0x1b94   :  { %3949 = vrot.lane.b32.xlu0 %v9110_v36, %s8532_s22 }
0x1b98   :  { %4028 = vrot.lane.b32.xlu0 %v9208_v50, %s8533_s23 }
0x1b9c   :  { %4036 = vrot.lane.b32.xlu0 %v3613_v23, %s8534_s26 }
0x1c07   :  { %v3867_v43 = vpop.xlane.xlu0 %3866 }
0x1c08   :  { %8391 = vrcp.f32 %v3867_v43 }
0x1c0b   :  { %v3864_v45 = vpop.xlane.xlu0 %3863 }
0x1c0c   :  { %8393 = vrcp.f32 %v3864_v45 }
0x1c0f   :  { %v3950_v47 = vpop.permute.xlu0 %3949 }
0x1c10   :  { %7596 = vmatpush3.msk.msra.mxu1 %vm745_vm6, %v3950_v47  ;;  %v6941_v47 = vld [vmem:[%s9694_s30] ss:$0 sm:$0xff] }
0x1c11   :  { %8104 = vmatprep.subr.bf16.mxu1 %v8519_v3 }
0x1c12   :  { %v8392_v48 = vpop.eup %8391 }
0x1c13   :  { %v3871_v36 = vmul.f32 %v8392_v48, %v8388_v39  ;;  %v4029_v44 = vpop.permute.xlu0 %4028 }
0x1c14   :  { %v4050_v8 = vsel %vm564_vm4, %v9168_v13, %v4029_v44  ;;  %v2500_v44 = vld [vmem:[%s9696_s1 + $0x28] sm:$0xff] }
0x1c15   :  { %7598 = vmatmul.mubr.msk.f32.vlgmr.msra.gmra.mrb[42].mxu1 %vm741_vm7, %v3871_v36  ;;  %v6942_v36 = vld [vmem:[%s9695_s6] ss:$0 sm:$0xff]  ;;  %v8129_v1 = vpack.c.bf16 %v2500_v44, %v2499_v0 }
0x1c16   :  { %v8394_v49 = vpop.eup %8393  ;;  %7619 = vmatprep.mubr.msk.f32.mxu1 %vm8520_vm2, %v8521_v2  ;;  %8106 = vmatpush3.bf16.msra.mxu1 %v8099_v56 }
0x1c17   :  { %v3870_v50 = vmul.f32 %v8394_v49, %v8390_v40  ;;  %8107 = vmatprep.subr.bf16.mxu1 %v8519_v3  ;;  %v4037_v6 = vpop.permute.xlu0 %4036 }
0x1c18   :  { %v4052_v63 = vsel %vm1917_vm8, %v4050_v8, %v4037_v6  ;;  %v2503_v6 = vld [vmem:[%s9696_s1 + $0x40] sm:$0xff] }
0x1c19   :  { %7593 = vmatmul.mubr.msk.f32.vlgmr.msra.gmra.mrb[42].mxu0 %vm741_vm7, %v3870_v50 }
0x1c1a   :  { %7608 = vmatprep.mubr.msk.f32.mxu0 %vm8520_vm2, %v8521_v2  ;;  %8100 = vmatpush3.bf16.msra.mxu0 %v8099_v56 }
0x1c1b   :  { %8101 = vmatprep.subr.bf16.mxu0 %v8519_v3  ;;  %8109 = vmatpush3.bf16.msra.mxu1 %v8102_v55 }
0x1c1c   :  { %8116 = vmatprep.subr.bf16.mxu1 %v8519_v3 }
0x1c1e   :  { %8103 = vmatpush3.bf16.msra.mxu0 %v8102_v55  ;;  %v2496_v55 = vld [vmem:[%s9696_s1 + $0x8] sm:$0xff] }
0x1c1f   :  { %8110 = vmatprep.subr.bf16.mxu0 %v8519_v3 }
0x1ce8   :  { %v4022_v57 = vpop.f32.mrb[42].mxu1 }
0x1ce9   :  { %4046 = vrot.lane.b32.xlu1 %v4022_v57, %s8535_s28  ;;  %v7599_v58 = vpop.f32.mrb[43].mxu1  ;;  %v8123_v57 = vpack.c.bf16 %v2496_v55, %v2495_v54 }
0x1cea   :  { %v2497_v58 = vld [vmem:[%s9696_s1 + $0x10] sm:$0xff] }
0x1cec   :  { %v3945_v60 = vpop.f32.mrb[42].mxu0 }
0x1ced   :  { %v7594_v61 = vpop.f32.mrb[43].mxu0  ;;  %4044 = vrot.lane.b32.xlu1 %v3945_v60, %s8535_s28  ;;  %v2498_v60 = vld [vmem:[%s9696_s1 + $0x18] sm:$0xff] }
0x1cee   :  { %v8126_v61 = vpack.c.bf16 %v2498_v60, %v2497_v58 }
0x1d5b   :  { %v4047_v59 = vpop.permute.xlu1 %4046 }
0x1d5c   :  { %v4055_v7 = vsel %vm1920_vm9, %v4053_v46, %v4047_v59  ;;  %v2502_v46 = vld [vmem:[%s9696_s1 + $0x38] sm:$0xff] }
0x1d5d   :  { %7620 = vmatmul.mubr.msk.f32.vlgmr.msra.gmra.mrb[44].mxu1 %vm414_vm3, %v4055_v7  ;;  %v8132_v59 = vpack.c.bf16 %v2502_v46, %v2501_v4  ;;  %v2504_v7 = vld [vmem:[%s9696_s1 + $0x48] sm:$0xff] }
0x1d5e   :  { %7641 = vmatprep.mubr.msk.f32.mxu1 %vm8520_vm2, %v8521_v2  ;;  %8118 = vmatpush3.bf16.msra.mxu1 %v8111_v32  ;;  %v8135_v8 = vpack.c.bf16 %v2504_v7, %v2503_v6 }
0x1d5f   :  { %v4045_v9 = vpop.permute.xlu1 %4044  ;;  %8119 = vmatprep.subr.bf16.mxu1 %v8519_v3 }
0x1d60   :  { %v4054_v10 = vsel %vm1920_vm9, %v4052_v63, %v4045_v9  ;;  %v2505_v63 = vld [vmem:[%s9696_s1 + $0x50] sm:$0xff]  ;;  %v2506_v9 = vld [vmem:[%s9696_s1 + $0x58] sm:$0xff] }
0x1d61   :  { %7609 = vmatmul.mubr.msk.f32.vlgmr.msra.gmra.mrb[44].mxu0 %vm414_vm3, %v4054_v10  ;;  %v8138_v10 = vpack.c.bf16 %v2506_v9, %v2505_v63 }
0x1d62   :  { %7630 = vmatprep.mubr.msk.f32.mxu0 %vm8520_vm2, %v8521_v2  ;;  %8112 = vmatpush3.bf16.msra.mxu0 %v8111_v32 }
0x1d63   :  { %8113 = vmatprep.subr.bf16.mxu0 %v8519_v3  ;;  %8121 = vmatpush3.bf16.msra.mxu1 %v8114_v35 }
0x1d64   :  { %8146 = vmatprep.subr.bf16.mxu1 %v8519_v3 }
0x1d66   :  { %8115 = vmatpush3.bf16.msra.mxu0 %v8114_v35 }
0x1d67   :  { %8122 = vmatprep.subr.bf16.mxu0 %v8519_v3 }
0x1e30   :  { %v4198_v12 = vpop.f32.mrb[44].mxu1 }
0x1e31   :  { %v4203_v14 = vadd.f32 %v4198_v12, %v9081_v62  ;;  %v7621_v15 = vpop.f32.mrb[45].mxu1  ;;  %v2508_v12 = vld [vmem:[%s9696_s1 + $0x68] sm:$0xff] }
0x1e32   :  { %v2509_v15 = vld [vmem:[%s9696_s1 + $0x70] sm:$0xff] }
0x1e33   :  { %v9296_v16 = vadd.f32 %v6940_v11, %v4203_v14 }
0x1e34   :  { %v4125_v13 = vpop.f32.mrb[44].mxu0 }
0x1e35   :  { %v4202_v17 = vadd.f32 %v4125_v13, %v9086_v5  ;;  %v7610_v18 = vpop.f32.mrb[45].mxu0  ;;  %v4215_v22 = vsel %vm370_vm1, %v9296_v16, 0.0  ;;  %v2510_v13 = vld [vmem:[%s9696_s1 + $0x78] sm:$0xff] }
0x1e36   :  { %4216 = vadd.xlane.f32.xlu0 %v4215_v22  ;;  %v6943_v18 = vld [vmem:[%s9697_s2] ss:$0 sm:$0xff] }
0x1e37   :  { %v9301_v19 = vadd.f32 %v6940_v11, %v4202_v17  ;;  %v2507_v11 = vld [vmem:[%s9696_s1 + $0x60] sm:$0xff]  ;;  %v8144_v17 = vpack.c.bf16 %v2510_v13, %v2509_v15 }
0x1e38   :  { %v8141_v14 = vpack.c.bf16 %v2508_v12, %v2507_v11  ;;  %v6946_v13 = vld [vmem:[%s9698_s7] ss:$0 sm:$0xff] }
0x1e39   :  { %v4212_v21 = vsel %vm370_vm1, %v9301_v19, 0.0 }
0x1e3a   :  { %4213 = vadd.xlane.f32.xlu1 %v4212_v21 }
0x1ec3   :  { %v4217_v62 = vpop.xlane.xlu0 %4216 }
0x1ec4   :  { %v4219_v23 = vmul.f32 0.03125, %v4217_v62 }
0x1ec6   :  { %v4221_v24 = vsub.f32 %v9296_v16, %v4219_v23 }
0x1ec7   :  { %v4214_v25 = vpop.xlane.xlu1 %4213 }
0x1ec8   :  { %v4218_v5 = vmul.f32 0.03125, %v4214_v25  ;;  %v4223_v26 = vmul.f32 %v4221_v24, %v4221_v24 }
0x1eca   :  { %v4220_v27 = vsub.f32 %v9301_v19, %v4218_v5  ;;  %v4227_v20 = vsel %vm370_vm1, %v4223_v26, 0.0 }
0x1ecb   :  { %4228 = vadd.xlane.f32.xlu0 %v4227_v20 }
0x1ecc   :  { %v4222_v28 = vmul.f32 %v4220_v27, %v4220_v27 }
0x1ece   :  { %v4224_v29 = vsel %vm370_vm1, %v4222_v28, 0.0 }
0x1ecf   :  { %4225 = vadd.xlane.f32.xlu0 %v4224_v29 }
0x1f58   :  { %v4229_v37 = vpop.xlane.xlu0 %4228 }
0x1f59   :  { %v4231_v39 = vmul.f32 0.03125, %v4229_v37 }
0x1f5b   :  { %v4233_v38 = vadd.f32 1e-05, %v4231_v39 }
0x1f5c   :  { %v4226_v40 = vpop.xlane.xlu0 %4225 }
0x1f5d   :  { %8395 = vrsqrt.f32 %v4233_v38  ;;  %v4230_v41 = vmul.f32 0.03125, %v4226_v40 }
0x1f5f   :  { %v4232_v43 = vadd.f32 1e-05, %v4230_v41 }
0x1f61   :  { %8397 = vrsqrt.f32 %v4232_v43 }
0x1f67   :  { %v8396_v45 = vpop.eup %8395 }
0x1f68   :  { %v4237_v48 = vmul.f32 %v8396_v45, %v4221_v24 }
0x1f6a   :  { %v4245_v49 = vmul.f32 %v6941_v47, %v4237_v48 }
0x1f6b   :  { %v8398_v50 = vpop.eup %8397 }
0x1f6c   :  { %v4236_v51 = vmul.f32 %v8398_v50, %v4220_v27  ;;  %v4253_v52 = vadd.f32 %v6942_v36, %v4245_v49 }
0x1f6e   :  { %7642 = vmatmul.mubr.msk.f32.vlgmr.msra.gmra.mrb[46].mxu1 %vm414_vm3, %v4253_v52  ;;  %v4244_v53 = vmul.f32 %v6941_v47, %v4236_v51 }
0x1f6f   :  { %7711 = vmatprep.mubr.msk.f32.mxu1 %vm8520_vm2, %v8521_v2  ;;  %8148 = vmatpush3.bf16.msra.mxu1 %v8123_v57 }
0x1f70   :  { %v4252_v56 = vadd.f32 %v6942_v36, %v4244_v53  ;;  %8149 = vmatprep.subr.bf16.mxu1 %v8519_v3 }
0x1f72   :  { %7631 = vmatmul.mubr.msk.f32.vlgmr.msra.gmra.mrb[46].mxu0 %vm414_vm3, %v4252_v56 }
0x1f73   :  { %7676 = vmatprep.mubr.msk.f32.mxu0 %vm8520_vm2, %v8521_v2  ;;  %8124 = vmatpush3.bf16.msra.mxu0 %v8123_v57 }
0x1f74   :  { %8125 = vmatprep.subr.bf16.mxu0 %v8519_v3  ;;  %8151 = vmatpush3.bf16.msra.mxu1 %v8126_v61 }
0x1f75   :  { %8152 = vmatprep.subr.bf16.mxu1 %v8519_v3 }
0x1f77   :  { %8127 = vmatpush3.bf16.msra.mxu0 %v8126_v61 }
0x1f78   :  { %8128 = vmatprep.subr.bf16.mxu0 %v8519_v3  ;;  %8154 = vmatpush3.bf16.msra.mxu1 %v8129_v1 }
0x1f79   :  { %8155 = vmatprep.subr.bf16.mxu1 %v8519_v3 }
0x1f7b   :  { %8130 = vmatpush3.bf16.msra.mxu0 %v8129_v1 }
0x1f7c   :  { %8131 = vmatprep.subr.bf16.mxu0 %v8519_v3  ;;  %8157 = vmatpush3.bf16.msra.mxu1 %v8132_v59 }
0x1f7d   :  { %8158 = vmatprep.subr.bf16.mxu1 %v8519_v3 }
0x1f7f   :  { %8133 = vmatpush3.bf16.msra.mxu0 %v8132_v59 }
0x1f80   :  { %8134 = vmatprep.subr.bf16.mxu0 %v8519_v3  ;;  %8160 = vmatpush3.bf16.msra.mxu1 %v8135_v8 }
0x1f81   :  { %8161 = vmatprep.subr.bf16.mxu1 %v8519_v3 }
0x1f83   :  { %8136 = vmatpush3.bf16.msra.mxu0 %v8135_v8 }
0x1f84   :  { %8137 = vmatprep.subr.bf16.mxu0 %v8519_v3  ;;  %8163 = vmatpush3.bf16.msra.mxu1 %v8138_v10 }
0x1f85   :  { %8164 = vmatprep.subr.bf16.mxu1 %v8519_v3 }
0x1f87   :  { %8139 = vmatpush3.bf16.msra.mxu0 %v8138_v10 }
0x1f88   :  { %8140 = vmatprep.subr.bf16.mxu0 %v8519_v3  ;;  %8166 = vmatpush3.bf16.msra.mxu1 %v8141_v14 }
0x1f89   :  { %8167 = vmatprep.subr.bf16.mxu1 %v8519_v3 }
0x1f8b   :  { %8142 = vmatpush3.bf16.msra.mxu0 %v8141_v14 }
0x1f8c   :  { %8143 = vmatprep.subr.bf16.mxu0 %v8519_v3  ;;  %8169 = vmatpush3.bf16.msra.mxu1 %v8144_v17 }
0x1f8d   :  { %8176 = vmatprep.subr.bf16.mxu1 %v8519_v3 }
0x1f8f   :  { %8145 = vmatpush3.bf16.msra.mxu0 %v8144_v17 }
0x1f90   :  { %8170 = vmatprep.subr.bf16.mxu0 %v8519_v3 }
0x2041   :  { %v4402_v22 = vpop.f32.mrb[46].mxu1 }
0x2042   :  { %v4403_v21 = vadd.f32 %v6943_v18, %v4402_v22  ;;  %v7643_v62 = vpop.f32.mrb[47].mxu1 }
0x2044   :  { %v4409_v23 = vmul.f32 0.70710677, %v4403_v21  ;;  %v4407_v7 = vmul.f32 0.5, %v4403_v21 }
0x2045   :  { %v4329_v24 = vpop.f32.mrb[46].mxu0 }
0x2046   :  { %v4415_v25 = vand.u32 2147483647, %v4409_v23  ;;  %v4330_v5 = vadd.f32 %v6943_v18, %v4329_v24  ;;  %v7632_v26 = vpop.f32.mrb[47].mxu0  ;;  %vm4411_vm12 = vcmp.ge.f32.partialorder %v4409_v23, 0.0 }
0x2047   :  { %v4413_v46 = vsel %vm4411_vm12, 1.0, %v8536_v42 }
0x2048   :  { %v4417_v27 = vmul.f32 0.3275911, %v4415_v25  ;;  %v4408_v20 = vmul.f32 0.70710677, %v4330_v5  ;;  %v4443_v32 = vmul.f32 %v4415_v25, %v4415_v25  ;;  %v4406_v12 = vmul.f32 0.5, %v4330_v5 }
0x204a   :  { %v4419_v28 = vadd.f32 1.0, %v4417_v27  ;;  %v4414_v29 = vand.u32 2147483647, %v4408_v20  ;;  %v4445_v34 = vsub.f32 0.0, %v4443_v32  ;;  %vm4410_vm13 = vcmp.ge.f32.partialorder %v4408_v20, 0.0 }
0x204b   :  { %v4412_v9 = vsel %vm4410_vm13, 1.0, %v8536_v42 }
0x204c   :  { %8399 = vrcp.f32 %v4419_v28  ;;  %v4416_v30 = vmul.f32 0.3275911, %v4414_v29  ;;  %v4442_v35 = vmul.f32 %v4414_v29, %v4414_v29  ;;  %v4448_v40 = vmul.f32 1.442695, %v4445_v34  ;;  %v4612_v34 = vld [vmem:[%s9699_s10] sm:$0xff] }
0x204e   :  { %v4418_v31 = vadd.f32 1.0, %v4416_v30  ;;  %v4444_v41 = vsub.f32 0.0, %v4442_v35  ;;  %v4613_v35 = vld [vmem:[%s9699_s10 + $0x8] sm:$0xff] }
0x2050   :  { %8401 = vrcp.f32 %v4418_v31  ;;  %v4446_v36 = vmul.f32 1.442695, %v4444_v41 }
0x2051   :  { %8403 = vpow2.f32 %v4448_v40 }
0x2052   :  { %8405 = vpow2.f32 %v4446_v36 }
0x2056   :  { %v8400_v33 = vpop.eup %8399 }
0x2057   :  { %v4425_v37 = vmul.f32 1.0614054, %v8400_v33 }
0x2059   :  { %v4427_v39 = vadd.f32 -1.4531521, %v4425_v37  ;;  %v8171_v37 = vpack.c.bf16 %v4613_v35, %v4612_v34 }
0x205a   :  { %v8402_v38 = vpop.eup %8401 }
0x205b   :  { %v4429_v43 = vmul.f32 %v8400_v33, %v4427_v39  ;;  %v4424_v45 = vmul.f32 1.0614054, %v8402_v38  ;;  %v8404_v60 = vpop.eup %8403  ;;  %v4614_v39 = vld [vmem:[%s9699_s10 + $0x10] sm:$0xff] }
0x205c   :  { %v8406_v4 = vpop.eup %8405 }
0x205d   :  { %v4431_v47 = vadd.f32 1.4214138, %v4429_v43  ;;  %v4426_v48 = vadd.f32 -1.4531521, %v4424_v45 }
0x205f   :  { %v4433_v49 = vmul.f32 %v8400_v33, %v4431_v47  ;;  %v4428_v50 = vmul.f32 %v8402_v38, %v4426_v48 }
0x2061   :  { %v4435_v51 = vadd.f32 -0.28449672, %v4433_v49  ;;  %v4430_v52 = vadd.f32 1.4214138, %v4428_v50  ;;  %v6947_v50 = vld [vmem:[%s9700_s11] ss:$0 sm:$0xff] }
0x2063   :  { %v4437_v53 = vmul.f32 %v8400_v33, %v4435_v51  ;;  %v4432_v56 = vmul.f32 %v8402_v38, %v4430_v52  ;;  %v6948_v52 = vld [vmem:[%s9701_s29] ss:$0 sm:$0xff] }
0x2065   :  { %v4439_v54 = vadd.f32 0.2548296, %v4437_v53  ;;  %v4434_v55 = vadd.f32 -0.28449672, %v4432_v56 }
0x2067   :  { %v4441_v57 = vmul.f32 %v8400_v33, %v4439_v54  ;;  %v4436_v58 = vmul.f32 %v8402_v38, %v4434_v55 }
0x2069   :  { %v4451_v61 = vmul.f32 %v8404_v60, %v4441_v57  ;;  %v4438_v0 = vadd.f32 0.2548296, %v4436_v58 }
0x206b   :  { %v4453_v44 = vsub.f32 1.0, %v4451_v61  ;;  %v4440_v1 = vmul.f32 %v8402_v38, %v4438_v0  ;;  %v4615_v38 = vld [vmem:[%s9699_s10 + $0x18] sm:$0xff] }
0x206c   :  { %v8174_v40 = vpack.c.bf16 %v4615_v38, %v4614_v39 }
0x206d   :  { %v4455_v59 = vmul.f32 %v4453_v44, %v4413_v46  ;;  %v4450_v6 = vmul.f32 %v8406_v4, %v4440_v1 }
0x206f   :  { %v4457_v8 = vadd.f32 1.0, %v4455_v59  ;;  %v4452_v63 = vsub.f32 1.0, %v4450_v6 }
0x2071   :  { %v4459_v10 = vmul.f32 %v4457_v8, %v4407_v7  ;;  %v4454_v11 = vmul.f32 %v4452_v63, %v4412_v9 }
0x2073   :  { %v4456_v14 = vadd.f32 1.0, %v4454_v11  ;;  %7712 = vmatmul.mubr.f32.vlgmr.msra.gmra.mrb[48].mxu1 %v4459_v10 }
0x2074   :  { %7733 = vmatprep.mubr.msk.f32.mxu1 %vm8520_vm2, %v8521_v2  ;;  %8178 = vmatpush3.bf16.msra.mxu1 %v8171_v37 }
0x2075   :  { %v4458_v15 = vmul.f32 %v4456_v14, %v4406_v12  ;;  %8179 = vmatprep.subr.bf16.mxu1 %v8519_v3 }
0x2077   :  { %7677 = vmatmul.mubr.f32.vlgmr.msra.gmra.mrb[48].mxu0 %v4458_v15 }
0x2078   :  { %7722 = vmatprep.mubr.msk.f32.mxu0 %vm8520_vm2, %v8521_v2  ;;  %8172 = vmatpush3.bf16.msra.mxu0 %v8171_v37 }
0x2079   :  { %8173 = vmatprep.subr.bf16.mxu0 %v8519_v3  ;;  %8181 = vmatpush3.bf16.msra.mxu1 %v8174_v40 }
0x207a   :  { %7741 = vmatprep.subr.mxu1 %v8521_v2 }
0x207c   :  { %8175 = vmatpush3.bf16.msra.mxu0 %v8174_v40 }
0x207d   :  { %7736 = vmatprep.subr.mxu0 %v8521_v2 }
0x2146   :  { %v4596_v17 = vpop.f32.mrb[48].mxu1 }
0x2147   :  { %v4601_v18 = vadd.f32 %v4596_v17, %v9296_v16  ;;  %v7713_v22 = vpop.f32.mrb[49].mxu1 }
0x2149   :  { %v9366_v21 = vadd.f32 %v6946_v13, %v4601_v18 }
0x214a   :  { %v4526_v62 = vpop.f32.mrb[48].mxu0 }
0x214b   :  { %v4600_v23 = vadd.f32 %v4526_v62, %v9301_v19  ;;  %v7678_v24 = vpop.f32.mrb[49].mxu0  ;;  %v4648_v25 = vsel %vm370_vm1, %v9366_v21, 0.0 }
0x214c   :  { %4649 = vadd.xlane.f32.xlu0 %v4648_v25 }
0x214d   :  { %v9371_v5 = vadd.f32 %v6946_v13, %v4600_v23 }
0x214f   :  { %v4645_v26 = vsel %vm370_vm1, %v9371_v5, 0.0 }
0x2150   :  { %4646 = vadd.xlane.f32.xlu1 %v4645_v26 }
0x21d9   :  { %v4650_v16 = vpop.xlane.xlu0 %4649 }
0x21da   :  { %v4652_v27 = vmul.f32 0.03125, %v4650_v16 }
0x21dc   :  { %v4654_v20 = vsub.f32 %v9366_v21, %v4652_v27 }
0x21dd   :  { %v4647_v28 = vpop.xlane.xlu1 %4646 }
0x21de   :  { %v4651_v19 = vmul.f32 0.03125, %v4647_v28  ;;  %v4656_v29 = vmul.f32 %v4654_v20, %v4654_v20 }
0x21e0   :  { %v4653_v30 = vsub.f32 %v9371_v5, %v4651_v19  ;;  %v4660_v31 = vsel %vm370_vm1, %v4656_v29, 0.0 }
0x21e1   :  { %4661 = vadd.xlane.f32.xlu0 %v4660_v31 }
0x21e2   :  { %v4655_v32 = vmul.f32 %v4653_v30, %v4653_v30 }
0x21e4   :  { %v4657_v33 = vsel %vm370_vm1, %v4655_v32, 0.0 }
0x21e5   :  { %4658 = vadd.xlane.f32.xlu1 %v4657_v33 }
0x226e   :  { %v4662_v41 = vpop.xlane.xlu0 %4661 }
0x226f   :  { %v4664_v43 = vmul.f32 0.03125, %v4662_v41 }
0x2271   :  { %v4666_v45 = vadd.f32 1e-05, %v4664_v43 }
0x2272   :  { %v4659_v47 = vpop.xlane.xlu1 %4658 }
0x2273   :  { %8407 = vrsqrt.f32 %v4666_v45  ;;  %v4663_v48 = vmul.f32 0.03125, %v4659_v47 }
0x2275   :  { %v4665_v36 = vadd.f32 1e-05, %v4663_v48 }
0x2277   :  { %8409 = vrsqrt.f32 %v4665_v36 }
0x227d   :  { %v8408_v49 = vpop.eup %8407 }
0x227e   :  { %v4670_v51 = vmul.f32 %v8408_v49, %v4654_v20 }
0x2280   :  { %v4678_v53 = vmul.f32 %v6947_v50, %v4670_v51 }
0x2281   :  { %v8410_v56 = vpop.eup %8409 }
0x2282   :  { %v4669_v54 = vmul.f32 %v8410_v56, %v4653_v30  ;;  %v4686_v55 = vadd.f32 %v6948_v52, %v4678_v53 }
0x2284   :  { %7734 = vmatmul.mubr.msk.f32.vlgmr.msra.gmra.mrb[50].mxu1 %vm414_vm3, %v4686_v55  ;;  %v4677_v57 = vmul.f32 %v6947_v50, %v4669_v54 }
0x2285   :  { %7743 = vmatprep.mubr.msk.f32.mxu1 %vm8520_vm2, %v8521_v2 }
0x2286   :  { %v4685_v58 = vadd.f32 %v6948_v52, %v4677_v57 }
0x2288   :  { %7723 = vmatmul.mubr.msk.f32.vlgmr.msra.gmra.mrb[50].mxu0 %vm414_vm3, %v4685_v58 }
0x2289   :  { %7738 = vmatprep.mubr.msk.f32.mxu0 %vm8520_vm2, %v8521_v2 }
0x2357   :  { %v9395_v60 = vpop.f32.mrb[50].mxu1 }
0x2358   :  { %4911 = vrot.lane.b32.xlu0 %v9395_v60, %s8522_s0  ;;  %v7735_v61 = vpop.f32.mrb[51].mxu1 }
0x235b   :  { %v9399_v0 = vpop.f32.mrb[50].mxu0 }
0x235c   :  { %4834 = vrot.lane.b32.xlu1 %v9399_v0, %s8522_s0  ;;  %v7724_v44 = vpop.f32.mrb[51].mxu0  ;;  %s9702_s0 = sld [smem:[#allocation19_spill]] }
0x23ca   :  { %v4912_v1 = vpop.permute.xlu0 %4911 }
0x23cb   :  { %7742 = vmatpush3.xpose.msk.msra.mxu1 %vm564_vm4, %v4912_v1 }
0x23cc   :  { %7751 = vmatprep.subr.mxu1 %v8521_v2 }
0x23ce   :  { %v4835_v4 = vpop.permute.xlu1 %4834  ;;  %7744 = vmatmul.mubr.msk.f32.vlgmr.msra.gmra.mrb[52].mxu1 %vm564_vm4, %v9395_v60 }
0x23cf   :  { %7737 = vmatpush3.xpose.msk.msra.mxu0 %vm564_vm4, %v4835_v4  ;;  %7753 = vmatprep.mubr.msk.f32.mxu1 %vm8520_vm2, %v8521_v2 }
0x23d0   :  { %7746 = vmatprep.subr.mxu0 %v8521_v2 }
0x23d2   :  { %7739 = vmatmul.mubr.msk.f32.vlgmr.msra.gmra.mrb[52].mxu0 %vm564_vm4, %v9399_v0 }
0x23d3   :  { %7748 = vmatprep.mubr.msk.f32.mxu0 %vm8520_vm2, %v8521_v2 }
0x24a1   :  { %v4983_v46 = vpop.f32.mrb[52].mxu1 }
0x24a2   :  { %v7745_v59 = vpop.f32.mrb[53].mxu1  ;;  %v4990_v6 = vsel %vm716_vm5, %v4983_v46, -inf }
0x24a3   :  { %4991 = vmax.xlane.f32.xlu1 %v4990_v6 }
0x24a5   :  { %v4906_v7 = vpop.f32.mrb[52].mxu0 }
0x24a6   :  { %v7740_v8 = vpop.f32.mrb[53].mxu0  ;;  %v4987_v63 = vsel %vm716_vm5, %v4906_v7, -inf }
0x24a7   :  { %4988 = vmax.xlane.f32.xlu0 %v4987_v63 }
0x24b4   :  { %5009 = vrot.lane.b32.xlu1 %v9399_v0, %s8523_s5 }
0x24b8   :  { %5243 = vrot.lane.b32.xlu1 %v9395_v60, %s8524_s9 }
0x24bc   :  { %5165 = vrot.lane.b32.xlu1 %v9399_v0, %s8524_s9  ;;  %s9704_s9 = sld [smem:[#allocation23_spill]] }
0x24bd   :  { %5086 = vrot.lane.b32.xlu0 %v9395_v60, %s8523_s5  ;;  %s9703_s5 = sld [smem:[#allocation20_spill]] }
0x2530   :  { %v4992_v9 = vpop.xlane.xlu1 %4991 }
0x2531   :  { %v4994_v10 = vsub.f32 %v4983_v46, %v4992_v9 }
0x2533   :  { %v4997_v11 = vmul.f32 1.442695, %v4994_v10 }
0x2534   :  { %v4989_v12 = vpop.xlane.xlu0 %4988  ;;  %v5010_v14 = vpop.permute.xlu1 %5009 }
0x2535   :  { %8411 = vpow2.f32 %v4997_v11  ;;  %v4993_v15 = vsub.f32 %v4906_v7, %v4989_v12  ;;  %7747 = vmatpush3.msk.msra.mxu0 %vm745_vm6, %v5010_v14 }
0x2536   :  { %7756 = vmatprep.subr.mxu0 %v8521_v2 }
0x2537   :  { %v4995_v13 = vmul.f32 1.442695, %v4993_v15 }
0x2538   :  { %v5087_v17 = vpop.permute.xlu0 %5086  ;;  %v5244_v24 = vpop.permute.xlu1 %5243 }
0x2539   :  { %8413 = vpow2.f32 %v4995_v13  ;;  %7752 = vmatpush3.msk.msra.mxu1 %vm745_vm6, %v5087_v17 }
0x253a   :  { %7761 = vmatprep.subr.mxu1 %v8521_v2 }
0x253c   :  { %v5166_v25 = vpop.permute.xlu1 %5165 }
0x253f   :  { %v8412_v18 = vpop.eup %8411 }
0x2540   :  { %v5002_v22 = vsel %vm716_vm5, %v8412_v18, 0.0 }
0x2541   :  { %5003 = vadd.xlane.f32.xlu0 %v5002_v22 }
0x2543   :  { %v8414_v62 = vpop.eup %8413 }
0x2544   :  { %v4999_v23 = vsel %vm716_vm5, %v8414_v62, 0.0 }
0x2545   :  { %5000 = vadd.xlane.f32.xlu1 %v4999_v23 }
0x2556   :  { %5163 = vrot.lane.b32.xlu1 %v9399_v0, %s8525_s13 }
0x2557   :  { %5241 = vrot.lane.b32.xlu0 %v9395_v60, %s8525_s13  ;;  %s9705_s13 = sld [smem:[#allocation21_spill]] }
0x25ce   :  { %v5004_v26 = vpop.xlane.xlu0 %5003 }
0x25cf   :  { %8415 = vrcp.f32 %v5004_v26 }
0x25d2   :  { %v5001_v16 = vpop.xlane.xlu1 %5000  ;;  %v5242_v29 = vpop.permute.xlu0 %5241 }
0x25d3   :  { %8417 = vrcp.f32 %v5001_v16 }
0x25d6   :  { %v5164_v30 = vpop.permute.xlu1 %5163 }
0x25d9   :  { %v8416_v27 = vpop.eup %8415 }
0x25da   :  { %v5008_v20 = vmul.f32 %v8416_v27, %v8412_v18 }
0x25dc   :  { %7754 = vmatmul.mubr.msk.f32.vlgmr.msra.gmra.mrb[54].mxu1 %vm741_vm7, %v5008_v20 }
0x25dd   :  { %v8418_v28 = vpop.eup %8417  ;;  %7762 = vmatpush3.xpose.msk.msra.mxu1 %vm564_vm4, %v5244_v24  ;;  %7763 = vmatprep.mubr.msk.f32.mxu1 %vm8520_vm2, %v8521_v2 }
0x25de   :  { %v5007_v19 = vmul.f32 %v8418_v28, %v8414_v62  ;;  %7771 = vmatprep.subr.mxu1 %v8521_v2 }
0x25e0   :  { %7749 = vmatmul.mubr.msk.f32.vlgmr.msra.gmra.mrb[54].mxu0 %vm741_vm7, %v5007_v19  ;;  %7764 = vmatmul.mubr.msk.f32.vlgmr.msra.gmra.mrb[56].mxu1 %vm564_vm4, %v5242_v29 }
0x25e1   :  { %7757 = vmatpush3.xpose.msk.msra.mxu0 %vm564_vm4, %v5166_v25  ;;  %7758 = vmatprep.mubr.msk.f32.mxu0 %vm8520_vm2, %v8521_v2 }
0x25e2   :  { %7766 = vmatprep.subr.mxu0 %v8521_v2  ;;  %7773 = vmatprep.mubr.msk.f32.mxu1 %vm8520_vm2, %v8521_v2 }
0x25e4   :  { %7759 = vmatmul.mubr.msk.f32.vlgmr.msra.gmra.mrb[56].mxu0 %vm564_vm4, %v5164_v30 }
0x25e5   :  { %7768 = vmatprep.mubr.msk.f32.mxu0 %vm8520_vm2, %v8521_v2 }
0x26af   :  { %v9451_v31 = vpop.f32.mrb[54].mxu1 }
0x26b0   :  { %v7755_v32 = vpop.f32.mrb[55].mxu1 }
0x26b3   :  { %v9453_v33 = vpop.f32.mrb[54].mxu0  ;;  %v5315_v34 = vpop.f32.mrb[56].mxu1 }
0x26b4   :  { %v7750_v35 = vpop.f32.mrb[55].mxu0  ;;  %v7765_v37 = vpop.f32.mrb[57].mxu1  ;;  %v5322_v39 = vsel %vm716_vm5, %v5315_v34, -inf }
0x26b5   :  { %5323 = vmax.xlane.f32.xlu0 %v5322_v39 }
0x26b7   :  { %v5237_v38 = vpop.f32.mrb[56].mxu0 }
0x26b8   :  { %v7760_v40 = vpop.f32.mrb[57].mxu0  ;;  %v5319_v41 = vsel %vm716_vm5, %v5237_v38, -inf }
0x26b9   :  { %5320 = vmax.xlane.f32.xlu1 %v5319_v41 }
0x26ca   :  { %5341 = vrot.lane.b32.xlu1 %v9399_v0, %s8526_s17 }
0x26cb   :  { %5418 = vrot.lane.b32.xlu0 %v9395_v60, %s8526_s17  ;;  %s9706_s17 = sld [smem:[#allocation22_spill]] }
0x26ce   :  { %5575 = vrot.lane.b32.xlu1 %v9395_v60, %s8527_s21 }
0x26d2   :  { %5497 = vrot.lane.b32.xlu1 %v9399_v0, %s8527_s21  ;;  %s9707_s21 = sld [smem:[#allocation25_spill]] }
0x26d6   :  { %5495 = vrot.lane.b32.xlu1 %v9399_v0, %s8528_s25 }
0x2742   :  { %v5324_v43 = vpop.xlane.xlu0 %5323 }
0x2743   :  { %v5326_v45 = vsub.f32 %v5315_v34, %v5324_v43 }
0x2745   :  { %v5329_v47 = vmul.f32 1.442695, %v5326_v45 }
0x2746   :  { %v5321_v48 = vpop.xlane.xlu1 %5320  ;;  %v5419_v36 = vpop.permute.xlu0 %5418 }
0x2747   :  { %8419 = vpow2.f32 %v5329_v47  ;;  %v5325_v49 = vsub.f32 %v5237_v38, %v5321_v48  ;;  %7772 = vmatpush3.msk.msra.mxu1 %vm745_vm6, %v5419_v36 }
0x2748   :  { %7781 = vmatprep.subr.mxu1 %v8521_v2 }
0x2749   :  { %v5327_v50 = vmul.f32 1.442695, %v5325_v49 }
0x274a   :  { %v5342_v51 = vpop.permute.xlu1 %5341 }
0x274b   :  { %8421 = vpow2.f32 %v5327_v50  ;;  %7767 = vmatpush3.msk.msra.mxu0 %vm745_vm6, %v5342_v51 }
0x274c   :  { %7776 = vmatprep.subr.mxu0 %v8521_v2 }
0x274e   :  { %v5576_v58 = vpop.permute.xlu1 %5575 }
0x2751   :  { %v8420_v52 = vpop.eup %8419 }
0x2752   :  { %v5334_v53 = vsel %vm716_vm5, %v8420_v52, 0.0  ;;  %v5498_v4 = vpop.permute.xlu1 %5497 }
0x2753   :  { %5335 = vadd.xlane.f32.xlu0 %v5334_v53 }
0x2755   :  { %v8422_v56 = vpop.eup %8421 }
0x2756   :  { %v5331_v54 = vsel %vm716_vm5, %v8422_v56, 0.0  ;;  %v5496_v6 = vpop.permute.xlu1 %5495 }
0x2757   :  { %5332 = vadd.xlane.f32.xlu0 %v5331_v54 }
0x276d   :  { %5573 = vrot.lane.b32.xlu0 %v9395_v60, %s8528_s25  ;;  %s9708_s25 = sld [smem:[#allocation24_spill]] }
0x27e0   :  { %v5336_v55 = vpop.xlane.xlu0 %5335 }
0x27e1   :  { %8423 = vrcp.f32 %v5336_v55 }
0x27e4   :  { %v5333_v57 = vpop.xlane.xlu0 %5332 }
0x27e5   :  { %8425 = vrcp.f32 %v5333_v57 }
0x27e8   :  { %v5574_v59 = vpop.permute.xlu0 %5573 }
0x27eb   :  { %v8424_v61 = vpop.eup %8423 }
0x27ec   :  { %v5340_v44 = vmul.f32 %v8424_v61, %v8420_v52 }
0x27ee   :  { %7774 = vmatmul.mubr.msk.f32.vlgmr.msra.gmra.mrb[58].mxu1 %vm741_vm7, %v5340_v44 }
0x27ef   :  { %v8426_v1 = vpop.eup %8425  ;;  %7782 = vmatpush3.xpose.msk.msra.mxu1 %vm564_vm4, %v5576_v58  ;;  %7783 = vmatprep.mubr.msk.f32.mxu1 %vm8520_vm2, %v8521_v2 }
0x27f0   :  { %v5339_v46 = vmul.f32 %v8426_v1, %v8422_v56  ;;  %7791 = vmatprep.subr.mxu1 %v8521_v2 }
0x27f2   :  { %7769 = vmatmul.mubr.msk.f32.vlgmr.msra.gmra.mrb[58].mxu0 %vm741_vm7, %v5339_v46  ;;  %7784 = vmatmul.mubr.msk.f32.vlgmr.msra.gmra.mrb[60].mxu1 %vm564_vm4, %v5574_v59 }
0x27f3   :  { %7777 = vmatpush3.xpose.msk.msra.mxu0 %vm564_vm4, %v5498_v4  ;;  %7778 = vmatprep.mubr.msk.f32.mxu0 %vm8520_vm2, %v8521_v2 }
0x27f4   :  { %7786 = vmatprep.subr.mxu0 %v8521_v2  ;;  %7793 = vmatprep.mubr.msk.f32.mxu1 %vm8520_vm2, %v8521_v2 }
0x27f6   :  { %7779 = vmatmul.mubr.msk.f32.vlgmr.msra.gmra.mrb[60].mxu0 %vm564_vm4, %v5496_v6 }
0x27f7   :  { %7788 = vmatprep.mubr.msk.f32.mxu0 %vm8520_vm2, %v8521_v2 }
0x28c1   :  { %v9491_v7 = vpop.f32.mrb[58].mxu1 }
0x28c2   :  { %v7775_v8 = vpop.f32.mrb[59].mxu1 }
0x28c5   :  { %v9493_v63 = vpop.f32.mrb[58].mxu0  ;;  %v5647_v9 = vpop.f32.mrb[60].mxu1 }
0x28c6   :  { %v7770_v10 = vpop.f32.mrb[59].mxu0  ;;  %v7785_v11 = vpop.f32.mrb[61].mxu1  ;;  %v5654_v12 = vsel %vm716_vm5, %v5647_v9, -inf }
0x28c7   :  { %5655 = vmax.xlane.f32.xlu0 %v5654_v12  ;;  %v4617_v10 = vld [vmem:[%s9702_s0 + $0x8] sm:$0xff]  ;;  %v4618_v11 = vld [vmem:[%s9702_s0 + $0x10] sm:$0xff] }
0x28c9   :  { %v5569_v14 = vpop.f32.mrb[60].mxu0 }
0x28ca   :  { %v7780_v15 = vpop.f32.mrb[61].mxu0  ;;  %v5651_v13 = vsel %vm716_vm5, %v5569_v14, -inf }
0x28cb   :  { %5652 = vmax.xlane.f32.xlu1 %v5651_v13 }
0x28dc   :  { %5673 = vrot.lane.b32.xlu1 %v9399_v0, %s8529_s15 }
0x28dd   :  { %5750 = vrot.lane.b32.xlu0 %v9395_v60, %s8529_s15 }
0x28e0   :  { %5907 = vrot.lane.b32.xlu1 %v9395_v60, %s8530_s16 }
0x28e4   :  { %5829 = vrot.lane.b32.xlu1 %v9399_v0, %s8530_s16 }
0x28e8   :  { %5827 = vrot.lane.b32.xlu1 %v9399_v0, %s8531_s18 }
0x2954   :  { %v5656_v17 = vpop.xlane.xlu0 %5655 }
0x2955   :  { %v5658_v18 = vsub.f32 %v5647_v9, %v5656_v17  ;;  %v4616_v9 = vld [vmem:[%s9702_s0] sm:$0xff] }
0x2956   :  { %v8183_v12 = vpack.c.bf16 %v4617_v10, %v4616_v9 }
0x2957   :  { %v5661_v22 = vmul.f32 1.442695, %v5658_v18 }
0x2958   :  { %v5653_v62 = vpop.xlane.xlu1 %5652  ;;  %v5751_v23 = vpop.permute.xlu0 %5750 }
0x2959   :  { %8427 = vpow2.f32 %v5661_v22  ;;  %v5657_v24 = vsub.f32 %v5569_v14, %v5653_v62  ;;  %7792 = vmatpush3.msk.msra.mxu1 %vm745_vm6, %v5751_v23  ;;  %v4619_v14 = vld [vmem:[%s9702_s0 + $0x18] sm:$0xff] }
0x295a   :  { %7801 = vmatprep.subr.mxu1 %v8521_v2  ;;  %v8186_v15 = vpack.c.bf16 %v4619_v14, %v4618_v11  ;;  %v4628_v14 = vld [vmem:[%s9707_s21] sm:$0xff] }
0x295b   :  { %v5659_v25 = vmul.f32 1.442695, %v5657_v24 }
0x295c   :  { %v5674_v26 = vpop.permute.xlu1 %5673 }
0x295d   :  { %8429 = vpow2.f32 %v5659_v25  ;;  %7787 = vmatpush3.msk.msra.mxu0 %vm745_vm6, %v5674_v26 }
0x295e   :  { %7796 = vmatprep.subr.mxu0 %v8521_v2 }
0x2960   :  { %v5908_v30 = vpop.permute.xlu1 %5907 }
0x2963   :  { %v8428_v16 = vpop.eup %8427 }
0x2964   :  { %v5666_v27 = vsel %vm716_vm5, %v8428_v16, 0.0  ;;  %v5830_v37 = vpop.permute.xlu1 %5829 }
0x2965   :  { %5667 = vadd.xlane.f32.xlu0 %v5666_v27 }
0x2967   :  { %v8430_v20 = vpop.eup %8429 }
0x2968   :  { %v5663_v28 = vsel %vm716_vm5, %v8430_v20, 0.0  ;;  %v5828_v40 = vpop.permute.xlu1 %5827 }
0x2969   :  { %5664 = vadd.xlane.f32.xlu0 %v5663_v28 }
0x297f   :  { %5905 = vrot.lane.b32.xlu0 %v9395_v60, %s8531_s18 }
0x29f2   :  { %v5668_v19 = vpop.xlane.xlu0 %5667 }
0x29f3   :  { %8431 = vrcp.f32 %v5668_v19 }
0x29f6   :  { %v5665_v29 = vpop.xlane.xlu0 %5664 }
0x29f7   :  { %8433 = vrcp.f32 %v5665_v29 }
0x29fa   :  { %v5906_v38 = vpop.permute.xlu0 %5905 }
0x29fd   :  { %v8432_v32 = vpop.eup %8431 }
0x29fe   :  { %v5672_v34 = vmul.f32 %v8432_v32, %v8428_v16 }
0x2a00   :  { %7794 = vmatmul.mubr.msk.f32.vlgmr.msra.gmra.mrb[62].mxu1 %vm741_vm7, %v5672_v34 }
0x2a01   :  { %v8434_v35 = vpop.eup %8433  ;;  %7802 = vmatpush3.xpose.msk.msra.mxu1 %vm564_vm4, %v5908_v30  ;;  %7803 = vmatprep.mubr.msk.f32.mxu1 %vm8520_vm2, %v8521_v2 }
0x2a02   :  { %v5671_v39 = vmul.f32 %v8434_v35, %v8430_v20  ;;  %7811 = vmatprep.subr.mxu1 %v8521_v2 }
0x2a04   :  { %7789 = vmatmul.mubr.msk.f32.vlgmr.msra.gmra.mrb[62].mxu0 %vm741_vm7, %v5671_v39  ;;  %7804 = vmatmul.mubr.msk.f32.vlgmr.msra.gmra.mrb[64].mxu1 %vm564_vm4, %v5906_v38 }
0x2a05   :  { %7797 = vmatpush3.xpose.msk.msra.mxu0 %vm564_vm4, %v5830_v37  ;;  %7798 = vmatprep.mubr.msk.f32.mxu0 %vm8520_vm2, %v8521_v2 }
0x2a06   :  { %7806 = vmatprep.subr.mxu0 %v8521_v2  ;;  %7813 = vmatprep.mubr.msk.f32.mxu1 %vm8520_vm2, %v8521_v2 }
0x2a08   :  { %7799 = vmatmul.mubr.msk.f32.vlgmr.msra.gmra.mrb[64].mxu0 %vm564_vm4, %v5828_v40 }
0x2a09   :  { %7808 = vmatprep.mubr.msk.f32.mxu0 %vm8520_vm2, %v8521_v2 }
0x2ad3   :  { %v5823_v41 = vpop.f32.mrb[62].mxu1 }
0x2ad4   :  { %v7795_v43 = vpop.f32.mrb[63].mxu1 }
0x2ad7   :  { %v5746_v45 = vpop.f32.mrb[62].mxu0  ;;  %v5979_v47 = vpop.f32.mrb[64].mxu1 }
0x2ad8   :  { %v7790_v48 = vpop.f32.mrb[63].mxu0  ;;  %v7805_v36 = vpop.f32.mrb[65].mxu1  ;;  %v5986_v49 = vsel %vm716_vm5, %v5979_v47, -inf }
0x2ad9   :  { %5987 = vmax.xlane.f32.xlu0 %v5986_v49 }
0x2adb   :  { %v5901_v50 = vpop.f32.mrb[64].mxu0 }
0x2adc   :  { %v7800_v51 = vpop.f32.mrb[65].mxu0  ;;  %v5983_v52 = vsel %vm716_vm5, %v5901_v50, -inf }
0x2add   :  { %5984 = vmax.xlane.f32.xlu1 %v5983_v52 }
0x2aee   :  { %6005 = vrot.lane.b32.xlu1 %v9399_v0, %s8532_s22 }
0x2af2   :  { %6163 = vrot.lane.b32.xlu1 %v9491_v7, %s8533_s23 }
0x2af6   :  { %6171 = vrot.lane.b32.xlu1 %v5823_v41, %s8534_s26 }
0x2b66   :  { %v5988_v53 = vpop.xlane.xlu0 %5987 }
0x2b67   :  { %v5990_v56 = vsub.f32 %v5979_v47, %v5988_v53  ;;  %v4623_v53 = vld [vmem:[%s9704_s9] sm:$0xff] }
0x2b69   :  { %v5993_v54 = vmul.f32 1.442695, %v5990_v56  ;;  %v4624_v56 = vld [vmem:[%s9704_s9 + $0x8] sm:$0xff] }
0x2b6a   :  { %v5985_v55 = vpop.xlane.xlu1 %5984 }
0x2b6b   :  { %8435 = vpow2.f32 %v5993_v54  ;;  %v5989_v57 = vsub.f32 %v5901_v50, %v5985_v55  ;;  %v8195_v54 = vpack.c.bf16 %v4624_v56, %v4623_v53  ;;  %v4625_v55 = vld [vmem:[%s9704_s9 + $0x10] sm:$0xff] }
0x2b6d   :  { %v5991_v58 = vmul.f32 1.442695, %v5989_v57  ;;  %v4626_v57 = vld [vmem:[%s9704_s9 + $0x18] sm:$0xff] }
0x2b6e   :  { %v6006_v61 = vpop.permute.xlu1 %6005 }
0x2b6f   :  { %8437 = vpow2.f32 %v5991_v58  ;;  %7807 = vmatpush3.msk.msra.mxu0 %vm745_vm6, %v6006_v61  ;;  %v8198_v58 = vpack.c.bf16 %v4626_v57, %v4625_v55 }
0x2b70   :  { %8182 = vmatprep.subr.bf16.mxu0 %v8519_v3 }
0x2b72   :  { %v6164_v62 = vpop.permute.xlu1 %6163 }
0x2b73   :  { %v6184_v25 = vsel %vm564_vm4, %v9451_v31, %v6164_v62  ;;  %v6985_v31 = vld [vmem:[%s9703_s5] ss:$0 sm:$0xff]  ;;  %v4633_v62 = vld [vmem:[%s9707_s21 + $0x28] sm:$0xff] }
0x2b75   :  { %v8436_v44 = vpop.eup %8435 }
0x2b76   :  { %v5998_v0 = vsel %vm716_vm5, %v8436_v44, 0.0  ;;  %v6172_v24 = vpop.permute.xlu1 %6171 }
0x2b77   :  { %5999 = vadd.xlane.f32.xlu0 %v5998_v0  ;;  %v6186_v26 = vsel %vm1917_vm8, %v6184_v25, %v6172_v24  ;;  %v4634_v24 = vld [vmem:[%s9707_s21 + $0x30] sm:$0xff]  ;;  %v4635_v25 = vld [vmem:[%s9707_s21 + $0x38] sm:$0xff] }
0x2b79   :  { %v8438_v1 = vpop.eup %8437 }
0x2b7a   :  { %v5995_v4 = vsel %vm716_vm5, %v8438_v1, 0.0 }
0x2b7b   :  { %5996 = vadd.xlane.f32.xlu0 %v5995_v4 }
0x2b91   :  { %6082 = vrot.lane.b32.xlu0 %v9395_v60, %s8532_s22 }
0x2b95   :  { %6161 = vrot.lane.b32.xlu0 %v9493_v63, %s8533_s23 }
0x2b99   :  { %6169 = vrot.lane.b32.xlu0 %v5746_v45, %s8534_s26 }
0x2c04   :  { %v6000_v46 = vpop.xlane.xlu0 %5999 }
0x2c05   :  { %8439 = vrcp.f32 %v6000_v46 }
0x2c08   :  { %v5997_v59 = vpop.xlane.xlu0 %5996 }
0x2c09   :  { %8441 = vrcp.f32 %v5997_v59 }
0x2c0c   :  { %v6083_v6 = vpop.permute.xlu0 %6082 }
0x2c0d   :  { %7812 = vmatpush3.msk.msra.mxu1 %vm745_vm6, %v6083_v6  ;;  %v6986_v6 = vld [vmem:[%s9705_s13] ss:$0 sm:$0xff] }
0x2c0e   :  { %8188 = vmatprep.subr.bf16.mxu1 %v8519_v3 }
0x2c0f   :  { %v8440_v7 = vpop.eup %8439 }
0x2c10   :  { %v6004_v60 = vmul.f32 %v8440_v7, %v8436_v44  ;;  %v6162_v23 = vpop.permute.xlu0 %6161 }
0x2c11   :  { %v6183_v28 = vsel %vm564_vm4, %v9453_v33, %v6162_v23 }
0x2c12   :  { %7814 = vmatmul.mubr.msk.f32.vlgmr.msra.gmra.mrb[66].mxu1 %vm741_vm7, %v6004_v60  ;;  %v6987_v60 = vld [vmem:[%s9706_s17] ss:$0 sm:$0xff] }
0x2c13   :  { %v8442_v8 = vpop.eup %8441  ;;  %7835 = vmatprep.mubr.msk.f32.mxu1 %vm8520_vm2, %v8521_v2  ;;  %8190 = vmatpush3.bf16.msra.mxu1 %v8183_v12 }
0x2c14   :  { %v6003_v63 = vmul.f32 %v8442_v8, %v8438_v1  ;;  %8191 = vmatprep.subr.bf16.mxu1 %v8519_v3  ;;  %v6170_v27 = vpop.permute.xlu0 %6169 }
0x2c15   :  { %v6185_v19 = vsel %vm1917_vm8, %v6183_v28, %v6170_v27  ;;  %v4637_v27 = vld [vmem:[%s9707_s21 + $0x48] sm:$0xff]  ;;  %v4638_v28 = vld [vmem:[%s9707_s21 + $0x50] sm:$0xff] }
0x2c16   :  { %7809 = vmatmul.mubr.msk.f32.vlgmr.msra.gmra.mrb[66].mxu0 %vm741_vm7, %v6003_v63 }
0x2c17   :  { %7824 = vmatprep.mubr.msk.f32.mxu0 %vm8520_vm2, %v8521_v2  ;;  %8184 = vmatpush3.bf16.msra.mxu0 %v8183_v12 }
0x2c18   :  { %8185 = vmatprep.subr.bf16.mxu0 %v8519_v3  ;;  %8193 = vmatpush3.bf16.msra.mxu1 %v8186_v15 }
0x2c19   :  { %8200 = vmatprep.subr.bf16.mxu1 %v8519_v3 }
0x2c1b   :  { %8187 = vmatpush3.bf16.msra.mxu0 %v8186_v15  ;;  %v4629_v15 = vld [vmem:[%s9707_s21 + $0x8] sm:$0xff] }
0x2c1c   :  { %8194 = vmatprep.subr.bf16.mxu0 %v8519_v3 }
0x2ce5   :  { %v6155_v13 = vpop.f32.mrb[66].mxu1 }
0x2ce6   :  { %6179 = vrot.lane.b32.xlu1 %v6155_v13, %s8535_s28  ;;  %v7815_v17 = vpop.f32.mrb[67].mxu1  ;;  %v8207_v13 = vpack.c.bf16 %v4629_v15, %v4628_v14 }
0x2ce7   :  { %v4630_v17 = vld [vmem:[%s9707_s21 + $0x10] sm:$0xff] }
0x2ce9   :  { %v6078_v18 = vpop.f32.mrb[66].mxu0 }
0x2cea   :  { %v7810_v22 = vpop.f32.mrb[67].mxu0  ;;  %6177 = vrot.lane.b32.xlu1 %v6078_v18, %s8535_s28  ;;  %v4631_v18 = vld [vmem:[%s9707_s21 + $0x18] sm:$0xff] }
0x2ceb   :  { %v8210_v22 = vpack.c.bf16 %v4631_v18, %v4630_v17 }
0x2d58   :  { %v6180_v16 = vpop.permute.xlu1 %6179 }
0x2d59   :  { %v6188_v20 = vsel %vm1920_vm9, %v6186_v26, %v6180_v16  ;;  %v8216_v26 = vpack.c.bf16 %v4635_v25, %v4634_v24  ;;  %v4636_v16 = vld [vmem:[%s9707_s21 + $0x40] sm:$0xff] }
0x2d5a   :  { %7836 = vmatmul.mubr.msk.f32.vlgmr.msra.gmra.mrb[68].mxu1 %vm414_vm3, %v6188_v20  ;;  %v8219_v20 = vpack.c.bf16 %v4637_v27, %v4636_v16 }
0x2d5b   :  { %7857 = vmatprep.mubr.msk.f32.mxu1 %vm8520_vm2, %v8521_v2  ;;  %8202 = vmatpush3.bf16.msra.mxu1 %v8195_v54 }
0x2d5c   :  { %v6178_v29 = vpop.permute.xlu1 %6177  ;;  %8203 = vmatprep.subr.bf16.mxu1 %v8519_v3 }
0x2d5d   :  { %v6187_v30 = vsel %vm1920_vm9, %v6185_v19, %v6178_v29  ;;  %v4639_v19 = vld [vmem:[%s9707_s21 + $0x58] sm:$0xff] }
0x2d5e   :  { %7825 = vmatmul.mubr.msk.f32.vlgmr.msra.gmra.mrb[68].mxu0 %vm414_vm3, %v6187_v30  ;;  %v8222_v29 = vpack.c.bf16 %v4639_v19, %v4638_v28  ;;  %v4640_v30 = vld [vmem:[%s9707_s21 + $0x60] sm:$0xff] }
0x2d5f   :  { %7846 = vmatprep.mubr.msk.f32.mxu0 %vm8520_vm2, %v8521_v2  ;;  %8196 = vmatpush3.bf16.msra.mxu0 %v8195_v54 }
0x2d60   :  { %8197 = vmatprep.subr.bf16.mxu0 %v8519_v3  ;;  %8205 = vmatpush3.bf16.msra.mxu1 %v8198_v58 }
0x2d61   :  { %8230 = vmatprep.subr.bf16.mxu1 %v8519_v3 }
0x2d63   :  { %8199 = vmatpush3.bf16.msra.mxu0 %v8198_v58 }
0x2d64   :  { %8206 = vmatprep.subr.bf16.mxu0 %v8519_v3 }
0x2e2d   :  { %v6331_v32 = vpop.f32.mrb[68].mxu1 }
0x2e2e   :  { %v6336_v34 = vadd.f32 %v6331_v32, %v9366_v21  ;;  %v7837_v35 = vpop.f32.mrb[69].mxu1 }
0x2e2f   :  { %v4643_v35 = vld [vmem:[%s9707_s21 + $0x78] sm:$0xff] }
0x2e30   :  { %v9581_v37 = vadd.f32 %v6985_v31, %v6336_v34  ;;  %v4642_v34 = vld [vmem:[%s9707_s21 + $0x70] sm:$0xff] }
0x2e31   :  { %v6258_v33 = vpop.f32.mrb[68].mxu0 }
0x2e32   :  { %v6335_v39 = vadd.f32 %v6258_v33, %v9371_v5  ;;  %v7826_v38 = vpop.f32.mrb[69].mxu0  ;;  %v6348_v40 = vsel %vm370_vm1, %v9581_v37, 0.0  ;;  %v8228_v33 = vpack.c.bf16 %v4643_v35, %v4642_v34 }
0x2e33   :  { %6349 = vadd.xlane.f32.xlu0 %v6348_v40 }
0x2e34   :  { %v9586_v41 = vadd.f32 %v6985_v31, %v6335_v39  ;;  %v4641_v31 = vld [vmem:[%s9707_s21 + $0x68] sm:$0xff]  ;;  %v6988_v39 = vld [vmem:[%s9708_s25] ss:$0 sm:$0xff] }
0x2e35   :  { %v8225_v32 = vpack.c.bf16 %v4641_v31, %v4640_v30 }
0x2e36   :  { %v6345_v43 = vsel %vm370_vm1, %v9586_v41, 0.0 }
0x2e37   :  { %6346 = vadd.xlane.f32.xlu1 %v6345_v43 }
0x2ec0   :  { %v6350_v21 = vpop.xlane.xlu0 %6349 }
0x2ec1   :  { %v6352_v45 = vmul.f32 0.03125, %v6350_v21 }
0x2ec3   :  { %v6354_v47 = vsub.f32 %v9581_v37, %v6352_v45 }
0x2ec4   :  { %v6347_v48 = vpop.xlane.xlu1 %6346 }
0x2ec5   :  { %v6351_v5 = vmul.f32 0.03125, %v6347_v48  ;;  %v6356_v36 = vmul.f32 %v6354_v47, %v6354_v47 }
0x2ec7   :  { %v6353_v49 = vsub.f32 %v9586_v41, %v6351_v5  ;;  %v6360_v50 = vsel %vm370_vm1, %v6356_v36, 0.0 }
0x2ec8   :  { %6361 = vadd.xlane.f32.xlu0 %v6360_v50 }
0x2ec9   :  { %v6355_v51 = vmul.f32 %v6353_v49, %v6353_v49 }
0x2ecb   :  { %v6357_v52 = vsel %vm370_vm1, %v6355_v51, 0.0  ;;  %vm6751_vm1 = vcmask 254976  }
0x2ecc   :  { %6358 = vadd.xlane.f32.xlu0 %v6357_v52 }
0x2f55   :  { %v6362_v61 = vpop.xlane.xlu0 %6361 }
0x2f56   :  { %v6364_v44 = vmul.f32 0.03125, %v6362_v61 }
0x2f58   :  { %v6366_v0 = vadd.f32 1e-05, %v6364_v44 }
0x2f59   :  { %v6359_v1 = vpop.xlane.xlu0 %6358 }
0x2f5a   :  { %8443 = vrsqrt.f32 %v6366_v0  ;;  %v6363_v4 = vmul.f32 0.03125, %v6359_v1 }
0x2f5c   :  { %v6365_v46 = vadd.f32 1e-05, %v6363_v4 }
0x2f5e   :  { %8445 = vrsqrt.f32 %v6365_v46 }
0x2f64   :  { %v8444_v59 = vpop.eup %8443 }
0x2f65   :  { %v6370_v7 = vmul.f32 %v8444_v59, %v6354_v47 }
0x2f67   :  { %v6378_v8 = vmul.f32 %v6986_v6, %v6370_v7 }
0x2f68   :  { %v8446_v63 = vpop.eup %8445 }
0x2f69   :  { %v6369_v9 = vmul.f32 %v8446_v63, %v6353_v49  ;;  %v6386_v10 = vadd.f32 %v6987_v60, %v6378_v8 }
0x2f6b   :  { %7858 = vmatmul.mubr.msk.f32.vlgmr.msra.gmra.mrb[70].mxu1 %vm414_vm3, %v6386_v10  ;;  %v6377_v11 = vmul.f32 %v6986_v6, %v6369_v9 }
0x2f6c   :  { %7927 = vmatprep.mubr.msk.f32.mxu1 %vm8520_vm2, %v8521_v2  ;;  %8232 = vmatpush3.bf16.msra.mxu1 %v8207_v13 }
0x2f6d   :  { %v6385_v12 = vadd.f32 %v6987_v60, %v6377_v11  ;;  %8233 = vmatprep.subr.bf16.mxu1 %v8519_v3 }
0x2f6f   :  { %7847 = vmatmul.mubr.msk.f32.vlgmr.msra.gmra.mrb[70].mxu0 %vm414_vm3, %v6385_v12 }
0x2f70   :  { %7892 = vmatprep.mubr.msk.f32.mxu0 %vm8520_vm2, %v8521_v2  ;;  %8208 = vmatpush3.bf16.msra.mxu0 %v8207_v13  ;;  %v4632_v2 = vld [vmem:[%s9707_s21 + $0x20] sm:$0xff] }
0x2f71   :  { %8209 = vmatprep.subr.bf16.mxu0 %v8519_v3  ;;  %8235 = vmatpush3.bf16.msra.mxu1 %v8210_v22  ;;  %v8213_v23 = vpack.c.bf16 %v4633_v62, %v4632_v2 }
0x2f72   :  { %8236 = vmatprep.subr.bf16.mxu1 %v8519_v3 }
0x2f74   :  { %8211 = vmatpush3.bf16.msra.mxu0 %v8210_v22 }
0x2f75   :  { %8212 = vmatprep.subr.bf16.mxu0 %v8519_v3  ;;  %8238 = vmatpush3.bf16.msra.mxu1 %v8213_v23 }
0x2f76   :  { %8239 = vmatprep.subr.bf16.mxu1 %v8519_v3 }
0x2f78   :  { %8214 = vmatpush3.bf16.msra.mxu0 %v8213_v23 }
0x2f79   :  { %8215 = vmatprep.subr.bf16.mxu0 %v8519_v3  ;;  %8241 = vmatpush3.bf16.msra.mxu1 %v8216_v26 }
0x2f7a   :  { %8242 = vmatprep.subr.bf16.mxu1 %v8519_v3 }
0x2f7c   :  { %8217 = vmatpush3.bf16.msra.mxu0 %v8216_v26 }
0x2f7d   :  { %8218 = vmatprep.subr.bf16.mxu0 %v8519_v3  ;;  %8244 = vmatpush3.bf16.msra.mxu1 %v8219_v20 }
0x2f7e   :  { %8245 = vmatprep.subr.bf16.mxu1 %v8519_v3 }
0x2f80   :  { %8220 = vmatpush3.bf16.msra.mxu0 %v8219_v20 }
0x2f81   :  { %8221 = vmatprep.subr.bf16.mxu0 %v8519_v3  ;;  %8247 = vmatpush3.bf16.msra.mxu1 %v8222_v29 }
0x2f82   :  { %8248 = vmatprep.subr.bf16.mxu1 %v8519_v3 }
0x2f84   :  { %8223 = vmatpush3.bf16.msra.mxu0 %v8222_v29 }
0x2f85   :  { %8224 = vmatprep.subr.bf16.mxu0 %v8519_v3  ;;  %8250 = vmatpush3.bf16.msra.mxu1 %v8225_v32 }
0x2f86   :  { %8251 = vmatprep.subr.bf16.mxu1 %v8519_v3 }
0x2f88   :  { %8226 = vmatpush3.bf16.msra.mxu0 %v8225_v32  ;;  %v6991_v32 = vld [vmem:[%s8721_s20] ss:$0 sm:$0xff]  ;;  %s8537_s20 = smov [#allocation2]  }
0x2f89   :  { %8227 = vmatprep.subr.bf16.mxu0 %v8519_v3  ;;  %8253 = vmatpush3.bf16.msra.mxu1 %v8228_v33  ;;  %s6809_s15 = sshll.u32 %s8537_s20, 4  ;;  %s6810_s15 = int_to_ptr.vmem [resolvable:$true] %s6809_s15 }
0x2f8a   :  { %s8457_s16 = scalar_lea.vmem %s6810_s15, 32  ;;  %p8462_p1 = scmp.lt.s32.totalorder %s6810_s15, %s6810_s15 }
0x2f8b   :  { %p8458_p0 = scmp.ne.s32.totalorder %s6810_s15, %s8457_s16  ;;  %p8463_p2 = scmp.lt.s32.totalorder %s8457_s16, %s8457_s16 }
0x2f8c   :  { %8229 = vmatpush3.bf16.msra.mxu0 %v8228_v33 }
0x2f8d   :  { %p8464_p3 = por %p8463_p2, %p8462_p1 }
0x2f8f   :  { %p8465_p4 = pnand %p8464_p3, %p8458_p0 }
0x303e   :  { %v6535_v38 = vpop.f32.mrb[70].mxu1 }
0x303f   :  { %v6536_v40 = vadd.f32 %v6988_v39, %v6535_v38  ;;  %v7859_v43 = vpop.f32.mrb[71].mxu1 }
0x3041   :  { %v6542_v21 = vmul.f32 0.70710677, %v6536_v40  ;;  %v6540_v26 = vmul.f32 0.5, %v6536_v40 }
0x3042   :  { %v6462_v45 = vpop.f32.mrb[70].mxu0 }
0x3043   :  { %v6548_v47 = vand.u32 2147483647, %v6542_v21  ;;  %v6463_v48 = vadd.f32 %v6988_v39, %v6462_v45  ;;  %v7848_v5 = vpop.f32.mrb[71].mxu0  ;;  %vm6544_vm14 = vcmp.ge.f32.partialorder %v6542_v21, 0.0 }
0x3044   :  { %v6546_v23 = vsel %vm6544_vm14, 1.0, %v8536_v42 }
0x3045   :  { %v6550_v36 = vmul.f32 0.3275911, %v6548_v47  ;;  %v6541_v49 = vmul.f32 0.70710677, %v6463_v48  ;;  %v6576_v3 = vmul.f32 %v6548_v47, %v6548_v47  ;;  %v6539_v29 = vmul.f32 0.5, %v6463_v48 }
0x3047   :  { %v6552_v50 = vadd.f32 1.0, %v6550_v36  ;;  %v6547_v51 = vand.u32 2147483647, %v6541_v49  ;;  %v6578_v54 = vsub.f32 0.0, %v6576_v3  ;;  %vm6543_vm15 = vcmp.ge.f32.partialorder %v6541_v49, 0.0 }
0x3048   :  { %v6545_v20 = vsel %vm6543_vm15, 1.0, %v8536_v42 }
0x3049   :  { %8447 = vrcp.f32 %v6552_v50  ;;  %v6549_v52 = vmul.f32 0.3275911, %v6547_v51  ;;  %v6575_v55 = vmul.f32 %v6547_v51, %v6547_v51  ;;  %v6581_v44 = vmul.f32 1.442695, %v6578_v54 }
0x304b   :  { %v6551_v53 = vadd.f32 1.0, %v6549_v52  ;;  %v6577_v0 = vsub.f32 0.0, %v6575_v55 }
0x304d   :  { %8449 = vrcp.f32 %v6551_v53  ;;  %v6579_v6 = vmul.f32 1.442695, %v6577_v0 }
0x304e   :  { %8451 = vpow2.f32 %v6581_v44 }
0x304f   :  { %8453 = vpow2.f32 %v6579_v6 }
0x3053   :  { %v8448_v56 = vpop.eup %8447 }
0x3054   :  { %v6558_v57 = vmul.f32 1.0614054, %v8448_v56 }
0x3056   :  { %v6560_v58 = vadd.f32 -1.4531521, %v6558_v57 }
0x3057   :  { %v8450_v61 = vpop.eup %8449 }
0x3058   :  { %v6562_v1 = vmul.f32 %v8448_v56, %v6560_v58  ;;  %v6557_v4 = vmul.f32 1.0614054, %v8450_v61  ;;  %v8452_v13 = vpop.eup %8451 }
0x3059   :  { %v8454_v62 = vpop.eup %8453 }
0x305a   :  { %v6564_v46 = vadd.f32 1.4214138, %v6562_v1  ;;  %v6559_v59 = vadd.f32 -1.4531521, %v6557_v4  ;;  %v6993_v4 = vld [vmem:[%s8731_s4] ss:$0 sm:$0xff] }
0x305c   :  { %v6566_v7 = vmul.f32 %v8448_v56, %v6564_v46  ;;  %v6561_v60 = vmul.f32 %v8450_v61, %v6559_v59 }
0x305e   :  { %v6568_v8 = vadd.f32 -0.28449672, %v6566_v7  ;;  %v6563_v63 = vadd.f32 1.4214138, %v6561_v60 }
0x3060   :  { %v6570_v9 = vmul.f32 %v8448_v56, %v6568_v8  ;;  %v6565_v10 = vmul.f32 %v8450_v61, %v6563_v63 }
0x3062   :  { %v6572_v11 = vadd.f32 0.2548296, %v6570_v9  ;;  %v6567_v12 = vadd.f32 -0.28449672, %v6565_v10 }
0x3064   :  { %v6574_v14 = vmul.f32 %v8448_v56, %v6572_v11  ;;  %v6569_v15 = vmul.f32 %v8450_v61, %v6567_v12 }
0x3066   :  { %v6584_v17 = vmul.f32 %v8452_v13, %v6574_v14  ;;  %v6571_v18 = vadd.f32 0.2548296, %v6569_v15 }
0x3068   :  { %v6586_v22 = vsub.f32 1.0, %v6584_v17  ;;  %v6573_v2 = vmul.f32 %v8450_v61, %v6571_v18  ;;  %v6992_v61 = vld [vmem:[%s8726_s27] ss:$0 sm:$0xff] }
0x306a   :  { %v6588_v24 = vmul.f32 %v6586_v22, %v6546_v23  ;;  %v6583_v25 = vmul.f32 %v8454_v62, %v6573_v2 }
0x306c   :  { %v6590_v16 = vadd.f32 1.0, %v6588_v24  ;;  %v6585_v27 = vsub.f32 1.0, %v6583_v25 }
0x306e   :  { %v6592_v28 = vmul.f32 %v6590_v16, %v6540_v26  ;;  %v6587_v19 = vmul.f32 %v6585_v27, %v6545_v20 }
0x3070   :  { %v6589_v30 = vadd.f32 1.0, %v6587_v19  ;;  %7928 = vmatmul.mubr.f32.vlgmr.msra.gmra.mrb[72].mxu1 %v6592_v28 }
0x3072   :  { %v6591_v31 = vmul.f32 %v6589_v30, %v6539_v29 }
0x3074   :  { %7893 = vmatmul.mubr.f32.vlgmr.msra.gmra.mrb[72].mxu0 %v6591_v31 }
0x3143   :  { %v6729_v34 = vpop.f32.mrb[72].mxu1 }
0x3144   :  { %v6734_v35 = vadd.f32 %v6729_v34, %v9581_v37  ;;  %v7929_v33 = vpop.f32.mrb[73].mxu1 }
0x3146   :  { %v6742_v39 = vadd.f32 %v6991_v32, %v6734_v35 }
0x3147   :  { %v6659_v38 = vpop.f32.mrb[72].mxu0 }
0x3148   :  { %v6733_v40 = vadd.f32 %v6659_v38, %v9586_v41  ;;  %v7894_v43 = vpop.f32.mrb[73].mxu0  ;;  %v6747_v21 = vrot.slane %v6742_v39, 7 }
0x314a   :  { %v6741_v42 = vadd.f32 %v6991_v32, %v6733_v40 }
0x314c   :  { %v6749_v45 = vsel %vm6748_vm0, %v6747_v21, %v6741_v42 }
0x314d   :  { %v6752_v47 = vsel %vm6751_vm1, %v6749_v45, 0.0 }
0x314e   :  { %6753 = vadd.xlane.f32.xlu0 %v6752_v47 }
0x31db   :  { %v6754_v48 = vpop.xlane.xlu0 %6753 }
0x31dc   :  { %v6755_v5 = vmul.f32 0.03125, %v6754_v48 }
0x31de   :  { %v6757_v36 = vrot.slane %v6755_v5, 1  ;;  %v6760_v37 = vsub.f32 %v6741_v42, %v6755_v5 }
0x31e0   :  { %v6761_v49 = vsub.f32 %v6742_v39, %v6757_v36  ;;  %v6762_v51 = vmul.f32 %v6760_v37, %v6760_v37 }
0x31e2   :  { %v6763_v50 = vmul.f32 %v6761_v49, %v6761_v49 }
0x31e4   :  { %v6766_v41 = vrot.slane %v6763_v50, 7 }
0x31e6   :  { %v6767_v52 = vsel %vm6748_vm0, %v6766_v41, %v6762_v51 }
0x31e7   :  { %v6769_v53 = vsel %vm6751_vm1, %v6767_v52, 0.0 }
0x31e8   :  { %6770 = vadd.xlane.f32.xlu1 %v6769_v53 }
0x3275   :  { %v6771_v3 = vpop.xlane.xlu1 %6770 }
0x3276   :  { %v6772_v56 = vmul.f32 0.03125, %v6771_v3 }
0x3278   :  { %v6773_v54 = vadd.f32 1e-05, %v6772_v56 }
0x327a   :  { %8455 = vrsqrt.f32 %v6773_v54 }
0x3284   :  { %v8456_v55 = vpop.eup %8455 }
0x3285   :  { %v6776_v57 = vrot.slane %v8456_v55, 1  ;;  %v6779_v58 = vmul.f32 %v8456_v55, %v6760_v37 }
0x3287   :  { %v6780_v44 = vmul.f32 %v6776_v57, %v6761_v49  ;;  %v6787_v0 = vmul.f32 %v6992_v61, %v6779_v58 }
0x3289   :  { %v6788_v1 = vmul.f32 %v6992_v61, %v6780_v44  ;;  %v6795_v59 = vadd.f32 %v6993_v4, %v6787_v0 }
0x328b   :  { %v6796_v46 = vadd.f32 %v6993_v4, %v6788_v1 }
0x328d   :  { %v6799_v6 = vrot.slane %v6796_v46, 7 }
0x328f   :  { %v6800_v7 = vsel %vm6748_vm0, %v6799_v6, %v6795_v59 }
0x3290   :  { %6802 = vst.msk [vmem:[#allocation2] sm:$0x3] %vm6751_vm1, %v6800_v7 }
0x3291   :  { %8468 = shalt.err (!%p8465_p4)
}
0x3292   :  { %s8469_s27 = scalar_lea.hbm %s8736_s12, 32 }
0x3293   :  { %p8470_p5 = scmp.ne.s32.totalorder %s8736_s12, %s8469_s27  ;;  %p8473_p6 = scmp.lt.u32.totalorder %s8469_s27, %s8736_s12 }
0x3295   :  { %p8475_p7 = pnand %p8473_p6, %p8470_p5 }
0x3297   :  { %8478 = shalt.err (!%p8475_p7)
}
0x3298   :  { %6812 = dma.vmem_to_hbm [thread:$0]  %s6810_s15, 32, %s8736_s12, [#allocation3]  }
0x3299   :  { %8479 = dma.done.wait [#allocation3], 32  }
0x329a   :  { %8480 = vsyncadd [#allocation3], 4294967264 }
0x329b   :  { %6816 = vsyncpa [#allocation3], 1 }

</bundles_post_ra>
